<compile_context>
chip_gen: v5e
topology: v5e:2x2
jax: 0.10.0
libtpu: 0.0.40
codegen_flags: <defaults>
</compile_context>

<pallas_src>
import jax
import jax.numpy as jnp
from jax import lax
from jax.experimental import pallas as pl
from jax.experimental.pallas import tpu as pltpu


# ----------------------------- Pallas kernels -----------------------------

def lstm_kernel(x_ref, w_ih_ref, w_hh_ref, b_ref, out_ref, h_sc, c_sc, gx_sc):
    """One time-chunk of a single-layer LSTM (time-flattened layout).

    x_ref   : (Tc*Bp, Dp)    bf16   embedded inputs for this chunk (flat)
    w_ih_ref: (Dp, 4*Hp)     bf16   input->gates weights (gate order i,f,g,o)
    w_hh_ref: (Hp, 4*Hp)     bf16   hidden->gates weights
    b_ref   : (1, 4*Hp)      f32    combined bias (b_ih + b_hh)
    out_ref : (Tc*Bp, Hp)    bf16   memory_bank chunk (flat)
    h_sc    : (Bp, Hp)       bf16   persistent hidden state scratch
    c_sc    : (Bp, Hp)       f32    persistent cell state scratch
    gx_sc   : (Tc*Bp, 4*Hp)  bf16   precomputed input gates (+ bias) scratch
    """
    Bp, Hp = c_sc.shape
    Tc = x_ref.shape[0] // Bp

    @pl.when(pl.program_id(0) == 0)
    def _init():
        h_sc[...] = jnp.zeros_like(h_sc)
        c_sc[...] = jnp.zeros_like(c_sc)

    # Hoisted input-to-gates matmul for the whole chunk: one big MXU matmul
    # instead of Tc tiny ones on the serial critical path. Bias folded in once.
    gx = jnp.dot(x_ref[...], w_ih_ref[...], preferred_element_type=jnp.float32)
    gx_sc[...] = (gx + b_ref[...]).astype(gx_sc.dtype)

    w_hh = w_hh_ref[...]

    def step(t, carry):
        row = pl.multiple_of(t * Bp, Bp)
        gx_t = gx_sc[pl.ds(row, Bp), :]                      # (Bp, 4Hp) bf16
        gates = gx_t + jnp.dot(h_sc[...], w_hh,              # f32 accumulation
                               preferred_element_type=jnp.float32)
        i_g = jax.nn.sigmoid(gates[:, 0:Hp])
        f_g = jax.nn.sigmoid(gates[:, Hp:2 * Hp])
        g_g = jnp.tanh(gates[:, 2 * Hp:3 * Hp])
        o_g = jax.nn.sigmoid(gates[:, 3 * Hp:4 * Hp])
        c_new = f_g * c_sc[...] + i_g * g_g
        h_new = o_g * jnp.tanh(c_new)
        c_sc[...] = c_new
        h_bf = h_new.astype(out_ref.dtype)                   # cast once
        h_sc[...] = h_bf
        out_ref[pl.ds(row, Bp), :] = h_bf
        return carry

    lax.fori_loop(0, Tc, step, 0, unroll=True)


def proj_kernel(mb_ref, w_ref, out_ref):
    """Output projection tile: (tm, Hp) @ (Hp, tn) -> (tm, tn), no bias."""
    out_ref[...] = jnp.dot(mb_ref[...], w_ref[...],
                           preferred_element_type=jnp.float32)


# ------------------------------ JAX wrapper -------------------------------

def _round_up(x, m):
    return (x + m - 1) // m * m


def _pad_gates(w, h, hp):
    """Zero-pad the last (4*H) gate axis per-gate to 4*Hp (gate order i,f,g,o)."""
    lead = w.shape[:-1]
    w4 = w.reshape(lead + (4, h))
    w4 = jnp.pad(w4, [(0, 0)] * len(lead) + [(0, 0), (0, hp - h)])
    return w4.reshape(lead + (4 * hp,))


def _fit_time_chunk(tc, bp, dp, hp, budget_bytes=48 * 1024 * 1024):
    """Largest Tc <= tc whose per-chunk VMEM footprint fits the budget."""
    def footprint(t):
        x_tile = 2 * t * bp * dp * 2            # bf16, double buffered
        out_tile = 2 * t * bp * hp * 2          # bf16, double buffered
        gx = t * bp * 4 * hp * 2                # bf16 scratch
        weights = 2 * (dp * 4 * hp + hp * 4 * hp) * 2 + 2 * 8 * 4 * hp * 4
        state = bp * hp * (2 + 4)
        return x_tile + out_tile + gx + weights + state
    while tc > 1 and footprint(tc) > budget_bytes:
        tc //= 2
    return max(tc, 1)


def nnlm_forward(src, params, *, time_chunk=32):
    """Forward pass of NNLM. src: (T, B) int32. Returns (T, B, V) f32 logits."""
    emb = params["embedding"]          # (V, D) f32
    w_ih = params["w_ih"]              # (D, 4H)
    w_hh = params["w_hh"]              # (H, 4H)
    b = params["b"]                    # (1, 4H)   b_ih + b_hh
    w_out_t = params["w_out_t"]        # (H, V)    == out.weight.T

    T, B = src.shape
    V, D = emb.shape
    H = w_hh.shape[0]

    # Padded (lane / sublane aligned) sizes. Bp rounds to 16: bf16 packed
    # sublane tile -> unmasked per-step stores and layout-free flattening.
    Bp = max(_round_up(B, 16), 16)
    Dp = _round_up(D, 128)
    Hp = _round_up(H, 128)

    # Time chunk: fit VMEM budget, then prefer a divisor of T (no wasted
    # padded serial steps).
    Tc = min(time_chunk, T)
    Tc = _fit_time_chunk(Tc, Bp, Dp, Hp)
    for cand in range(Tc, max(Tc // 2, 1) - 1, -1):
        if T % cand == 0:
            Tc = cand
            break
    Tp = _round_up(T, Tc)
    n_chunks = Tp // Tc

    # --- embedding lookup + padding (plain-JAX glue); cast to bf16 first so
    # the gather / pad move half the bytes ---
    x = jnp.take(emb.astype(jnp.bfloat16), src.reshape(-1), axis=0)
    x = x.reshape(T, B, D)
    x = jnp.pad(x, ((0, Tp - T), (0, Bp - B), (0, Dp - D)))
    x_flat = x.reshape(Tp * Bp, Dp)                      # time-major, flat

    w_ih_p = jnp.pad(_pad_gates(w_ih, H, Hp),
                     ((0, Dp - D), (0, 0))).astype(jnp.bfloat16)
    w_hh_p = jnp.pad(_pad_gates(w_hh, H, Hp),
                     ((0, Hp - H), (0, 0))).astype(jnp.bfloat16)
    b_p = _pad_gates(b, H, Hp).astype(jnp.float32)       # (1, 4Hp)

    lstm_cost = pl.CostEstimate(
        flops=2 * Tp * Bp * (Dp + Hp) * 4 * Hp,
        transcendentals=5 * Tp * Bp * Hp,
        bytes_accessed=(Tp * Bp * Dp * 2 + Dp * 4 * Hp * 2 + Hp * 4 * Hp * 2
                        + 4 * Hp * 4 + Tp * Bp * Hp * 2),
    )

    # --- LSTM recurrence: time-chunked grid, persistent h/c scratch ---
    memory_bank = pl.pallas_call(
        lstm_kernel,
        out_shape=jax.ShapeDtypeStruct((Tp * Bp, Hp), jnp.bfloat16),
        grid_spec=pltpu.PrefetchScalarGridSpec(
            num_scalar_prefetch=0,
            grid=(n_chunks,),
            in_specs=[
                pl.BlockSpec((Tc * Bp, Dp), lambda i: (i, 0)),
                pl.BlockSpec((Dp, 4 * Hp), lambda i: (0, 0)),
                pl.BlockSpec((Hp, 4 * Hp), lambda i: (0, 0)),
                pl.BlockSpec((1, 4 * Hp), lambda i: (0, 0)),
            ],
            out_specs=pl.BlockSpec((Tc * Bp, Hp), lambda i: (i, 0)),
            scratch_shapes=[
                pltpu.VMEM((Bp, Hp), jnp.bfloat16),           # h (bf16: only
                pltpu.VMEM((Bp, Hp), jnp.float32),            #   ever used bf16)
                pltpu.VMEM((Tc * Bp, 4 * Hp), jnp.bfloat16),  # precomputed gates
            ],
        ),
        compiler_params=pltpu.CompilerParams(
            dimension_semantics=("arbitrary",),       # time is sequential
            vmem_limit_bytes=64 * 1024 * 1024,
        ),
        cost_estimate=lstm_cost,
    )(x_flat, w_ih_p, w_hh_p, b_p)

    # --- vocab projection: tiled (tm, Hp) @ (Hp, tn) grid; tm divides M so
    # the memory bank is consumed in place (no padded HBM copy) ---
    M = Tp * Bp
    tm = Bp
    cand = Bp
    while cand <= min(512, M):
        if M % cand == 0:
            tm = cand
        cand += Bp

    tn = min(1024, _round_up(V, 128))
    Vp = _round_up(V, tn)

    w_out_p = jnp.pad(w_out_t, ((0, Hp - H), (0, Vp - V))).astype(jnp.bfloat16)

    proj_cost = pl.CostEstimate(
        flops=2 * M * Hp * Vp,
        transcendentals=0,
        bytes_accessed=M * Hp * 2 + Hp * Vp * 2 + M * Vp * 4,
    )

    logits_flat = pl.pallas_call(
        proj_kernel,
        out_shape=jax.ShapeDtypeStruct((M, Vp), jnp.float32),
        grid_spec=pltpu.PrefetchScalarGridSpec(
            num_scalar_prefetch=0,
            grid=(M // tm, Vp // tn),
            in_specs=[
                pl.BlockSpec((tm, Hp), lambda i, j: (i, 0)),
                pl.BlockSpec((Hp, tn), lambda i, j: (0, j)),
            ],
            out_specs=pl.BlockSpec((tm, tn), lambda i, j: (i, j)),
        ),
        compiler_params=pltpu.CompilerParams(
            dimension_semantics=("parallel", "parallel"),
            vmem_limit_bytes=64 * 1024 * 1024,
        ),
        cost_estimate=proj_cost,
    )(memory_bank, w_out_p)

    logits = logits_flat[:, :V].reshape(Tp, Bp, V)[:T, :B, :]
    return logits


# ----------------------- deterministic param init -------------------------

def make_params(key, vocab_size, word_dim, hidden_size):
    ks = jax.random.split(key, 6)
    scale = 0.1
    emb = scale * jax.random.normal(ks[0], (vocab_size, word_dim), jnp.float32)
    w_ih = scale * jax.random.normal(ks[1], (word_dim, 4 * hidden_size), jnp.float32)
    w_hh = scale * jax.random.normal(ks[2], (hidden_size, 4 * hidden_size), jnp.float32)
    b_ih = scale * jax.random.normal(ks[3], (4 * hidden_size,), jnp.float32)
    b_hh = scale * jax.random.normal(ks[4], (4 * hidden_size,), jnp.float32)
    w_out = scale * jax.random.normal(ks[5], (vocab_size, hidden_size), jnp.float32)
    return {
        "embedding": emb,
        "w_ih": w_ih,
        "w_hh": w_hh,
        "b": (b_ih + b_hh).reshape(1, 4 * hidden_size),
        "w_out_t": w_out.T,            # Linear(H, V, bias=False): y = x @ W^T
    }


# ------------------------- pure-JAX f32 reference --------------------------

def nnlm_reference(src, params):
    emb = params["embedding"]
    w_ih, w_hh, b = params["w_ih"], params["w_hh"], params["b"]
    w_out_t = params["w_out_t"]
    T, B = src.shape
    H = w_hh.shape[0]
    x = jnp.take(emb, src.reshape(-1), axis=0).reshape(T, B, -1)

    def step(carry, x_t):
        h, c = carry
        gates = x_t @ w_ih + h @ w_hh + b
        i = jax.nn.sigmoid(gates[:, 0:H])
        f = jax.nn.sigmoid(gates[:, H:2 * H])
        g = jnp.tanh(gates[:, 2 * H:3 * H])
        o = jax.nn.sigmoid(gates[:, 3 * H:4 * H])
        c = f * c + i * g
        h = o * jnp.tanh(c)
        return (h, c), h

    h0 = jnp.zeros((B, H), jnp.float32)
    (_, _), mb = lax.scan(step, (h0, h0), x)
    return (mb.reshape(T * B, H) @ w_out_t).reshape(T, B, -1)


# --------------------------------- main ------------------------------------

if __name__ == "__main__":
    # Small NNLM config: rnn_type="LSTM", bidirectional=False, num_layers=1
    vocab_size = 64
    word_dim = 32
    hidden_size = 32
    T, B = 8, 2

    key = jax.random.PRNGKey(0)
    pkey, skey = jax.random.split(key)
    params = make_params(pkey, vocab_size, word_dim, hidden_size)
    src = jax.random.randint(skey, (T, B), 0, vocab_size, dtype=jnp.int32)

    logits = nnlm_forward(src, params)
    logits = jax.block_until_ready(logits)

    ref = nnlm_reference(src, params)
    assert logits.shape == (T, B, vocab_size)
    # bf16 matmul operands / bf16 gate & hidden storage (f32 accumulation)
    # -> loosened tolerance vs the f32 reference.
    assert jnp.allclose(logits, ref, atol=2e-2, rtol=2e-2), (
        "mismatch vs reference; max abs err = "
        f"{float(jnp.max(jnp.abs(logits - ref)))}")

    print("KERNEL_OK")
</pallas_src>

<mosaic_0001>
module attributes {stable_mosaic.version = 11 : i64} {
  func.func @lstm_kernel(%arg0: i32, %arg1: memref<128x128xbf16, #tpu.memory_space<vmem>>, %arg2: memref<128x512xbf16, #tpu.memory_space<vmem>>, %arg3: memref<128x512xbf16, #tpu.memory_space<vmem>>, %arg4: memref<1x512xf32, #tpu.memory_space<vmem>>, %arg5: memref<128x128xbf16, #tpu.memory_space<vmem>>, %arg6: memref<16x128xbf16, #tpu.memory_space<vmem>>, %arg7: memref<16x128xf32, #tpu.memory_space<vmem>>, %arg8: memref<128x512xbf16, #tpu.memory_space<vmem>>) attributes {dimension_semantics = [#tpu.dimension_semantics<arbitrary>], iteration_bounds = array<i64: 1>, scalar_prefetch = 0 : i64, scratch_operands = 3 : i64, tpu.core_type = #tpu.core_type<tc>, window_params = [{transform_indices = @transform_0, window_bounds = array<i64: 128, 128>}, {pipeline_mode = #tpu.pipeline_mode<synchronous>, transform_indices = @transform_1, window_bounds = array<i64: 128, 512>}, {pipeline_mode = #tpu.pipeline_mode<synchronous>, transform_indices = @transform_2, window_bounds = array<i64: 128, 512>}, {pipeline_mode = #tpu.pipeline_mode<synchronous>, transform_indices = @transform_3, window_bounds = array<i64: 1, 512>}, {transform_indices = @transform_4, window_bounds = array<i64: 128, 128>}]} {
    %c0_i32 = arith.constant 0 : i32
    %0 = arith.cmpi eq, %arg0, %c0_i32 : i32
    %1 = arith.extui %0 : i1 to i32
    %c0_i32_0 = arith.constant 0 : i32
    %2 = arith.cmpi ne, %1, %c0_i32_0 : i32
    scf.if %2 {
      %cst_130 = arith.constant 0.000000e+00 : bf16
      %324 = vector.broadcast %cst_130 : bf16 to vector<16x128xbf16>
      %c0_131 = arith.constant 0 : index
      %c0_132 = arith.constant 0 : index
      %325 = vector.load %arg6[%c0_131, %c0_132] : memref<16x128xbf16, #tpu.memory_space<vmem>>, vector<16x128xbf16>
      tpu.vector_store %arg6[%c0_131, %c0_132], %324 {strides = array<i32>} : memref<16x128xbf16, #tpu.memory_space<vmem>>, vector<16x128xbf16>,
      %cst_133 = arith.constant 0.000000e+00 : f32
      %326 = vector.broadcast %cst_133 : f32 to vector<16x128xf32>
      %c0_134 = arith.constant 0 : index
      %c0_135 = arith.constant 0 : index
      %327 = vector.load %arg7[%c0_134, %c0_135] : memref<16x128xf32, #tpu.memory_space<vmem>>, vector<16x128xf32>
      tpu.vector_store %arg7[%c0_134, %c0_135], %326 {strides = array<i32>} : memref<16x128xf32, #tpu.memory_space<vmem>>, vector<16x128xf32>,
    } else {
    }
    %c0 = arith.constant 0 : index
    %c0_1 = arith.constant 0 : index
    %3 = vector.load %arg1[%c0, %c0_1] : memref<128x128xbf16, #tpu.memory_space<vmem>>, vector<128x128xbf16>
    %c0_2 = arith.constant 0 : index
    %c0_3 = arith.constant 0 : index
    %4 = vector.load %arg2[%c0_2, %c0_3] : memref<128x512xbf16, #tpu.memory_space<vmem>>, vector<128x512xbf16>
    %cst = arith.constant dense<0.000000e+00> : vector<128x512xf32>
    %5 = tpu.matmul %3, %4, %cst {dimension_numbers = #tpu.dot_dimension_numbers<[1], [0], [0], [1], [0, 0, 1, 1], [], []>} : vector<128x128xbf16>, vector<128x512xbf16>, vector<128x512xf32> -> vector<128x512xf32>
    %c0_4 = arith.constant 0 : index
    %c0_5 = arith.constant 0 : index
    %6 = vector.load %arg4[%c0_4, %c0_5] : memref<1x512xf32, #tpu.memory_space<vmem>>, vector<1x512xf32>
    %7 = vector.broadcast %6 : vector<1x512xf32> to vector<128x512xf32>
    %8 = arith.addf %5, %7 : vector<128x512xf32>
    %9 = arith.truncf %8 : vector<128x512xf32> to vector<128x512xbf16>
    %c0_6 = arith.constant 0 : index
    %c0_7 = arith.constant 0 : index
    %10 = vector.load %arg8[%c0_6, %c0_7] : memref<128x512xbf16, #tpu.memory_space<vmem>>, vector<128x512xbf16>
    tpu.vector_store %arg8[%c0_6, %c0_7], %9 {strides = array<i32>} : memref<128x512xbf16, #tpu.memory_space<vmem>>, vector<128x512xbf16>,
    %c0_8 = arith.constant 0 : index
    %c0_9 = arith.constant 0 : index
    %11 = vector.load %arg3[%c0_8, %c0_9] : memref<128x512xbf16, #tpu.memory_space<vmem>>, vector<128x512xbf16>
    %c0_i32_10 = arith.constant 0 : i32
    %c16_i32 = arith.constant 16 : i32
    %12 = arith.muli %c0_i32_10, %c16_i32 : i32
    %13 = tpu.assume_multiple %12, 16 : i32
    %14 = arith.index_cast %13 : i32 to index
    %c0_11 = arith.constant 0 : index
    %15 = vector.load %arg8[%14, %c0_11] : memref<128x512xbf16, #tpu.memory_space<vmem>>, vector<16x512xbf16>
    %c0_12 = arith.constant 0 : index
    %c0_13 = arith.constant 0 : index
    %16 = vector.load %arg6[%c0_12, %c0_13] : memref<16x128xbf16, #tpu.memory_space<vmem>>, vector<16x128xbf16>
    %cst_14 = arith.constant dense<0.000000e+00> : vector<16x512xf32>
    %17 = tpu.matmul %16, %11, %cst_14 {dimension_numbers = #tpu.dot_dimension_numbers<[1], [0], [0], [1], [0, 0, 1, 1], [], []>} : vector<16x128xbf16>, vector<128x512xbf16>, vector<16x512xf32> -> vector<16x512xf32>
    %18 = arith.extf %15 : vector<16x512xbf16> to vector<16x512xf32>
    %19 = arith.addf %18, %17 : vector<16x512xf32>
    %20 = vector.extract_strided_slice %19 {offsets = [0, 0], sizes = [16, 128], strides = [1, 1]} : vector<16x512xf32> to vector<16x128xf32>
    %21 = arith.negf %20 : vector<16x128xf32>
    %22 = math.exp %21 : vector<16x128xf32>
    %cst_15 = arith.constant 1.000000e+00 : f32
    %23 = vector.broadcast %cst_15 : f32 to vector<16x128xf32>
    %24 = arith.addf %23, %22 : vector<16x128xf32>
    %25 = arith.divf %23, %24 : vector<16x128xf32>
    %26 = vector.extract_strided_slice %19 {offsets = [0, 128], sizes = [16, 128], strides = [1, 1]} : vector<16x512xf32> to vector<16x128xf32>
    %27 = arith.negf %26 : vector<16x128xf32>
    %28 = math.exp %27 : vector<16x128xf32>
    %cst_16 = arith.constant 1.000000e+00 : f32
    %29 = vector.broadcast %cst_16 : f32 to vector<16x128xf32>
    %30 = arith.addf %29, %28 : vector<16x128xf32>
    %31 = arith.divf %29, %30 : vector<16x128xf32>
    %32 = vector.extract_strided_slice %19 {offsets = [0, 256], sizes = [16, 128], strides = [1, 1]} : vector<16x512xf32> to vector<16x128xf32>
    %33 = math.tanh %32 : vector<16x128xf32>
    %34 = vector.extract_strided_slice %19 {offsets = [0, 384], sizes = [16, 128], strides = [1, 1]} : vector<16x512xf32> to vector<16x128xf32>
    %35 = arith.negf %34 : vector<16x128xf32>
    %36 = math.exp %35 : vector<16x128xf32>
    %cst_17 = arith.constant 1.000000e+00 : f32
    %37 = vector.broadcast %cst_17 : f32 to vector<16x128xf32>
    %38 = arith.addf %37, %36 : vector<16x128xf32>
    %39 = arith.divf %37, %38 : vector<16x128xf32>
    %c0_18 = arith.constant 0 : index
    %c0_19 = arith.constant 0 : index
    %40 = vector.load %arg7[%c0_18, %c0_19] : memref<16x128xf32, #tpu.memory_space<vmem>>, vector<16x128xf32>
    %41 = arith.mulf %31, %40 : vector<16x128xf32>
    %42 = arith.mulf %25, %33 : vector<16x128xf32>
    %43 = arith.addf %41, %42 : vector<16x128xf32>
    %44 = math.tanh %43 : vector<16x128xf32>
    %45 = arith.mulf %39, %44 : vector<16x128xf32>
    %c0_20 = arith.constant 0 : index
    %c0_21 = arith.constant 0 : index
    %46 = vector.load %arg7[%c0_20, %c0_21] : memref<16x128xf32, #tpu.memory_space<vmem>>, vector<16x128xf32>
    tpu.vector_store %arg7[%c0_20, %c0_21], %43 {strides = array<i32>} : memref<16x128xf32, #tpu.memory_space<vmem>>, vector<16x128xf32>,
    %47 = arith.truncf %45 : vector<16x128xf32> to vector<16x128xbf16>
    %c0_22 = arith.constant 0 : index
    %c0_23 = arith.constant 0 : index
    %48 = vector.load %arg6[%c0_22, %c0_23] : memref<16x128xbf16, #tpu.memory_space<vmem>>, vector<16x128xbf16>
    tpu.vector_store %arg6[%c0_22, %c0_23], %47 {strides = array<i32>} : memref<16x128xbf16, #tpu.memory_space<vmem>>, vector<16x128xbf16>,
    %49 = arith.index_cast %13 : i32 to index
    %c0_24 = arith.constant 0 : index
    %50 = vector.load %arg5[%49, %c0_24] : memref<128x128xbf16, #tpu.memory_space<vmem>>, vector<16x128xbf16>
    tpu.vector_store %arg5[%49, %c0_24], %47 {strides = array<i32>} : memref<128x128xbf16, #tpu.memory_space<vmem>>, vector<16x128xbf16>,
    %c1_i32 = arith.constant 1 : i32
    %c16_i32_25 = arith.constant 16 : i32
    %51 = arith.muli %c1_i32, %c16_i32_25 : i32
    %52 = tpu.assume_multiple %51, 16 : i32
    %53 = arith.index_cast %52 : i32 to index
    %c0_26 = arith.constant 0 : index
    %54 = vector.load %arg8[%53, %c0_26] : memref<128x512xbf16, #tpu.memory_space<vmem>>, vector<16x512xbf16>
    %c0_27 = arith.constant 0 : index
    %c0_28 = arith.constant 0 : index
    %55 = vector.load %arg6[%c0_27, %c0_28] : memref<16x128xbf16, #tpu.memory_space<vmem>>, vector<16x128xbf16>
    %cst_29 = arith.constant dense<0.000000e+00> : vector<16x512xf32>
    %56 = tpu.matmul %55, %11, %cst_29 {dimension_numbers = #tpu.dot_dimension_numbers<[1], [0], [0], [1], [0, 0, 1, 1], [], []>} : vector<16x128xbf16>, vector<128x512xbf16>, vector<16x512xf32> -> vector<16x512xf32>
    %57 = arith.extf %54 : vector<16x512xbf16> to vector<16x512xf32>
    %58 = arith.addf %57, %56 : vector<16x512xf32>
    %59 = vector.extract_strided_slice %58 {offsets = [0, 0], sizes = [16, 128], strides = [1, 1]} : vector<16x512xf32> to vector<16x128xf32>
    %60 = arith.negf %59 : vector<16x128xf32>
    %61 = math.exp %60 : vector<16x128xf32>
    %cst_30 = arith.constant 1.000000e+00 : f32
    %62 = vector.broadcast %cst_30 : f32 to vector<16x128xf32>
    %63 = arith.addf %62, %61 : vector<16x128xf32>
    %64 = arith.divf %62, %63 : vector<16x128xf32>
    %65 = vector.extract_strided_slice %58 {offsets = [0, 128], sizes = [16, 128], strides = [1, 1]} : vector<16x512xf32> to vector<16x128xf32>
    %66 = arith.negf %65 : vector<16x128xf32>
    %67 = math.exp %66 : vector<16x128xf32>
    %cst_31 = arith.constant 1.000000e+00 : f32
    %68 = vector.broadcast %cst_31 : f32 to vector<16x128xf32>
    %69 = arith.addf %68, %67 : vector<16x128xf32>
    %70 = arith.divf %68, %69 : vector<16x128xf32>
    %71 = vector.extract_strided_slice %58 {offsets = [0, 256], sizes = [16, 128], strides = [1, 1]} : vector<16x512xf32> to vector<16x128xf32>
    %72 = math.tanh %71 : vector<16x128xf32>
    %73 = vector.extract_strided_slice %58 {offsets = [0, 384], sizes = [16, 128], strides = [1, 1]} : vector<16x512xf32> to vector<16x128xf32>
    %74 = arith.negf %73 : vector<16x128xf32>
    %75 = math.exp %74 : vector<16x128xf32>
    %cst_32 = arith.constant 1.000000e+00 : f32
    %76 = vector.broadcast %cst_32 : f32 to vector<16x128xf32>
    %77 = arith.addf %76, %75 : vector<16x128xf32>
    %78 = arith.divf %76, %77 : vector<16x128xf32>
    %c0_33 = arith.constant 0 : index
    %c0_34 = arith.constant 0 : index
    %79 = vector.load %arg7[%c0_33, %c0_34] : memref<16x128xf32, #tpu.memory_space<vmem>>, vector<16x128xf32>
    %80 = arith.mulf %70, %79 : vector<16x128xf32>
    %81 = arith.mulf %64, %72 : vector<16x128xf32>
    %82 = arith.addf %80, %81 : vector<16x128xf32>
    %83 = math.tanh %82 : vector<16x128xf32>
    %84 = arith.mulf %78, %83 : vector<16x128xf32>
    %c0_35 = arith.constant 0 : index
    %c0_36 = arith.constant 0 : index
    %85 = vector.load %arg7[%c0_35, %c0_36] : memref<16x128xf32, #tpu.memory_space<vmem>>, vector<16x128xf32>
    tpu.vector_store %arg7[%c0_35, %c0_36], %82 {strides = array<i32>} : memref<16x128xf32, #tpu.memory_space<vmem>>, vector<16x128xf32>,
    %86 = arith.truncf %84 : vector<16x128xf32> to vector<16x128xbf16>
    %c0_37 = arith.constant 0 : index
    %c0_38 = arith.constant 0 : index
    %87 = vector.load %arg6[%c0_37, %c0_38] : memref<16x128xbf16, #tpu.memory_space<vmem>>, vector<16x128xbf16>
    tpu.vector_store %arg6[%c0_37, %c0_38], %86 {strides = array<i32>} : memref<16x128xbf16, #tpu.memory_space<vmem>>, vector<16x128xbf16>,
    %88 = arith.index_cast %52 : i32 to index
    %c0_39 = arith.constant 0 : index
    %89 = vector.load %arg5[%88, %c0_39] : memref<128x128xbf16, #tpu.memory_space<vmem>>, vector<16x128xbf16>
    tpu.vector_store %arg5[%88, %c0_39], %86 {strides = array<i32>} : memref<128x128xbf16, #tpu.memory_space<vmem>>, vector<16x128xbf16>,
    %c2_i32 = arith.constant 2 : i32
    %c16_i32_40 = arith.constant 16 : i32
    %90 = arith.muli %c2_i32, %c16_i32_40 : i32
    %91 = tpu.assume_multiple %90, 16 : i32
    %92 = arith.index_cast %91 : i32 to index
    %c0_41 = arith.constant 0 : index
    %93 = vector.load %arg8[%92, %c0_41] : memref<128x512xbf16, #tpu.memory_space<vmem>>, vector<16x512xbf16>
    %c0_42 = arith.constant 0 : index
    %c0_43 = arith.constant 0 : index
    %94 = vector.load %arg6[%c0_42, %c0_43] : memref<16x128xbf16, #tpu.memory_space<vmem>>, vector<16x128xbf16>
    %cst_44 = arith.constant dense<0.000000e+00> : vector<16x512xf32>
    %95 = tpu.matmul %94, %11, %cst_44 {dimension_numbers = #tpu.dot_dimension_numbers<[1], [0], [0], [1], [0, 0, 1, 1], [], []>} : vector<16x128xbf16>, vector<128x512xbf16>, vector<16x512xf32> -> vector<16x512xf32>
    %96 = arith.extf %93 : vector<16x512xbf16> to vector<16x512xf32>
    %97 = arith.addf %96, %95 : vector<16x512xf32>
    %98 = vector.extract_strided_slice %97 {offsets = [0, 0], sizes = [16, 128], strides = [1, 1]} : vector<16x512xf32> to vector<16x128xf32>
    %99 = arith.negf %98 : vector<16x128xf32>
    %100 = math.exp %99 : vector<16x128xf32>
    %cst_45 = arith.constant 1.000000e+00 : f32
    %101 = vector.broadcast %cst_45 : f32 to vector<16x128xf32>
    %102 = arith.addf %101, %100 : vector<16x128xf32>
    %103 = arith.divf %101, %102 : vector<16x128xf32>
    %104 = vector.extract_strided_slice %97 {offsets = [0, 128], sizes = [16, 128], strides = [1, 1]} : vector<16x512xf32> to vector<16x128xf32>
    %105 = arith.negf %104 : vector<16x128xf32>
    %106 = math.exp %105 : vector<16x128xf32>
    %cst_46 = arith.constant 1.000000e+00 : f32
    %107 = vector.broadcast %cst_46 : f32 to vector<16x128xf32>
    %108 = arith.addf %107, %106 : vector<16x128xf32>
    %109 = arith.divf %107, %108 : vector<16x128xf32>
    %110 = vector.extract_strided_slice %97 {offsets = [0, 256], sizes = [16, 128], strides = [1, 1]} : vector<16x512xf32> to vector<16x128xf32>
    %111 = math.tanh %110 : vector<16x128xf32>
    %112 = vector.extract_strided_slice %97 {offsets = [0, 384], sizes = [16, 128], strides = [1, 1]} : vector<16x512xf32> to vector<16x128xf32>
    %113 = arith.negf %112 : vector<16x128xf32>
    %114 = math.exp %113 : vector<16x128xf32>
    %cst_47 = arith.constant 1.000000e+00 : f32
    %115 = vector.broadcast %cst_47 : f32 to vector<16x128xf32>
    %116 = arith.addf %115, %114 : vector<16x128xf32>
    %117 = arith.divf %115, %116 : vector<16x128xf32>
    %c0_48 = arith.constant 0 : index
    %c0_49 = arith.constant 0 : index
    %118 = vector.load %arg7[%c0_48, %c0_49] : memref<16x128xf32, #tpu.memory_space<vmem>>, vector<16x128xf32>
    %119 = arith.mulf %109, %118 : vector<16x128xf32>
    %120 = arith.mulf %103, %111 : vector<16x128xf32>
    %121 = arith.addf %119, %120 : vector<16x128xf32>
    %122 = math.tanh %121 : vector<16x128xf32>
    %123 = arith.mulf %117, %122 : vector<16x128xf32>
    %c0_50 = arith.constant 0 : index
    %c0_51 = arith.constant 0 : index
    %124 = vector.load %arg7[%c0_50, %c0_51] : memref<16x128xf32, #tpu.memory_space<vmem>>, vector<16x128xf32>
    tpu.vector_store %arg7[%c0_50, %c0_51], %121 {strides = array<i32>} : memref<16x128xf32, #tpu.memory_space<vmem>>, vector<16x128xf32>,
    %125 = arith.truncf %123 : vector<16x128xf32> to vector<16x128xbf16>
    %c0_52 = arith.constant 0 : index
    %c0_53 = arith.constant 0 : index
    %126 = vector.load %arg6[%c0_52, %c0_53] : memref<16x128xbf16, #tpu.memory_space<vmem>>, vector<16x128xbf16>
    tpu.vector_store %arg6[%c0_52, %c0_53], %125 {strides = array<i32>} : memref<16x128xbf16, #tpu.memory_space<vmem>>, vector<16x128xbf16>,
    %127 = arith.index_cast %91 : i32 to index
    %c0_54 = arith.constant 0 : index
    %128 = vector.load %arg5[%127, %c0_54] : memref<128x128xbf16, #tpu.memory_space<vmem>>, vector<16x128xbf16>
    tpu.vector_store %arg5[%127, %c0_54], %125 {strides = array<i32>} : memref<128x128xbf16, #tpu.memory_space<vmem>>, vector<16x128xbf16>,
    %c3_i32 = arith.constant 3 : i32
    %c16_i32_55 = arith.constant 16 : i32
    %129 = arith.muli %c3_i32, %c16_i32_55 : i32
    %130 = tpu.assume_multiple %129, 16 : i32
    %131 = arith.index_cast %130 : i32 to index
    %c0_56 = arith.constant 0 : index
    %132 = vector.load %arg8[%131, %c0_56] : memref<128x512xbf16, #tpu.memory_space<vmem>>, vector<16x512xbf16>
    %c0_57 = arith.constant 0 : index
    %c0_58 = arith.constant 0 : index
    %133 = vector.load %arg6[%c0_57, %c0_58] : memref<16x128xbf16, #tpu.memory_space<vmem>>, vector<16x128xbf16>
    %cst_59 = arith.constant dense<0.000000e+00> : vector<16x512xf32>
    %134 = tpu.matmul %133, %11, %cst_59 {dimension_numbers = #tpu.dot_dimension_numbers<[1], [0], [0], [1], [0, 0, 1, 1], [], []>} : vector<16x128xbf16>, vector<128x512xbf16>, vector<16x512xf32> -> vector<16x512xf32>
    %135 = arith.extf %132 : vector<16x512xbf16> to vector<16x512xf32>
    %136 = arith.addf %135, %134 : vector<16x512xf32>
    %137 = vector.extract_strided_slice %136 {offsets = [0, 0], sizes = [16, 128], strides = [1, 1]} : vector<16x512xf32> to vector<16x128xf32>
    %138 = arith.negf %137 : vector<16x128xf32>
    %139 = math.exp %138 : vector<16x128xf32>
    %cst_60 = arith.constant 1.000000e+00 : f32
    %140 = vector.broadcast %cst_60 : f32 to vector<16x128xf32>
    %141 = arith.addf %140, %139 : vector<16x128xf32>
    %142 = arith.divf %140, %141 : vector<16x128xf32>
    %143 = vector.extract_strided_slice %136 {offsets = [0, 128], sizes = [16, 128], strides = [1, 1]} : vector<16x512xf32> to vector<16x128xf32>
    %144 = arith.negf %143 : vector<16x128xf32>
    %145 = math.exp %144 : vector<16x128xf32>
    %cst_61 = arith.constant 1.000000e+00 : f32
    %146 = vector.broadcast %cst_61 : f32 to vector<16x128xf32>
    %147 = arith.addf %146, %145 : vector<16x128xf32>
    %148 = arith.divf %146, %147 : vector<16x128xf32>
    %149 = vector.extract_strided_slice %136 {offsets = [0, 256], sizes = [16, 128], strides = [1, 1]} : vector<16x512xf32> to vector<16x128xf32>
    %150 = math.tanh %149 : vector<16x128xf32>
    %151 = vector.extract_strided_slice %136 {offsets = [0, 384], sizes = [16, 128], strides = [1, 1]} : vector<16x512xf32> to vector<16x128xf32>
    %152 = arith.negf %151 : vector<16x128xf32>
    %153 = math.exp %152 : vector<16x128xf32>
    %cst_62 = arith.constant 1.000000e+00 : f32
    %154 = vector.broadcast %cst_62 : f32 to vector<16x128xf32>
    %155 = arith.addf %154, %153 : vector<16x128xf32>
    %156 = arith.divf %154, %155 : vector<16x128xf32>
    %c0_63 = arith.constant 0 : index
    %c0_64 = arith.constant 0 : index
    %157 = vector.load %arg7[%c0_63, %c0_64] : memref<16x128xf32, #tpu.memory_space<vmem>>, vector<16x128xf32>
    %158 = arith.mulf %148, %157 : vector<16x128xf32>
    %159 = arith.mulf %142, %150 : vector<16x128xf32>
    %160 = arith.addf %158, %159 : vector<16x128xf32>
    %161 = math.tanh %160 : vector<16x128xf32>
    %162 = arith.mulf %156, %161 : vector<16x128xf32>
    %c0_65 = arith.constant 0 : index
    %c0_66 = arith.constant 0 : index
    %163 = vector.load %arg7[%c0_65, %c0_66] : memref<16x128xf32, #tpu.memory_space<vmem>>, vector<16x128xf32>
    tpu.vector_store %arg7[%c0_65, %c0_66], %160 {strides = array<i32>} : memref<16x128xf32, #tpu.memory_space<vmem>>, vector<16x128xf32>,
    %164 = arith.truncf %162 : vector<16x128xf32> to vector<16x128xbf16>
    %c0_67 = arith.constant 0 : index
    %c0_68 = arith.constant 0 : index
    %165 = vector.load %arg6[%c0_67, %c0_68] : memref<16x128xbf16, #tpu.memory_space<vmem>>, vector<16x128xbf16>
    tpu.vector_store %arg6[%c0_67, %c0_68], %164 {strides = array<i32>} : memref<16x128xbf16, #tpu.memory_space<vmem>>, vector<16x128xbf16>,
    %166 = arith.index_cast %130 : i32 to index
    %c0_69 = arith.constant 0 : index
    %167 = vector.load %arg5[%166, %c0_69] : memref<128x128xbf16, #tpu.memory_space<vmem>>, vector<16x128xbf16>
    tpu.vector_store %arg5[%166, %c0_69], %164 {strides = array<i32>} : memref<128x128xbf16, #tpu.memory_space<vmem>>, vector<16x128xbf16>,
    %c4_i32 = arith.constant 4 : i32
    %c16_i32_70 = arith.constant 16 : i32
    %168 = arith.muli %c4_i32, %c16_i32_70 : i32
    %169 = tpu.assume_multiple %168, 16 : i32
    %170 = arith.index_cast %169 : i32 to index
    %c0_71 = arith.constant 0 : index
    %171 = vector.load %arg8[%170, %c0_71] : memref<128x512xbf16, #tpu.memory_space<vmem>>, vector<16x512xbf16>
    %c0_72 = arith.constant 0 : index
    %c0_73 = arith.constant 0 : index
    %172 = vector.load %arg6[%c0_72, %c0_73] : memref<16x128xbf16, #tpu.memory_space<vmem>>, vector<16x128xbf16>
    %cst_74 = arith.constant dense<0.000000e+00> : vector<16x512xf32>
    %173 = tpu.matmul %172, %11, %cst_74 {dimension_numbers = #tpu.dot_dimension_numbers<[1], [0], [0], [1], [0, 0, 1, 1], [], []>} : vector<16x128xbf16>, vector<128x512xbf16>, vector<16x512xf32> -> vector<16x512xf32>
    %174 = arith.extf %171 : vector<16x512xbf16> to vector<16x512xf32>
    %175 = arith.addf %174, %173 : vector<16x512xf32>
    %176 = vector.extract_strided_slice %175 {offsets = [0, 0], sizes = [16, 128], strides = [1, 1]} : vector<16x512xf32> to vector<16x128xf32>
    %177 = arith.negf %176 : vector<16x128xf32>
    %178 = math.exp %177 : vector<16x128xf32>
    %cst_75 = arith.constant 1.000000e+00 : f32
    %179 = vector.broadcast %cst_75 : f32 to vector<16x128xf32>
    %180 = arith.addf %179, %178 : vector<16x128xf32>
    %181 = arith.divf %179, %180 : vector<16x128xf32>
    %182 = vector.extract_strided_slice %175 {offsets = [0, 128], sizes = [16, 128], strides = [1, 1]} : vector<16x512xf32> to vector<16x128xf32>
    %183 = arith.negf %182 : vector<16x128xf32>
    %184 = math.exp %183 : vector<16x128xf32>
    %cst_76 = arith.constant 1.000000e+00 : f32
    %185 = vector.broadcast %cst_76 : f32 to vector<16x128xf32>
    %186 = arith.addf %185, %184 : vector<16x128xf32>
    %187 = arith.divf %185, %186 : vector<16x128xf32>
    %188 = vector.extract_strided_slice %175 {offsets = [0, 256], sizes = [16, 128], strides = [1, 1]} : vector<16x512xf32> to vector<16x128xf32>
    %189 = math.tanh %188 : vector<16x128xf32>
    %190 = vector.extract_strided_slice %175 {offsets = [0, 384], sizes = [16, 128], strides = [1, 1]} : vector<16x512xf32> to vector<16x128xf32>
    %191 = arith.negf %190 : vector<16x128xf32>
    %192 = math.exp %191 : vector<16x128xf32>
    %cst_77 = arith.constant 1.000000e+00 : f32
    %193 = vector.broadcast %cst_77 : f32 to vector<16x128xf32>
    %194 = arith.addf %193, %192 : vector<16x128xf32>
    %195 = arith.divf %193, %194 : vector<16x128xf32>
    %c0_78 = arith.constant 0 : index
    %c0_79 = arith.constant 0 : index
    %196 = vector.load %arg7[%c0_78, %c0_79] : memref<16x128xf32, #tpu.memory_space<vmem>>, vector<16x128xf32>
    %197 = arith.mulf %187, %196 : vector<16x128xf32>
    %198 = arith.mulf %181, %189 : vector<16x128xf32>
    %199 = arith.addf %197, %198 : vector<16x128xf32>
    %200 = math.tanh %199 : vector<16x128xf32>
    %201 = arith.mulf %195, %200 : vector<16x128xf32>
    %c0_80 = arith.constant 0 : index
    %c0_81 = arith.constant 0 : index
    %202 = vector.load %arg7[%c0_80, %c0_81] : memref<16x128xf32, #tpu.memory_space<vmem>>, vector<16x128xf32>
    tpu.vector_store %arg7[%c0_80, %c0_81], %199 {strides = array<i32>} : memref<16x128xf32, #tpu.memory_space<vmem>>, vector<16x128xf32>,
    %203 = arith.truncf %201 : vector<16x128xf32> to vector<16x128xbf16>
    %c0_82 = arith.constant 0 : index
    %c0_83 = arith.constant 0 : index
    %204 = vector.load %arg6[%c0_82, %c0_83] : memref<16x128xbf16, #tpu.memory_space<vmem>>, vector<16x128xbf16>
    tpu.vector_store %arg6[%c0_82, %c0_83], %203 {strides = array<i32>} : memref<16x128xbf16, #tpu.memory_space<vmem>>, vector<16x128xbf16>,
    %205 = arith.index_cast %169 : i32 to index
    %c0_84 = arith.constant 0 : index
    %206 = vector.load %arg5[%205, %c0_84] : memref<128x128xbf16, #tpu.memory_space<vmem>>, vector<16x128xbf16>
    tpu.vector_store %arg5[%205, %c0_84], %203 {strides = array<i32>} : memref<128x128xbf16, #tpu.memory_space<vmem>>, vector<16x128xbf16>,
    %c5_i32 = arith.constant 5 : i32
    %c16_i32_85 = arith.constant 16 : i32
    %207 = arith.muli %c5_i32, %c16_i32_85 : i32
    %208 = tpu.assume_multiple %207, 16 : i32
    %209 = arith.index_cast %208 : i32 to index
    %c0_86 = arith.constant 0 : index
    %210 = vector.load %arg8[%209, %c0_86] : memref<128x512xbf16, #tpu.memory_space<vmem>>, vector<16x512xbf16>
    %c0_87 = arith.constant 0 : index
    %c0_88 = arith.constant 0 : index
    %211 = vector.load %arg6[%c0_87, %c0_88] : memref<16x128xbf16, #tpu.memory_space<vmem>>, vector<16x128xbf16>
    %cst_89 = arith.constant dense<0.000000e+00> : vector<16x512xf32>
    %212 = tpu.matmul %211, %11, %cst_89 {dimension_numbers = #tpu.dot_dimension_numbers<[1], [0], [0], [1], [0, 0, 1, 1], [], []>} : vector<16x128xbf16>, vector<128x512xbf16>, vector<16x512xf32> -> vector<16x512xf32>
    %213 = arith.extf %210 : vector<16x512xbf16> to vector<16x512xf32>
    %214 = arith.addf %213, %212 : vector<16x512xf32>
    %215 = vector.extract_strided_slice %214 {offsets = [0, 0], sizes = [16, 128], strides = [1, 1]} : vector<16x512xf32> to vector<16x128xf32>
    %216 = arith.negf %215 : vector<16x128xf32>
    %217 = math.exp %216 : vector<16x128xf32>
    %cst_90 = arith.constant 1.000000e+00 : f32
    %218 = vector.broadcast %cst_90 : f32 to vector<16x128xf32>
    %219 = arith.addf %218, %217 : vector<16x128xf32>
    %220 = arith.divf %218, %219 : vector<16x128xf32>
    %221 = vector.extract_strided_slice %214 {offsets = [0, 128], sizes = [16, 128], strides = [1, 1]} : vector<16x512xf32> to vector<16x128xf32>
    %222 = arith.negf %221 : vector<16x128xf32>
    %223 = math.exp %222 : vector<16x128xf32>
    %cst_91 = arith.constant 1.000000e+00 : f32
    %224 = vector.broadcast %cst_91 : f32 to vector<16x128xf32>
    %225 = arith.addf %224, %223 : vector<16x128xf32>
    %226 = arith.divf %224, %225 : vector<16x128xf32>
    %227 = vector.extract_strided_slice %214 {offsets = [0, 256], sizes = [16, 128], strides = [1, 1]} : vector<16x512xf32> to vector<16x128xf32>
    %228 = math.tanh %227 : vector<16x128xf32>
    %229 = vector.extract_strided_slice %214 {offsets = [0, 384], sizes = [16, 128], strides = [1, 1]} : vector<16x512xf32> to vector<16x128xf32>
    %230 = arith.negf %229 : vector<16x128xf32>
    %231 = math.exp %230 : vector<16x128xf32>
    %cst_92 = arith.constant 1.000000e+00 : f32
    %232 = vector.broadcast %cst_92 : f32 to vector<16x128xf32>
    %233 = arith.addf %232, %231 : vector<16x128xf32>
    %234 = arith.divf %232, %233 : vector<16x128xf32>
    %c0_93 = arith.constant 0 : index
    %c0_94 = arith.constant 0 : index
    %235 = vector.load %arg7[%c0_93, %c0_94] : memref<16x128xf32, #tpu.memory_space<vmem>>, vector<16x128xf32>
    %236 = arith.mulf %226, %235 : vector<16x128xf32>
    %237 = arith.mulf %220, %228 : vector<16x128xf32>
    %238 = arith.addf %236, %237 : vector<16x128xf32>
    %239 = math.tanh %238 : vector<16x128xf32>
    %240 = arith.mulf %234, %239 : vector<16x128xf32>
    %c0_95 = arith.constant 0 : index
    %c0_96 = arith.constant 0 : index
    %241 = vector.load %arg7[%c0_95, %c0_96] : memref<16x128xf32, #tpu.memory_space<vmem>>, vector<16x128xf32>
    tpu.vector_store %arg7[%c0_95, %c0_96], %238 {strides = array<i32>} : memref<16x128xf32, #tpu.memory_space<vmem>>, vector<16x128xf32>,
    %242 = arith.truncf %240 : vector<16x128xf32> to vector<16x128xbf16>
    %c0_97 = arith.constant 0 : index
    %c0_98 = arith.constant 0 : index
    %243 = vector.load %arg6[%c0_97, %c0_98] : memref<16x128xbf16, #tpu.memory_space<vmem>>, vector<16x128xbf16>
    tpu.vector_store %arg6[%c0_97, %c0_98], %242 {strides = array<i32>} : memref<16x128xbf16, #tpu.memory_space<vmem>>, vector<16x128xbf16>,
    %244 = arith.index_cast %208 : i32 to index
    %c0_99 = arith.constant 0 : index
    %245 = vector.load %arg5[%244, %c0_99] : memref<128x128xbf16, #tpu.memory_space<vmem>>, vector<16x128xbf16>
    tpu.vector_store %arg5[%244, %c0_99], %242 {strides = array<i32>} : memref<128x128xbf16, #tpu.memory_space<vmem>>, vector<16x128xbf16>,
    %c6_i32 = arith.constant 6 : i32
    %c16_i32_100 = arith.constant 16 : i32
    %246 = arith.muli %c6_i32, %c16_i32_100 : i32
    %247 = tpu.assume_multiple %246, 16 : i32
    %248 = arith.index_cast %247 : i32 to index
    %c0_101 = arith.constant 0 : index
    %249 = vector.load %arg8[%248, %c0_101] : memref<128x512xbf16, #tpu.memory_space<vmem>>, vector<16x512xbf16>
    %c0_102 = arith.constant 0 : index
    %c0_103 = arith.constant 0 : index
    %250 = vector.load %arg6[%c0_102, %c0_103] : memref<16x128xbf16, #tpu.memory_space<vmem>>, vector<16x128xbf16>
    %cst_104 = arith.constant dense<0.000000e+00> : vector<16x512xf32>
    %251 = tpu.matmul %250, %11, %cst_104 {dimension_numbers = #tpu.dot_dimension_numbers<[1], [0], [0], [1], [0, 0, 1, 1], [], []>} : vector<16x128xbf16>, vector<128x512xbf16>, vector<16x512xf32> -> vector<16x512xf32>
    %252 = arith.extf %249 : vector<16x512xbf16> to vector<16x512xf32>
    %253 = arith.addf %252, %251 : vector<16x512xf32>
    %254 = vector.extract_strided_slice %253 {offsets = [0, 0], sizes = [16, 128], strides = [1, 1]} : vector<16x512xf32> to vector<16x128xf32>
    %255 = arith.negf %254 : vector<16x128xf32>
    %256 = math.exp %255 : vector<16x128xf32>
    %cst_105 = arith.constant 1.000000e+00 : f32
    %257 = vector.broadcast %cst_105 : f32 to vector<16x128xf32>
    %258 = arith.addf %257, %256 : vector<16x128xf32>
    %259 = arith.divf %257, %258 : vector<16x128xf32>
    %260 = vector.extract_strided_slice %253 {offsets = [0, 128], sizes = [16, 128], strides = [1, 1]} : vector<16x512xf32> to vector<16x128xf32>
    %261 = arith.negf %260 : vector<16x128xf32>
    %262 = math.exp %261 : vector<16x128xf32>
    %cst_106 = arith.constant 1.000000e+00 : f32
    %263 = vector.broadcast %cst_106 : f32 to vector<16x128xf32>
    %264 = arith.addf %263, %262 : vector<16x128xf32>
    %265 = arith.divf %263, %264 : vector<16x128xf32>
    %266 = vector.extract_strided_slice %253 {offsets = [0, 256], sizes = [16, 128], strides = [1, 1]} : vector<16x512xf32> to vector<16x128xf32>
    %267 = math.tanh %266 : vector<16x128xf32>
    %268 = vector.extract_strided_slice %253 {offsets = [0, 384], sizes = [16, 128], strides = [1, 1]} : vector<16x512xf32> to vector<16x128xf32>
    %269 = arith.negf %268 : vector<16x128xf32>
    %270 = math.exp %269 : vector<16x128xf32>
    %cst_107 = arith.constant 1.000000e+00 : f32
    %271 = vector.broadcast %cst_107 : f32 to vector<16x128xf32>
    %272 = arith.addf %271, %270 : vector<16x128xf32>
    %273 = arith.divf %271, %272 : vector<16x128xf32>
    %c0_108 = arith.constant 0 : index
    %c0_109 = arith.constant 0 : index
    %274 = vector.load %arg7[%c0_108, %c0_109] : memref<16x128xf32, #tpu.memory_space<vmem>>, vector<16x128xf32>
    %275 = arith.mulf %265, %274 : vector<16x128xf32>
    %276 = arith.mulf %259, %267 : vector<16x128xf32>
    %277 = arith.addf %275, %276 : vector<16x128xf32>
    %278 = math.tanh %277 : vector<16x128xf32>
    %279 = arith.mulf %273, %278 : vector<16x128xf32>
    %c0_110 = arith.constant 0 : index
    %c0_111 = arith.constant 0 : index
    %280 = vector.load %arg7[%c0_110, %c0_111] : memref<16x128xf32, #tpu.memory_space<vmem>>, vector<16x128xf32>
    tpu.vector_store %arg7[%c0_110, %c0_111], %277 {strides = array<i32>} : memref<16x128xf32, #tpu.memory_space<vmem>>, vector<16x128xf32>,
    %281 = arith.truncf %279 : vector<16x128xf32> to vector<16x128xbf16>
    %c0_112 = arith.constant 0 : index
    %c0_113 = arith.constant 0 : index
    %282 = vector.load %arg6[%c0_112, %c0_113] : memref<16x128xbf16, #tpu.memory_space<vmem>>, vector<16x128xbf16>
    tpu.vector_store %arg6[%c0_112, %c0_113], %281 {strides = array<i32>} : memref<16x128xbf16, #tpu.memory_space<vmem>>, vector<16x128xbf16>,
    %283 = arith.index_cast %247 : i32 to index
    %c0_114 = arith.constant 0 : index
    %284 = vector.load %arg5[%283, %c0_114] : memref<128x128xbf16, #tpu.memory_space<vmem>>, vector<16x128xbf16>
    tpu.vector_store %arg5[%283, %c0_114], %281 {strides = array<i32>} : memref<128x128xbf16, #tpu.memory_space<vmem>>, vector<16x128xbf16>,
    %c7_i32 = arith.constant 7 : i32
    %c16_i32_115 = arith.constant 16 : i32
    %285 = arith.muli %c7_i32, %c16_i32_115 : i32
    %286 = tpu.assume_multiple %285, 16 : i32
    %287 = arith.index_cast %286 : i32 to index
    %c0_116 = arith.constant 0 : index
    %288 = vector.load %arg8[%287, %c0_116] : memref<128x512xbf16, #tpu.memory_space<vmem>>, vector<16x512xbf16>
    %c0_117 = arith.constant 0 : index
    %c0_118 = arith.constant 0 : index
    %289 = vector.load %arg6[%c0_117, %c0_118] : memref<16x128xbf16, #tpu.memory_space<vmem>>, vector<16x128xbf16>
    %cst_119 = arith.constant dense<0.000000e+00> : vector<16x512xf32>
    %290 = tpu.matmul %289, %11, %cst_119 {dimension_numbers = #tpu.dot_dimension_numbers<[1], [0], [0], [1], [0, 0, 1, 1], [], []>} : vector<16x128xbf16>, vector<128x512xbf16>, vector<16x512xf32> -> vector<16x512xf32>
    %291 = arith.extf %288 : vector<16x512xbf16> to vector<16x512xf32>
    %292 = arith.addf %291, %290 : vector<16x512xf32>
    %293 = vector.extract_strided_slice %292 {offsets = [0, 0], sizes = [16, 128], strides = [1, 1]} : vector<16x512xf32> to vector<16x128xf32>
    %294 = arith.negf %293 : vector<16x128xf32>
    %295 = math.exp %294 : vector<16x128xf32>
    %cst_120 = arith.constant 1.000000e+00 : f32
    %296 = vector.broadcast %cst_120 : f32 to vector<16x128xf32>
    %297 = arith.addf %296, %295 : vector<16x128xf32>
    %298 = arith.divf %296, %297 : vector<16x128xf32>
    %299 = vector.extract_strided_slice %292 {offsets = [0, 128], sizes = [16, 128], strides = [1, 1]} : vector<16x512xf32> to vector<16x128xf32>
    %300 = arith.negf %299 : vector<16x128xf32>
    %301 = math.exp %300 : vector<16x128xf32>
    %cst_121 = arith.constant 1.000000e+00 : f32
    %302 = vector.broadcast %cst_121 : f32 to vector<16x128xf32>
    %303 = arith.addf %302, %301 : vector<16x128xf32>
    %304 = arith.divf %302, %303 : vector<16x128xf32>
    %305 = vector.extract_strided_slice %292 {offsets = [0, 256], sizes = [16, 128], strides = [1, 1]} : vector<16x512xf32> to vector<16x128xf32>
    %306 = math.tanh %305 : vector<16x128xf32>
    %307 = vector.extract_strided_slice %292 {offsets = [0, 384], sizes = [16, 128], strides = [1, 1]} : vector<16x512xf32> to vector<16x128xf32>
    %308 = arith.negf %307 : vector<16x128xf32>
    %309 = math.exp %308 : vector<16x128xf32>
    %cst_122 = arith.constant 1.000000e+00 : f32
    %310 = vector.broadcast %cst_122 : f32 to vector<16x128xf32>
    %311 = arith.addf %310, %309 : vector<16x128xf32>
    %312 = arith.divf %310, %311 : vector<16x128xf32>
    %c0_123 = arith.constant 0 : index
    %c0_124 = arith.constant 0 : index
    %313 = vector.load %arg7[%c0_123, %c0_124] : memref<16x128xf32, #tpu.memory_space<vmem>>, vector<16x128xf32>
    %314 = arith.mulf %304, %313 : vector<16x128xf32>
    %315 = arith.mulf %298, %306 : vector<16x128xf32>
    %316 = arith.addf %314, %315 : vector<16x128xf32>
    %317 = math.tanh %316 : vector<16x128xf32>
    %318 = arith.mulf %312, %317 : vector<16x128xf32>
    %c0_125 = arith.constant 0 : index
    %c0_126 = arith.constant 0 : index
    %319 = vector.load %arg7[%c0_125, %c0_126] : memref<16x128xf32, #tpu.memory_space<vmem>>, vector<16x128xf32>
    tpu.vector_store %arg7[%c0_125, %c0_126], %316 {strides = array<i32>} : memref<16x128xf32, #tpu.memory_space<vmem>>, vector<16x128xf32>,
    %320 = arith.truncf %318 : vector<16x128xf32> to vector<16x128xbf16>
    %c0_127 = arith.constant 0 : index
    %c0_128 = arith.constant 0 : index
    %321 = vector.load %arg6[%c0_127, %c0_128] : memref<16x128xbf16, #tpu.memory_space<vmem>>, vector<16x128xbf16>
    tpu.vector_store %arg6[%c0_127, %c0_128], %320 {strides = array<i32>} : memref<16x128xbf16, #tpu.memory_space<vmem>>, vector<16x128xbf16>,
    %322 = arith.index_cast %286 : i32 to index
    %c0_129 = arith.constant 0 : index
    %323 = vector.load %arg5[%322, %c0_129] : memref<128x128xbf16, #tpu.memory_space<vmem>>, vector<16x128xbf16>
    tpu.vector_store %arg5[%322, %c0_129], %320 {strides = array<i32>} : memref<128x128xbf16, #tpu.memory_space<vmem>>, vector<16x128xbf16>,
    %c8_i32 = arith.constant 8 : i32
    return
  }
  func.func @transform_0(%arg0: i32) -> (i32, i32) {
    %c0_i32 = arith.constant 0 : i32
    %c0_i32_0 = arith.constant 0 : i32
    return %arg0, %c0_i32 : i32, i32
  }
  func.func @transform_1(%arg0: i32) -> (i32, i32) {
    %c0_i32 = arith.constant 0 : i32
    %c0_i32_0 = arith.constant 0 : i32
    %c0_i32_1 = arith.constant 0 : i32
    return %c0_i32, %c0_i32_0 : i32, i32
  }
  func.func @transform_2(%arg0: i32) -> (i32, i32) {
    %c0_i32 = arith.constant 0 : i32
    %c0_i32_0 = arith.constant 0 : i32
    %c0_i32_1 = arith.constant 0 : i32
    return %c0_i32, %c0_i32_0 : i32, i32
  }
  func.func @transform_3(%arg0: i32) -> (i32, i32) {
    %c0_i32 = arith.constant 0 : i32
    %c0_i32_0 = arith.constant 0 : i32
    %c0_i32_1 = arith.constant 0 : i32
    return %c0_i32, %c0_i32_0 : i32, i32
  }
  func.func @transform_4(%arg0: i32) -> (i32, i32) {
    %c0_i32 = arith.constant 0 : i32
    %c0_i32_0 = arith.constant 0 : i32
    return %arg0, %c0_i32 : i32, i32
  }
}

</mosaic_0001>

<bundles_post_ra>
// kernel: tpu_custom_call.1
= control target key start
LH: loop header
LB: loop body
LE: loop exit
PB: predicated region body
PF: predicated region fallthrough
CT: control target
= control target key end

     0   :  { %9 = vsyncpa [#allocation6], 0  ;;  %s4439_s0 = inlined_call_operand.hbm [shape: bf16[128,128], index: 0, kind: input, shape index: {}]   ;;  %s4440_s1 = inlined_call_operand.hbm [shape: bf16[128,512], index: 1, kind: input, shape index: {}]   ;;  %s4441_s2 = inlined_call_operand.hbm [shape: bf16[128,512], index: 2, kind: input, shape index: {}]   ;;  %s4442_s3 = inlined_call_operand.hbm [shape: f32[1,512], index: 3, kind: input, shape index: {}]   ;;  %s4443_s4 = inlined_call_operand.hbm [shape: bf16[128,128], index: 4, kind: output, shape index: {}]  }
   0x1   :  { %10 = vsyncpa [#allocation9], 0 }
   0x2   :  { %11 = vsyncpa [#allocation12], 0  ;;  %s30_s17 = sshll.u32 %s4440_s1, 4  ;;  %s31_s17 = int_to_ptr.hbm [resolvable:$true] %s30_s17 }
   0x3   :  { %12 = vsyncpa [#allocation7], 0  ;;  %s3547_s18 = smov [#allocation8]   ;;  %s17_s22 = sshll.u32 %s4439_s0, 4  ;;  %s18_s22 = int_to_ptr.hbm [resolvable:$true] %s17_s22 }
   0x4   :  { %s32_s19 = sshll.u32 %s3547_s18, 4  ;;  %s3548_s23 = smov 256   ;;  %s33_s19 = int_to_ptr.vmem [resolvable:$true] %s32_s19 }
   0x5   :  { %s3549_s24 = smov 16   ;;  %s3550_s25 = smov [#allocation5]  }
   0x6   :  { %38 = dma.hbm_to_vmem [thread:$0]  %s31_s17, 4096, %s33_s19, [#allocation9], %s3548_s23, %s3548_s23, %s3549_s24  }
   0x7   :  { %s19_s26 = sshll.u32 %s3550_s25, 4  ;;  %s3551_s27 = smov 64   ;;  %s20_s26 = int_to_ptr.vmem [resolvable:$true] %s19_s26 }
   0x8   :  { %s3552_s28 = smov 4   ;;  %s43_s30 = sshll.u32 %s4441_s2, 4  ;;  %s44_s30 = int_to_ptr.hbm [resolvable:$true] %s43_s30 }
   0x9   :  { %25 = dma.hbm_to_vmem [thread:$0]  %s18_s22, 1024, %s20_s26, [#allocation6], %s3551_s27, %s3551_s27, %s3552_s28  }
   0xa   :  { %s3553_s5 = smov [#allocation10]   ;;  %s57_s8 = sshll.u32 %s4442_s3, 4  ;;  %s58_s8 = int_to_ptr.hbm [resolvable:$true] %s57_s8 }
   0xb   :  { %s45_s0 = sshll.u32 %s3553_s5, 4  ;;  %s3554_s9 = smov [#allocation11]   ;;  %s46_s0 = int_to_ptr.vmem [resolvable:$true] %s45_s0 }
   0xc   :  { %51 = dma.hbm_to_vmem [thread:$0]  %s44_s30, 4096, %s46_s0, [#allocation9], %s3548_s23, %s3548_s23, %s3549_s24  }
   0xd   :  { %s59_s10 = sshll.u32 %s3554_s9, 4  ;;  %s60_s10 = int_to_ptr.vmem [resolvable:$true] %s59_s10 }
   0xe   :  { %62 = dma.hbm_to_vmem [thread:$0]  %s58_s8, 64, %s60_s10, [#allocation12]  }
   0xf   :  { %3539 = dma.done.wait [#allocation6], 1024  }
  0x10   :  { %3540 = vsyncadd [#allocation6], 4294966272 }
  0x11   :  { %3541 = dma.done.wait [#allocation9], 8192  }
  0x12   :  { %3542 = vsyncadd [#allocation9], 4294959104 }
  0x13   :  { %3543 = dma.done.wait [#allocation12], 64  }
  0x14   :  { %3544 = vsyncadd [#allocation12], 4294967232  ;;  %v2771_v0 = vld [vmem:[#allocation8 + $0xe0] sm:$0xf]  ;;  %v3031_v1 = vld [vmem:[#allocation8 + $0xec] sm:$0xf0] }
  0x15   :  { %v3029_v2 = vld [vmem:[#allocation8 + $0xe4] sm:$0xf]  ;;  %v2772_v3 = vor.u32 %v3031_v1, %v2771_v0  ;;  %v2773_v4 = vld [vmem:[#allocation8 + $0xf0] sm:$0xf0]  ;;  %v2779_v5 = vld [vmem:[#allocation8 + $0xe8] sm:$0xf] }
  0x16   :  { %v3032_v6 = vld [vmem:[#allocation8 + $0xf4] sm:$0xf0]  ;;  %v2776_v7 = vor.u32 %v3029_v2, %v2773_v4  ;;  %v3030_v9 = vld [vmem:[#allocation8 + $0xec] sm:$0xf]  ;;  %v2781_v10 = vld [vmem:[#allocation8 + $0xf8] sm:$0xf0] }
  0x17   :  { %v2780_v8 = vor.u32 %v3032_v6, %v2779_v5  ;;  %v2755_v11 = vld [vmem:[#allocation8 + $0xc0] sm:$0xf]  ;;  %354 = vmatpush.bf16.msra.mxu0 %v2772_v3  ;;  %v2784_v12 = vor.u32 %v3030_v9, %v2781_v10  ;;  %v3027_v13 = vld [vmem:[#allocation8 + $0xcc] sm:$0xf0]  ;;  %v3025_v14 = vld [vmem:[#allocation8 + $0xc4] sm:$0xf] }
  0x18   :  { %v2757_v15 = vld [vmem:[#allocation8 + $0xd0] sm:$0xf0]  ;;  %403 = vmatpush.bf16.msra.mxu1 %v2776_v7  ;;  %v2756_v16 = vor.u32 %v3027_v13, %v2755_v11  ;;  %v2763_v18 = vld [vmem:[#allocation8 + $0xc8] sm:$0xf]  ;;  %v3028_v19 = vld [vmem:[#allocation8 + $0xd4] sm:$0xf0] }
  0x19   :  { %452 = vmatpush.bf16.msra.mxu2 %v2780_v8  ;;  %v2760_v17 = vor.u32 %v3025_v14, %v2757_v15  ;;  %v3026_v20 = vld [vmem:[#allocation8 + $0xcc] sm:$0xf]  ;;  %501 = vmatpush.bf16.msra.mxu3 %v2784_v12  ;;  %v2764_v21 = vor.u32 %v3028_v19, %v2763_v18  ;;  %v2765_v22 = vld [vmem:[#allocation8 + $0xd8] sm:$0xf0]  ;;  %v2739_v23 = vld [vmem:[#allocation8 + $0xa0] sm:$0xf] }
  0x1a   :  { %v3023_v24 = vld [vmem:[#allocation8 + $0xac] sm:$0xf0]  ;;  %v2768_v25 = vor.u32 %v3026_v20, %v2765_v22  ;;  %v3021_v26 = vld [vmem:[#allocation8 + $0xa4] sm:$0xf]  ;;  %v2741_v27 = vld [vmem:[#allocation8 + $0xb0] sm:$0xf0] }
  0x1b   :  { %v2747_v28 = vld [vmem:[#allocation8 + $0xa8] sm:$0xf]  ;;  %355 = vmatpush.bf16.msra.mxu0 %v2756_v16  ;;  %v2740_v29 = vor.u32 %v3023_v24, %v2739_v23  ;;  %v3024_v30 = vld [vmem:[#allocation8 + $0xb4] sm:$0xf0]  ;;  %v3022_v31 = vld [vmem:[#allocation8 + $0xac] sm:$0xf]  ;;  %v2744_v33 = vor.u32 %v3021_v26, %v2741_v27 }
  0x1c   :  { %v2749_v32 = vld [vmem:[#allocation8 + $0xb8] sm:$0xf0]  ;;  %404 = vmatpush.bf16.msra.mxu1 %v2760_v17  ;;  %v2748_v34 = vor.u32 %v3024_v30, %v2747_v28  ;;  %v2723_v35 = vld [vmem:[#allocation8 + $0x80] sm:$0xf]  ;;  %v3019_v36 = vld [vmem:[#allocation8 + $0x8c] sm:$0xf0] }
  0x1d   :  { %453 = vmatpush.bf16.msra.mxu2 %v2764_v21  ;;  %v3017_v37 = vld [vmem:[#allocation8 + $0x84] sm:$0xf]  ;;  %502 = vmatpush.bf16.msra.mxu3 %v2768_v25  ;;  %v2752_v38 = vor.u32 %v3022_v31, %v2749_v32  ;;  %v2725_v39 = vld [vmem:[#allocation8 + $0x90] sm:$0xf0]  ;;  %v2731_v40 = vld [vmem:[#allocation8 + $0x88] sm:$0xf]  ;;  %v2724_v44 = vor.u32 %v3019_v36, %v2723_v35 }
  0x1e   :  { %v3020_v41 = vld [vmem:[#allocation8 + $0x94] sm:$0xf0]  ;;  %v3018_v42 = vld [vmem:[#allocation8 + $0x8c] sm:$0xf]  ;;  %v2733_v43 = vld [vmem:[#allocation8 + $0x98] sm:$0xf0]  ;;  %v2728_v45 = vor.u32 %v3017_v37, %v2725_v39 }
  0x1f   :  { %356 = vmatpush.bf16.msra.mxu0 %v2740_v29  ;;  %v2732_v46 = vor.u32 %v3020_v41, %v2731_v40  ;;  %v2707_v47 = vld [vmem:[#allocation8 + $0x60] sm:$0xf]  ;;  %v3015_v48 = vld [vmem:[#allocation8 + $0x6c] sm:$0xf0]  ;;  %v3013_v49 = vld [vmem:[#allocation8 + $0x64] sm:$0xf]  ;;  %v2736_v50 = vor.u32 %v3018_v42, %v2733_v43 }
  0x20   :  { %405 = vmatpush.bf16.msra.mxu1 %v2744_v33  ;;  %v2709_v51 = vld [vmem:[#allocation8 + $0x70] sm:$0xf0]  ;;  %v2715_v52 = vld [vmem:[#allocation8 + $0x68] sm:$0xf]  ;;  %v3016_v53 = vld [vmem:[#allocation8 + $0x74] sm:$0xf0]  ;;  %v2708_v56 = vor.u32 %v3015_v48, %v2707_v47 }
  0x21   :  { %454 = vmatpush.bf16.msra.mxu2 %v2748_v34  ;;  %503 = vmatpush.bf16.msra.mxu3 %v2752_v38  ;;  %v3014_v54 = vld [vmem:[#allocation8 + $0x6c] sm:$0xf]  ;;  %v2717_v55 = vld [vmem:[#allocation8 + $0x78] sm:$0xf0]  ;;  %v2712_v57 = vor.u32 %v3013_v49, %v2709_v51  ;;  %v2716_v58 = vor.u32 %v3016_v53, %v2715_v52  ;;  %v2691_v59 = vld [vmem:[#allocation8 + $0x40] sm:$0xf] }
  0x22   :  { %v3011_v60 = vld [vmem:[#allocation8 + $0x4c] sm:$0xf0]  ;;  %v3009_v61 = vld [vmem:[#allocation8 + $0x44] sm:$0xf]  ;;  %v2720_v62 = vor.u32 %v3014_v54, %v2717_v55  ;;  %v2693_v63 = vld [vmem:[#allocation8 + $0x50] sm:$0xf0] }
  0x23   :  { %357 = vmatpush.bf16.msra.mxu0 %v2724_v44  ;;  %v2699_v0 = vld [vmem:[#allocation8 + $0x48] sm:$0xf]  ;;  %v3012_v1 = vld [vmem:[#allocation8 + $0x54] sm:$0xf0]  ;;  %v3010_v2 = vld [vmem:[#allocation8 + $0x4c] sm:$0xf]  ;;  %v2692_v4 = vor.u32 %v3011_v60, %v2691_v59  ;;  %v2696_v5 = vor.u32 %v3009_v61, %v2693_v63 }
  0x24   :  { %406 = vmatpush.bf16.msra.mxu1 %v2728_v45  ;;  %v2701_v3 = vld [vmem:[#allocation8 + $0x58] sm:$0xf0]  ;;  %v2700_v6 = vor.u32 %v3012_v1, %v2699_v0  ;;  %v2675_v7 = vld [vmem:[#allocation8 + $0x20] sm:$0xf]  ;;  %v3007_v8 = vld [vmem:[#allocation8 + $0x2c] sm:$0xf0] }
  0x25   :  { %455 = vmatpush.bf16.msra.mxu2 %v2732_v46  ;;  %504 = vmatpush.bf16.msra.mxu3 %v2736_v50  ;;  %v3005_v9 = vld [vmem:[#allocation8 + $0x24] sm:$0xf]  ;;  %v2704_v10 = vor.u32 %v3010_v2, %v2701_v3  ;;  %v2677_v11 = vld [vmem:[#allocation8 + $0x30] sm:$0xf0]  ;;  %v2683_v12 = vld [vmem:[#allocation8 + $0x28] sm:$0xf]  ;;  %v2676_v16 = vor.u32 %v3007_v8, %v2675_v7 }
  0x26   :  { %v3008_v13 = vld [vmem:[#allocation8 + $0x34] sm:$0xf0]  ;;  %v3006_v14 = vld [vmem:[#allocation8 + $0x2c] sm:$0xf]  ;;  %v2685_v15 = vld [vmem:[#allocation8 + $0x38] sm:$0xf0]  ;;  %v2680_v18 = vor.u32 %v3005_v9, %v2677_v11 }
  0x27   :  { %358 = vmatpush.bf16.msra.mxu0 %v2708_v56  ;;  %v2659_v17 = vld [vmem:[#allocation8] sm:$0xf]  ;;  %v2684_v19 = vor.u32 %v3008_v13, %v2683_v12  ;;  %v3003_v20 = vld [vmem:[#allocation8 + $0xc] sm:$0xf0]  ;;  %v3001_v21 = vld [vmem:[#allocation8 + $0x4] sm:$0xf]  ;;  %v2688_v23 = vor.u32 %v3006_v14, %v2685_v15 }
  0x28   :  { %407 = vmatpush.bf16.msra.mxu1 %v2712_v57  ;;  %v2661_v22 = vld [vmem:[#allocation8 + $0x10] sm:$0xf0]  ;;  %v2667_v24 = vld [vmem:[#allocation8 + $0x8] sm:$0xf]  ;;  %v3004_v25 = vld [vmem:[#allocation8 + $0x14] sm:$0xf0]  ;;  %v2660_v30 = vor.u32 %v3003_v20, %v2659_v17 }
  0x29   :  { %456 = vmatpush.bf16.msra.mxu2 %v2716_v58  ;;  %505 = vmatpush.bf16.msra.mxu3 %v2720_v62  ;;  %v3002_v26 = vld [vmem:[#allocation8 + $0xc] sm:$0xf]  ;;  %v2669_v27 = vld [vmem:[#allocation8 + $0x18] sm:$0xf0]  ;;  %v2903_v28 = vld [vmem:[#allocation10 + $0xe0] sm:$0xf]  ;;  %v2664_v33 = vor.u32 %v3001_v21, %v2661_v22  ;;  %v2668_v34 = vor.u32 %v3004_v25, %v2667_v24 }
  0x2a   :  { %v3063_v29 = vld [vmem:[#allocation10 + $0xec] sm:$0xf0]  ;;  %v3061_v31 = vld [vmem:[#allocation10 + $0xe4] sm:$0xf]  ;;  %v2905_v32 = vld [vmem:[#allocation10 + $0xf0] sm:$0xf0]  ;;  %v2672_v36 = vor.u32 %v3002_v26, %v2669_v27 }
  0x2b   :  { %359 = vmatpush.bf16.msra.mxu0 %v2692_v4  ;;  %v2993_v35 = vld [vmem:[#allocation5] sm:$0xff]  ;;  %v3597_v37 = vor.u32 %v3063_v29, %v2903_v28  ;;  %v3062_v38 = vld [vmem:[#allocation10 + $0xec] sm:$0xf]  ;;  %v2911_v39 = vld [vmem:[#allocation10 + $0xe8] sm:$0xf]  ;;  %v3599_v41 = vor.u32 %v3061_v31, %v2905_v32  ;;  %s3556_s2 = smov [#allocation13]  }
  0x2c   :  { %408 = vmatpush.bf16.msra.mxu1 %v2696_v5  ;;  %v3064_v40 = vld [vmem:[#allocation10 + $0xf4] sm:$0xf0]  ;;  %v2913_v42 = vld [vmem:[#allocation10 + $0xf8] sm:$0xf0]  ;;  %v2887_v43 = vld [vmem:[#allocation10 + $0xc0] sm:$0xf] }
  0x2d   :  { %457 = vmatpush.bf16.msra.mxu2 %v2700_v6  ;;  %506 = vmatpush.bf16.msra.mxu3 %v2704_v10  ;;  %v3059_v44 = vld [vmem:[#allocation10 + $0xcc] sm:$0xf0]  ;;  %v3057_v45 = vld [vmem:[#allocation10 + $0xc4] sm:$0xf]  ;;  %v2889_v46 = vld [vmem:[#allocation10 + $0xd0] sm:$0xf0]  ;;  %v3601_v47 = vor.u32 %v3064_v40, %v2911_v39  ;;  %v3604_v48 = vor.u32 %v3062_v38, %v2913_v42 }
  0x2e   :  { %v3606_v49 = vor.u32 %v3059_v44, %v2887_v43  ;;  %v2895_v50 = vld [vmem:[#allocation10 + $0xc8] sm:$0xf]  ;;  %v3060_v51 = vld [vmem:[#allocation10 + $0xd4] sm:$0xf0]  ;;  %v3609_v52 = vor.u32 %v3057_v45, %v2889_v46  ;;  %v3058_v53 = vld [vmem:[#allocation10 + $0xcc] sm:$0xf] }
  0x2f   :  { %360 = vmatpush.bf16.msra.mxu0 %v2676_v16  ;;  %v2897_v54 = vld [vmem:[#allocation10 + $0xd8] sm:$0xf0]  ;;  %v3612_v55 = vor.u32 %v3060_v51, %v2895_v50  ;;  %v2871_v56 = vld [vmem:[#allocation10 + $0xa0] sm:$0xf]  ;;  %v3055_v57 = vld [vmem:[#allocation10 + $0xac] sm:$0xf0] }
  0x30   :  { %409 = vmatpush.bf16.msra.mxu1 %v2680_v18  ;;  %v3053_v58 = vld [vmem:[#allocation10 + $0xa4] sm:$0xf]  ;;  %v3616_v59 = vor.u32 %v3058_v53, %v2897_v54  ;;  %v3618_v60 = vor.u32 %v3055_v57, %v2871_v56  ;;  %v2873_v61 = vld [vmem:[#allocation10 + $0xb0] sm:$0xf0]  ;;  %v3054_v62 = vld [vmem:[#allocation10 + $0xac] sm:$0xf] }
  0x31   :  { %458 = vmatpush.bf16.msra.mxu2 %v2684_v19  ;;  %507 = vmatpush.bf16.msra.mxu3 %v2688_v23  ;;  %v3621_v63 = vor.u32 %v3053_v58, %v2873_v61  ;;  %v2881_v0 = vld [vmem:[#allocation10 + $0xb8] sm:$0xf0]  ;;  %v2879_v1 = vld [vmem:[#allocation10 + $0xa8] sm:$0xf]  ;;  %v3056_v2 = vld [vmem:[#allocation10 + $0xb4] sm:$0xf0] }
  0x32   :  { %v3624_v3 = vor.u32 %v3056_v2, %v2879_v1  ;;  %v3628_v4 = vor.u32 %v3054_v62, %v2881_v0  ;;  %v2994_v5 = vld [vmem:[#allocation5 + $0x8] sm:$0xff]  ;;  %v2855_v6 = vld [vmem:[#allocation10 + $0x80] sm:$0xf]  ;;  %v3051_v7 = vld [vmem:[#allocation10 + $0x8c] sm:$0xf0]  ;;  %s2601_s3 = sshll.u32 %s3556_s2, 4  ;;  %s2602_s3 = int_to_ptr.vmem [resolvable:$true] %s2601_s3 }
  0x33   :  { %361 = vmatpush.bf16.msra.mxu0 %v2660_v30  ;;  %v3049_v8 = vld [vmem:[#allocation10 + $0x84] sm:$0xf]  ;;  %v3633_v9 = vor.u32 %v3051_v7, %v2855_v6  ;;  %v2857_v10 = vld [vmem:[#allocation10 + $0x90] sm:$0xf0]  ;;  %v3050_v11 = vld [vmem:[#allocation10 + $0x8c] sm:$0xf] }
  0x34   :  { %410 = vmatpush.bf16.msra.mxu1 %v2664_v33  ;;  %v2865_v12 = vld [vmem:[#allocation10 + $0x98] sm:$0xf0]  ;;  %v3635_v13 = vor.u32 %v3049_v8, %v2857_v10  ;;  %v2863_v15 = vld [vmem:[#allocation10 + $0x88] sm:$0xf]  ;;  %v3052_v16 = vld [vmem:[#allocation10 + $0x94] sm:$0xf0] }
  0x35   :  { %459 = vmatpush.bf16.msra.mxu2 %v2668_v34  ;;  %508 = vmatpush.bf16.msra.mxu3 %v2672_v36  ;;  %v3637_v14 = vor.u32 %v3050_v11, %v2865_v12  ;;  %v3640_v17 = vor.u32 %v3052_v16, %v2863_v15  ;;  %v2995_v18 = vld [vmem:[#allocation5 + $0x10] sm:$0xff]  ;;  %v2839_v19 = vld [vmem:[#allocation10 + $0x60] sm:$0xf]  ;;  %v3045_v21 = vld [vmem:[#allocation10 + $0x64] sm:$0xf]  ;;  %s2603_s13 = sshll.u32 %s4443_s4, 4  ;;  %s2604_s13 = int_to_ptr.hbm [resolvable:$true] %s2603_s13 }
  0x36   :  { %362 = vmatmul.bf16.vlgmr.msra.gmra.mxu0 %v2993_v35  ;;  %v3047_v20 = vld [vmem:[#allocation10 + $0x6c] sm:$0xf0]  ;;  %v2841_v23 = vld [vmem:[#allocation10 + $0x70] sm:$0xf0]  ;;  %v3046_v24 = vld [vmem:[#allocation10 + $0x6c] sm:$0xf] }
  0x37   :  { %821 = vmatpush.bf16.msrb.mxu0 %v3597_v37  ;;  %411 = vmatmul.bf16.vlgmr.msra.gmra.mxu1 %v2993_v35  ;;  %v3645_v22 = vor.u32 %v3047_v20, %v2839_v19  ;;  %v2849_v25 = vld [vmem:[#allocation10 + $0x78] sm:$0xf0]  ;;  %v3647_v26 = vor.u32 %v3045_v21, %v2841_v23  ;;  %v2847_v28 = vld [vmem:[#allocation10 + $0x68] sm:$0xf]  ;;  %v3048_v29 = vld [vmem:[#allocation10 + $0x74] sm:$0xf0] }
  0x38   :  { %835 = vmatpush.bf16.msrb.mxu1 %v3599_v41  ;;  %460 = vmatmul.bf16.vlgmr.msra.gmra.mxu2 %v2993_v35  ;;  %v3649_v27 = vor.u32 %v3046_v24, %v2849_v25  ;;  %v3652_v30 = vor.u32 %v3048_v29, %v2847_v28  ;;  %v2996_v31 = vld [vmem:[#allocation5 + $0x18] sm:$0xff]  ;;  %v2823_v32 = vld [vmem:[#allocation10 + $0x40] sm:$0xf]  ;;  %v3043_v33 = vld [vmem:[#allocation10 + $0x4c] sm:$0xf0]  ;;  %v3555_v19 = vmov 0  }
  0x39   :  { %509 = vmatmul.bf16.vlgmr.msra.gmra.mxu3 %v2993_v35  ;;  %849 = vmatpush.bf16.msrb.mxu2 %v3601_v47  ;;  %v3041_v34 = vld [vmem:[#allocation10 + $0x44] sm:$0xf]  ;;  %v3657_v35 = vor.u32 %v3043_v33, %v2823_v32  ;;  %v2825_v36 = vld [vmem:[#allocation10 + $0x50] sm:$0xf0]  ;;  %v3042_v38 = vld [vmem:[#allocation10 + $0x4c] sm:$0xf] }
  0x3a   :  { %863 = vmatpush.bf16.msrb.mxu3 %v3604_v48  ;;  %v2833_v39 = vld [vmem:[#allocation10 + $0x58] sm:$0xf0]  ;;  %v3659_v40 = vor.u32 %v3041_v34, %v2825_v36  ;;  %v2831_v43 = vld [vmem:[#allocation10 + $0x48] sm:$0xf]  ;;  %v3044_v44 = vld [vmem:[#allocation10 + $0x54] sm:$0xf0] }
  0x3b   :  { %822 = vmatpush.bf16.msrb.mxu0 %v3606_v49  ;;  %v3661_v42 = vor.u32 %v3042_v38, %v2833_v39  ;;  %v3664_v45 = vor.u32 %v3044_v44, %v2831_v43  ;;  %v2997_v46 = vld [vmem:[#allocation5 + $0x20] sm:$0xff]  ;;  %v3039_v51 = vld [vmem:[#allocation10 + $0x2c] sm:$0xf0]  ;;  %v2809_v56 = vld [vmem:[#allocation10 + $0x30] sm:$0xf0] }
  0x3c   :  { %836 = vmatpush.bf16.msrb.mxu1 %v3609_v52  ;;  %v2807_v50 = vld [vmem:[#allocation10 + $0x20] sm:$0xf]  ;;  %v3037_v53 = vld [vmem:[#allocation10 + $0x24] sm:$0xf]  ;;  %v3038_v57 = vld [vmem:[#allocation10 + $0x2c] sm:$0xf] }
  0x3d   :  { %850 = vmatpush.bf16.msrb.mxu2 %v3612_v55  ;;  %v3669_v54 = vor.u32 %v3039_v51, %v2807_v50  ;;  %v2817_v58 = vld [vmem:[#allocation10 + $0x38] sm:$0xf0]  ;;  %v3671_v61 = vor.u32 %v3037_v53, %v2809_v56  ;;  %v2815_v0 = vld [vmem:[#allocation10 + $0x28] sm:$0xf]  ;;  %v3040_v1 = vld [vmem:[#allocation10 + $0x34] sm:$0xf0] }
  0x3e   :  { %864 = vmatpush.bf16.msrb.mxu3 %v3616_v59  ;;  %v3673_v62 = vor.u32 %v3038_v57, %v2817_v58  ;;  %v3676_v2 = vor.u32 %v3040_v1, %v2815_v0  ;;  %v2791_v6 = vld [vmem:[#allocation10] sm:$0xf]  ;;  %v3035_v7 = vld [vmem:[#allocation10 + $0xc] sm:$0xf0]  ;;  %v3033_v8 = vld [vmem:[#allocation10 + $0x4] sm:$0xf] }
  0x3f   :  { %823 = vmatpush.bf16.msrb.mxu0 %v3618_v60  ;;  %v3681_v10 = vor.u32 %v3035_v7, %v2791_v6  ;;  %v2793_v11 = vld [vmem:[#allocation10 + $0x10] sm:$0xf0]  ;;  %v3034_v12 = vld [vmem:[#allocation10 + $0xc] sm:$0xf]  ;;  %v2801_v15 = vld [vmem:[#allocation10 + $0x18] sm:$0xf0] }
  0x40   :  { %837 = vmatpush.bf16.msrb.mxu1 %v3621_v63  ;;  %v3683_v16 = vor.u32 %v3033_v8, %v2793_v11  ;;  %84 = vst [vmem:[#allocation2] sm:$0xf] %v3555_v19  ;;  %v2999_v20 = vld [vmem:[#allocation5 + $0x30] sm:$0xff]  ;;  %v2799_v21 = vld [vmem:[#allocation10 + $0x8] sm:$0xf]  ;;  %v3000_v25 = vld [vmem:[#allocation5 + $0x38] sm:$0xff] }
  0x41   :  { %851 = vmatpush.bf16.msrb.mxu2 %v3624_v3  ;;  %85 = vst [vmem:[#allocation2 + $0x4] sm:$0xf] %v3555_v19  ;;  %v3036_v23 = vld [vmem:[#allocation10 + $0x14] sm:$0xf0]  ;;  %v136_v28 = vld [vmem:[#allocation11] sm:$0xf] }
  0x42   :  { %865 = vmatpush.bf16.msrb.mxu3 %v3628_v4  ;;  %v3696_v24 = vor.u32 %v3036_v23, %v2799_v21  ;;  %v3724_v29 = vperm.slane %v136_v28, 0  ;;  %v3733_v43 = vperm.slane %v136_v28, 2  ;;  %v3735_v44 = vperm.slane %v136_v28, 3 }
  0x43   :  { %824 = vmatpush.bf16.msrb.mxu0 %v3633_v9 }
  0x44   :  { %838 = vmatpush.bf16.msrb.mxu1 %v3635_v13  ;;  %4473 = vst [vmem:[#allocation19_spill] sm:$0xff] %v3733_v43 }
  0x45   :  { %852 = vmatpush.bf16.msrb.mxu2 %v3640_v17  ;;  %4474 = vst [vmem:[#allocation20_spill] sm:$0xff] %v3735_v44 }
  0x46   :  { %367 = vmatmul.bf16.gmra.mxu0 %v2994_v5  ;;  %866 = vmatpush.bf16.msrb.mxu3 %v3637_v14 }
  0x47   :  { %416 = vmatmul.bf16.gmra.mxu1 %v2994_v5  ;;  %825 = vmatpush.bf16.msrb.mxu0 %v3645_v22 }
  0x48   :  { %465 = vmatmul.bf16.gmra.mxu2 %v2994_v5  ;;  %839 = vmatpush.bf16.msrb.mxu1 %v3647_v26  ;;  %v3065_v32 = vld [vmem:[#allocation2] sm:$0xff] }
  0x49   :  { %514 = vmatmul.bf16.gmra.mxu3 %v2994_v5  ;;  %853 = vmatpush.bf16.msrb.mxu2 %v3652_v30  ;;  %v2998_v5 = vld [vmem:[#allocation5 + $0x28] sm:$0xff] }
  0x4a   :  { %867 = vmatpush.bf16.msrb.mxu3 %v3649_v27 }
  0x4b   :  { %826 = vmatpush.bf16.msrb.mxu0 %v3657_v35 }
  0x4c   :  { %840 = vmatpush.bf16.msrb.mxu1 %v3659_v40 }
  0x4d   :  { %854 = vmatpush.bf16.msrb.mxu2 %v3664_v45 }
  0x4e   :  { %868 = vmatpush.bf16.msrb.mxu3 %v3661_v42 }
  0x4f   :  { %827 = vmatpush.bf16.msrb.mxu0 %v3669_v54 }
  0x50   :  { %841 = vmatpush.bf16.msrb.mxu1 %v3671_v61 }
  0x51   :  { %855 = vmatpush.bf16.msrb.mxu2 %v3676_v2 }
  0x52   :  { %869 = vmatpush.bf16.msrb.mxu3 %v3673_v62 }
  0x53   :  { %828 = vmatpush.bf16.msrb.mxu0 %v3681_v10 }
  0x54   :  { %842 = vmatpush.bf16.msrb.mxu1 %v3683_v16 }
  0x55   :  { %856 = vmatpush.bf16.msrb.mxu2 %v3696_v24 }
  0x56   :  { %372 = vmatmul.bf16.gmra.mxu0 %v2995_v18 }
  0x57   :  { %421 = vmatmul.bf16.gmra.mxu1 %v2995_v18  ;;  %1044 = vmatpush.bf16.msra.mxu0 %v3597_v37 }
  0x58   :  { %470 = vmatmul.bf16.gmra.mxu2 %v2995_v18  ;;  %1058 = vmatpush.bf16.msra.mxu1 %v3599_v41 }
  0x59   :  { %519 = vmatmul.bf16.gmra.mxu3 %v2995_v18  ;;  %v3685_v18 = vor.u32 %v3034_v12, %v2801_v15  ;;  %1072 = vmatpush.bf16.msra.mxu2 %v3601_v47 }
  0x5b   :  { %870 = vmatpush.bf16.msrb.mxu3 %v3685_v18  ;;  %1045 = vmatpush.bf16.msra.mxu0 %v3606_v49 }
  0x5c   :  { %1059 = vmatpush.bf16.msra.mxu1 %v3609_v52 }
  0x5d   :  { %1073 = vmatpush.bf16.msra.mxu2 %v3612_v55 }
  0x5f   :  { %1086 = vmatpush.bf16.msra.mxu3 %v3604_v48  ;;  %1046 = vmatpush.bf16.msra.mxu0 %v3618_v60 }
  0x60   :  { %1060 = vmatpush.bf16.msra.mxu1 %v3621_v63 }
  0x61   :  { %1074 = vmatpush.bf16.msra.mxu2 %v3624_v3 }
  0x63   :  { %1087 = vmatpush.bf16.msra.mxu3 %v3616_v59  ;;  %1047 = vmatpush.bf16.msra.mxu0 %v3633_v9 }
  0x64   :  { %1061 = vmatpush.bf16.msra.mxu1 %v3635_v13 }
  0x65   :  { %1075 = vmatpush.bf16.msra.mxu2 %v3640_v17 }
  0x66   :  { %377 = vmatmul.bf16.gmra.mxu0 %v2996_v31 }
  0x67   :  { %426 = vmatmul.bf16.gmra.mxu1 %v2996_v31  ;;  %1088 = vmatpush.bf16.msra.mxu3 %v3628_v4 }
  0x68   :  { %475 = vmatmul.bf16.gmra.mxu2 %v2996_v31  ;;  %1048 = vmatpush.bf16.msra.mxu0 %v3645_v22 }
  0x69   :  { %524 = vmatmul.bf16.gmra.mxu3 %v2996_v31  ;;  %1062 = vmatpush.bf16.msra.mxu1 %v3647_v26  ;;  %v3726_v31 = vperm.slane %v136_v28, 1 }
  0x6a   :  { %1076 = vmatpush.bf16.msra.mxu2 %v3652_v30 }
  0x6b   :  { %1089 = vmatpush.bf16.msra.mxu3 %v3637_v14  ;;  %4472 = vst [vmem:[#allocation18_spill] sm:$0xff] %v3726_v31 }
  0x6c   :  { %1049 = vmatpush.bf16.msra.mxu0 %v3657_v35 }
  0x6d   :  { %1063 = vmatpush.bf16.msra.mxu1 %v3659_v40 }
  0x6e   :  { %1077 = vmatpush.bf16.msra.mxu2 %v3664_v45 }
  0x6f   :  { %1090 = vmatpush.bf16.msra.mxu3 %v3649_v27 }
  0x70   :  { %1050 = vmatpush.bf16.msra.mxu0 %v3669_v54 }
  0x71   :  { %1064 = vmatpush.bf16.msra.mxu1 %v3671_v61 }
  0x72   :  { %1078 = vmatpush.bf16.msra.mxu2 %v3676_v2 }
  0x73   :  { %1091 = vmatpush.bf16.msra.mxu3 %v3661_v42 }
  0x74   :  { %1051 = vmatpush.bf16.msra.mxu0 %v3681_v10 }
  0x75   :  { %1065 = vmatpush.bf16.msra.mxu1 %v3683_v16 }
  0x76   :  { %382 = vmatmul.bf16.gmra.mxu0 %v2997_v46  ;;  %1079 = vmatpush.bf16.msra.mxu2 %v3696_v24 }
  0x77   :  { %431 = vmatmul.bf16.gmra.mxu1 %v2997_v46  ;;  %1092 = vmatpush.bf16.msra.mxu3 %v3673_v62 }
  0x78   :  { %480 = vmatmul.bf16.gmra.mxu2 %v2997_v46 }
  0x79   :  { %529 = vmatmul.bf16.gmra.mxu3 %v2997_v46 }
  0x7b   :  { %1093 = vmatpush.bf16.msra.mxu3 %v3685_v18 }
  0x86   :  { %387 = vmatmul.bf16.gmra.mxu0 %v2998_v5 }
  0x87   :  { %436 = vmatmul.bf16.gmra.mxu1 %v2998_v5 }
  0x88   :  { %485 = vmatmul.bf16.gmra.mxu2 %v2998_v5 }
  0x89   :  { %534 = vmatmul.bf16.gmra.mxu3 %v2998_v5 }
  0x96   :  { %392 = vmatmul.bf16.gmra.mxu0 %v2999_v20 }
  0x97   :  { %441 = vmatmul.bf16.gmra.mxu1 %v2999_v20 }
  0x98   :  { %490 = vmatmul.bf16.gmra.mxu2 %v2999_v20 }
  0x99   :  { %539 = vmatmul.bf16.gmra.mxu3 %v2999_v20 }
  0xa6   :  { %397 = vmatmul.bf16.gmra.mxu0 %v3000_v25 }
  0xa7   :  { %446 = vmatmul.bf16.gmra.mxu1 %v3000_v25 }
  0xa8   :  { %495 = vmatmul.bf16.gmra.mxu2 %v3000_v25 }
  0xa9   :  { %544 = vmatmul.bf16.gmra.mxu3 %v3000_v25 }
  0xb3   :  { %v363_v33 = vpop.f32.mrf.mxu0 }
  0xb4   :  { %v364_v34 = vadd.f32 %v363_v33, %v3724_v29  ;;  %v412_v36 = vpop.f32.mrf.mxu1 }
  0xb5   :  { %v413_v38 = vadd.f32 %v412_v36, %v3726_v31 }
  0xb6   :  { %829 = vmatmul.bf16.vlgmr.msrb.gmra.mxu0 %v3065_v32 }
  0xb7   :  { %v3731_v39 = vpack.c.bf16 %v413_v38, %v364_v34  ;;  %843 = vmatmul.bf16.vlgmr.msrb.gmra.mxu1 %v3065_v32  ;;  %1268 = vmatpush.bf16.msrb.mxu0 %v3597_v37 }
  0xb8   :  { %857 = vmatmul.bf16.vlgmr.msrb.gmra.mxu2 %v3065_v32  ;;  %1282 = vmatpush.bf16.msrb.mxu1 %v3599_v41 }
  0xb9   :  { %871 = vmatmul.bf16.vlgmr.msrb.gmra.mxu3 %v3065_v32  ;;  %1296 = vmatpush.bf16.msrb.mxu2 %v3601_v47 }
  0xba   :  { %1310 = vmatpush.bf16.msrb.mxu3 %v3604_v48 }
  0xbb   :  { %v461_v46 = vpop.f32.mrf.mxu2  ;;  %v3742_v53 = vpop.f32.mrf.mxu0  ;;  %1269 = vmatpush.bf16.msrb.mxu0 %v3606_v49 }
  0xbc   :  { %v462_v50 = vadd.f32 %v461_v46, %v3733_v43  ;;  %v510_v51 = vpop.f32.mrf.mxu3  ;;  %v3745_v57 = vpop.f32.mrf.mxu1  ;;  %1283 = vmatpush.bf16.msrb.mxu1 %v3609_v52 }
  0xbd   :  { %v511_v56 = vadd.f32 %v510_v51, %v3735_v44  ;;  %1297 = vmatpush.bf16.msrb.mxu2 %v3612_v55 }
  0xbe   :  { %1311 = vmatpush.bf16.msrb.mxu3 %v3616_v59 }
  0xbf   :  { %v3750_v58 = vpack.c.bf16 %v511_v56, %v462_v50  ;;  %1270 = vmatpush.bf16.msrb.mxu0 %v3618_v60 }
  0xc0   :  { %1284 = vmatpush.bf16.msrb.mxu1 %v3621_v63 }
  0xc1   :  { %1298 = vmatpush.bf16.msrb.mxu2 %v3624_v3 }
  0xc2   :  { %1312 = vmatpush.bf16.msrb.mxu3 %v3628_v4 }
  0xc3   :  { %v3756_v0 = vpop.f32.mrf.mxu2  ;;  %v368_v5 = vpop.f32.mrf.mxu0  ;;  %1271 = vmatpush.bf16.msrb.mxu0 %v3633_v9 }
  0xc4   :  { %v3759_v1 = vpop.f32.mrf.mxu3  ;;  %v369_v6 = vadd.f32 %v368_v5, %v3724_v29  ;;  %v417_v7 = vpop.f32.mrf.mxu1  ;;  %1285 = vmatpush.bf16.msrb.mxu1 %v3635_v13 }
  0xc5   :  { %v418_v8 = vadd.f32 %v417_v7, %v3726_v31  ;;  %1299 = vmatpush.bf16.msrb.mxu2 %v3640_v17 }
  0xc6   :  { %1313 = vmatpush.bf16.msrb.mxu3 %v3637_v14 }
  0xc7   :  { %v3767_v11 = vpack.c.bf16 %v418_v8, %v369_v6  ;;  %1272 = vmatpush.bf16.msrb.mxu0 %v3645_v22 }
  0xc8   :  { %1286 = vmatpush.bf16.msrb.mxu1 %v3647_v26 }
  0xc9   :  { %4475 = vst [vmem:[#allocation21_spill] sm:$0xff] %v3767_v11  ;;  %1300 = vmatpush.bf16.msrb.mxu2 %v3652_v30 }
  0xca   :  { %1314 = vmatpush.bf16.msrb.mxu3 %v3649_v27 }
  0xcb   :  { %v466_v12 = vpop.f32.mrf.mxu2  ;;  %v3774_v20 = vpop.f32.mrf.mxu0  ;;  %1273 = vmatpush.bf16.msrb.mxu0 %v3657_v35 }
  0xcc   :  { %v467_v15 = vadd.f32 %v466_v12, %v3733_v43  ;;  %v515_v19 = vpop.f32.mrf.mxu3  ;;  %v3777_v23 = vpop.f32.mrf.mxu1  ;;  %1287 = vmatpush.bf16.msrb.mxu1 %v3659_v40 }
  0xcd   :  { %v516_v21 = vadd.f32 %v515_v19, %v3735_v44  ;;  %4476 = vst [vmem:[#allocation22_spill] sm:$0xff] %v3777_v23  ;;  %1301 = vmatpush.bf16.msrb.mxu2 %v3664_v45 }
  0xce   :  { %1315 = vmatpush.bf16.msrb.mxu3 %v3661_v42 }
  0xcf   :  { %v3782_v25 = vpack.c.bf16 %v516_v21, %v467_v15  ;;  %1274 = vmatpush.bf16.msrb.mxu0 %v3669_v54 }
  0xd0   :  { %1288 = vmatpush.bf16.msrb.mxu1 %v3671_v61 }
  0xd1   :  { %4477 = vst [vmem:[#allocation23_spill] sm:$0xff] %v3782_v25  ;;  %1302 = vmatpush.bf16.msrb.mxu2 %v3676_v2 }
  0xd2   :  { %1316 = vmatpush.bf16.msrb.mxu3 %v3673_v62 }
  0xd3   :  { %v3788_v28 = vpop.f32.mrf.mxu2  ;;  %v373_v33 = vpop.f32.mrf.mxu0  ;;  %1275 = vmatpush.bf16.msrb.mxu0 %v3681_v10 }
  0xd4   :  { %4478 = vst [vmem:[#allocation24_spill] sm:$0xff] %v3788_v28  ;;  %v3791_v32 = vpop.f32.mrf.mxu3  ;;  %v374_v34 = vadd.f32 %v373_v33, %v3724_v29  ;;  %v422_v36 = vpop.f32.mrf.mxu1  ;;  %1289 = vmatpush.bf16.msrb.mxu1 %v3683_v16 }
  0xd5   :  { %4479 = vst [vmem:[#allocation25_spill] sm:$0xff] %v3791_v32  ;;  %v423_v38 = vadd.f32 %v422_v36, %v3726_v31  ;;  %1303 = vmatpush.bf16.msrb.mxu2 %v3696_v24 }
  0xd6   :  { %1317 = vmatpush.bf16.msrb.mxu3 %v3685_v18 }
  0xd7   :  { %v3799_v46 = vpack.c.bf16 %v423_v38, %v374_v34 }
  0xd9   :  { %4480 = vst [vmem:[#allocation26_spill] sm:$0xff] %v3799_v46 }
  0xdb   :  { %v471_v50 = vpop.f32.mrf.mxu2  ;;  %v3802_v5 = vpop.f32.mrf.mxu0 }
  0xdc   :  { %v472_v51 = vadd.f32 %v471_v50, %v3733_v43  ;;  %v520_v56 = vpop.f32.mrf.mxu3  ;;  %4481 = vst [vmem:[#allocation27_spill] sm:$0xff] %v3802_v5  ;;  %v3805_v7 = vpop.f32.mrf.mxu1 }
  0xdd   :  { %v521_v6 = vadd.f32 %v520_v56, %v3735_v44  ;;  %4482 = vst [vmem:[#allocation28_spill] sm:$0xff] %v3805_v7 }
  0xdf   :  { %v3807_v8 = vpack.c.bf16 %v521_v6, %v472_v51 }
  0xe1   :  { %4483 = vst [vmem:[#allocation29_spill] sm:$0xff] %v3807_v8 }
  0xe3   :  { %v3809_v12 = vpop.f32.mrf.mxu2  ;;  %v378_v19 = vpop.f32.mrf.mxu0 }
  0xe4   :  { %4484 = vst [vmem:[#allocation30_spill] sm:$0xff] %v3809_v12  ;;  %v3811_v15 = vpop.f32.mrf.mxu3  ;;  %v379_v21 = vadd.f32 %v378_v19, %v3724_v29  ;;  %v427_v33 = vpop.f32.mrf.mxu1 }
  0xe5   :  { %4485 = vst [vmem:[#allocation31_spill] sm:$0xff] %v3811_v15  ;;  %v428_v34 = vadd.f32 %v427_v33, %v3726_v31 }
  0xe7   :  { %v3815_v36 = vpack.c.bf16 %v428_v34, %v379_v21 }
  0xe9   :  { %4486 = vst [vmem:[#allocation32_spill] sm:$0xff] %v3815_v36 }
  0xeb   :  { %v476_v38 = vpop.f32.mrf.mxu2  ;;  %v3818_v46 = vpop.f32.mrf.mxu0 }
  0xec   :  { %v477_v50 = vadd.f32 %v476_v38, %v3733_v43  ;;  %v525_v56 = vpop.f32.mrf.mxu3  ;;  %4487 = vst [vmem:[#allocation33_spill] sm:$0xff] %v3818_v46  ;;  %v3821_v6 = vpop.f32.mrf.mxu1 }
  0xed   :  { %v526_v51 = vadd.f32 %v525_v56, %v3735_v44  ;;  %4488 = vst [vmem:[#allocation34_spill] sm:$0xff] %v3821_v6 }
  0xef   :  { %v3823_v12 = vpack.c.bf16 %v526_v51, %v477_v50 }
  0xf1   :  { %4489 = vst [vmem:[#allocation35_spill] sm:$0xff] %v3823_v12 }
  0xf3   :  { %v3825_v15 = vpop.f32.mrf.mxu2  ;;  %v383_v8 = vpop.f32.mrf.mxu0 }
  0xf4   :  { %4490 = vst [vmem:[#allocation36_spill] sm:$0xff] %v3825_v15  ;;  %v3827_v19 = vpop.f32.mrf.mxu3  ;;  %v384_v21 = vadd.f32 %v383_v8, %v3724_v29  ;;  %v432_v33 = vpop.f32.mrf.mxu1 }
  0xf5   :  { %4491 = vst [vmem:[#allocation37_spill] sm:$0xff] %v3827_v19  ;;  %v433_v34 = vadd.f32 %v432_v33, %v3726_v31 }
  0xf7   :  { %v3831_v38 = vpack.c.bf16 %v433_v34, %v384_v21 }
  0xf9   :  { %4492 = vst [vmem:[#allocation38_spill] sm:$0xff] %v3831_v38 }
  0xfb   :  { %v481_v36 = vpop.f32.mrf.mxu2  ;;  %v385_v7 = vpop.f32.mrf.mxu0 }
  0xfc   :  { %v482_v46 = vadd.f32 %v481_v36, %v3733_v43  ;;  %v530_v56 = vpop.f32.mrf.mxu3  ;;  %v386_v51 = vadd.f32 %v385_v7, %v3724_v29  ;;  %v434_v15 = vpop.f32.mrf.mxu1 }
  0xfd   :  { %v531_v50 = vadd.f32 %v530_v56, %v3735_v44  ;;  %v435_v19 = vadd.f32 %v434_v15, %v3726_v31 }
  0xff   :  { %v3837_v12 = vpack.c.bf16 %v531_v50, %v482_v46  ;;  %v3839_v8 = vpack.c.bf16 %v435_v19, %v386_v51 }
 0x101   :  { %4493 = vst [vmem:[#allocation39_spill] sm:$0xff] %v3837_v12 }
 0x102   :  { %4494 = vst [vmem:[#allocation40_spill] sm:$0xff] %v3839_v8 }
 0x103   :  { %v483_v6 = vpop.f32.mrf.mxu2  ;;  %v388_v34 = vpop.f32.mrf.mxu0 }
 0x104   :  { %v484_v21 = vadd.f32 %v483_v6, %v3733_v43  ;;  %v532_v33 = vpop.f32.mrf.mxu3  ;;  %v389_v38 = vadd.f32 %v388_v34, %v3724_v29  ;;  %v437_v5 = vpop.f32.mrf.mxu1 }
 0x105   :  { %v533_v36 = vadd.f32 %v532_v33, %v3735_v44  ;;  %v438_v56 = vadd.f32 %v437_v5, %v3726_v31 }
 0x107   :  { %v3845_v7 = vpack.c.bf16 %v533_v36, %v484_v21  ;;  %v3847_v32 = vpack.c.bf16 %v438_v56, %v389_v38 }
 0x109   :  { %4495 = vst [vmem:[#allocation41_spill] sm:$0xff] %v3845_v7 }
 0x10a   :  { %4496 = vst [vmem:[#allocation42_spill] sm:$0xff] %v3847_v32 }
 0x10b   :  { %v486_v46 = vpop.f32.mrf.mxu2  ;;  %v390_v50 = vpop.f32.mrf.mxu0 }
 0x10c   :  { %v487_v15 = vadd.f32 %v486_v46, %v3733_v43  ;;  %v535_v19 = vpop.f32.mrf.mxu3  ;;  %v391_v51 = vadd.f32 %v390_v50, %v3724_v29  ;;  %v439_v8 = vpop.f32.mrf.mxu1 }
 0x10d   :  { %v536_v6 = vadd.f32 %v535_v19, %v3735_v44  ;;  %v440_v33 = vadd.f32 %v439_v8, %v3726_v31 }
 0x10f   :  { %v3853_v34 = vpack.c.bf16 %v536_v6, %v487_v15  ;;  %v3855_v12 = vpack.c.bf16 %v440_v33, %v391_v51 }
 0x111   :  { %4497 = vst [vmem:[#allocation43_spill] sm:$0xff] %v3853_v34 }
 0x112   :  { %4498 = vst [vmem:[#allocation44_spill] sm:$0xff] %v3855_v12 }
 0x113   :  { %v488_v5 = vpop.f32.mrf.mxu2  ;;  %v393_v36 = vpop.f32.mrf.mxu0 }
 0x114   :  { %v489_v38 = vadd.f32 %v488_v5, %v3733_v43  ;;  %v537_v21 = vpop.f32.mrf.mxu3  ;;  %v394_v46 = vadd.f32 %v393_v36, %v3724_v29  ;;  %v442_v32 = vpop.f32.mrf.mxu1 }
 0x115   :  { %v538_v56 = vadd.f32 %v537_v21, %v3735_v44  ;;  %v443_v19 = vadd.f32 %v442_v32, %v3726_v31 }
 0x117   :  { %v3861_v50 = vpack.c.bf16 %v538_v56, %v489_v38  ;;  %v3863_v7 = vpack.c.bf16 %v443_v19, %v394_v46 }
 0x119   :  { %4499 = vst [vmem:[#allocation45_spill] sm:$0xff] %v3861_v50 }
 0x11a   :  { %4500 = vst [vmem:[#allocation46_spill] sm:$0xff] %v3863_v7 }
 0x11b   :  { %v491_v8 = vpop.f32.mrf.mxu2  ;;  %v395_v51 = vpop.f32.mrf.mxu0 }
 0x11c   :  { %v492_v15 = vadd.f32 %v491_v8, %v3733_v43  ;;  %v540_v6 = vpop.f32.mrf.mxu3  ;;  %v396_v5 = vadd.f32 %v395_v51, %v3724_v29  ;;  %v444_v12 = vpop.f32.mrf.mxu1 }
 0x11d   :  { %v541_v33 = vadd.f32 %v540_v6, %v3735_v44  ;;  %v445_v21 = vadd.f32 %v444_v12, %v3726_v31 }
 0x11f   :  { %v3869_v36 = vpack.c.bf16 %v541_v33, %v492_v15  ;;  %v3871_v34 = vpack.c.bf16 %v445_v21, %v396_v5 }
 0x121   :  { %4501 = vst [vmem:[#allocation47_spill] sm:$0xff] %v3869_v36 }
 0x122   :  { %4502 = vst [vmem:[#allocation48_spill] sm:$0xff] %v3871_v34 }
 0x123   :  { %v493_v32 = vpop.f32.mrf.mxu2  ;;  %v398_v46 = vpop.f32.mrf.mxu0 }
 0x124   :  { %v494_v38 = vadd.f32 %v493_v32, %v3733_v43  ;;  %v542_v56 = vpop.f32.mrf.mxu3  ;;  %v399_v8 = vadd.f32 %v398_v46, %v3724_v29  ;;  %v447_v7 = vpop.f32.mrf.mxu1 }
 0x125   :  { %v543_v19 = vadd.f32 %v542_v56, %v3735_v44  ;;  %v448_v6 = vadd.f32 %v447_v7, %v3726_v31  ;;  %v366_v7 = vadd.f32 %v3742_v53, %v3724_v29 }
 0x127   :  { %v3877_v51 = vpack.c.bf16 %v543_v19, %v494_v38  ;;  %v3879_v50 = vpack.c.bf16 %v448_v6, %v399_v8  ;;  %v415_v38 = vadd.f32 %v3745_v57, %v3726_v31  ;;  %v877_v8 = vunpack.c.l.bf16 %v3731_v39 }
 0x128   :  { %v464_v57 = vadd.f32 %v3756_v0, %v3733_v43 }
 0x129   :  { %4503 = vst [vmem:[#allocation49_spill] sm:$0xff] %v3877_v51 }
 0x12a   :  { %4504 = vst [vmem:[#allocation50_spill] sm:$0xff] %v3879_v50 }
 0x12b   :  { %v496_v12 = vpop.f32.mrf.mxu2  ;;  %v400_v5 = vpop.f32.mrf.mxu0 }
 0x12c   :  { %v497_v15 = vadd.f32 %v496_v12, %v3733_v43  ;;  %v545_v33 = vpop.f32.mrf.mxu3  ;;  %v401_v32 = vadd.f32 %v400_v5, %v3724_v29  ;;  %v449_v34 = vpop.f32.mrf.mxu1  ;;  %v878_v5 = vunpack.c.h.bf16 %v3731_v39  ;;  %v880_v39 = vunpack.c.h.bf16 %v3750_v58 }
 0x12d   :  { %v546_v21 = vadd.f32 %v545_v33, %v3735_v44  ;;  %v450_v56 = vadd.f32 %v449_v34, %v3726_v31 }
 0x12f   :  { %v3885_v46 = vpack.c.bf16 %v546_v21, %v497_v15  ;;  %v3887_v36 = vpack.c.bf16 %v450_v56, %v401_v32  ;;  %v552_v56 = vpack.c.bf16 %v415_v38, %v366_v7 }
 0x131   :  { %4505 = vst [vmem:[#allocation51_spill] sm:$0xff] %v3885_v46  ;;  %v881_v50 = vunpack.c.l.bf16 %v552_v56 }
 0x132   :  { %4506 = vst [vmem:[#allocation52_spill] sm:$0xff] %v3887_v36 }
 0x133   :  { %v498_v19 = vpop.f32.mrf.mxu2  ;;  %v830_v33 = vpop.f32.mrf.mxu0 }
 0x134   :  { %v499_v6 = vadd.f32 %v498_v19, %v3733_v43  ;;  %v547_v12 = vpop.f32.mrf.mxu3  ;;  %v885_v15 = vadd.f32 %v877_v8, %v830_v33  ;;  %v844_v21 = vpop.f32.mrf.mxu1  ;;  %v513_v19 = vadd.f32 %v3759_v1, %v3735_v44  ;;  %v882_v33 = vunpack.c.h.bf16 %v552_v56 }
 0x135   :  { %v548_v34 = vadd.f32 %v547_v12, %v3735_v44  ;;  %v886_v32 = vadd.f32 %v878_v5, %v844_v21 }
 0x136   :  { %v2917_v53 = vmul.f32 -1.442695, %v885_v15  ;;  %v3904_v15 = vpack.c.bf16 %v513_v19, %v464_v57 }
 0x137   :  { %v3897_v36 = vpack.c.bf16 %v548_v34, %v499_v6  ;;  %v2919_v46 = vmul.f32 -1.442695, %v886_v32 }
 0x138   :  { %3163 = vpow2.f32 %v2917_v53 }
 0x139   :  { %4507 = vst [vmem:[#allocation53_spill] sm:$0xff] %v3897_v36  ;;  %3165 = vpow2.f32 %v2919_v46  ;;  %v884_v36 = vunpack.c.h.bf16 %v3904_v15 }
 0x13b   :  { %v832_v8 = vpop.f32.mrf.mxu0  ;;  %v858_v51 = vpop.f32.mrf.mxu2 }
 0x13c   :  { %v872_v12 = vpop.f32.mrf.mxu3  ;;  %v889_v7 = vadd.f32 %v881_v50, %v832_v8  ;;  %v846_v38 = vpop.f32.mrf.mxu1  ;;  %v879_v50 = vunpack.c.l.bf16 %v3750_v58 }
 0x13d   :  { %v888_v5 = vadd.f32 %v880_v39, %v872_v12  ;;  %v890_v6 = vadd.f32 %v882_v33, %v846_v38 }
 0x13e   :  { %v3164_v34 = vpop.eup %3163  ;;  %v2918_v0 = vmul.f32 -1.442695, %v889_v7  ;;  %v887_v19 = vadd.f32 %v879_v50, %v858_v51 }
 0x13f   :  { %v2921_v46 = vmul.f32 -1.442695, %v888_v5  ;;  %v3166_v21 = vpop.eup %3165  ;;  %v899_v32 = vadd.f32 1.0, %v3164_v34  ;;  %v2920_v1 = vmul.f32 -1.442695, %v890_v6 }
 0x140   :  { %v937_v53 = vadd.f32 1.0, %v3166_v21 }
 0x141   :  { %3167 = vpow2.f32 %v2921_v46  ;;  %v910_v21 = vand.u32 2147483647, %v899_v32  ;;  %vm906_vm2 = vweird.f32 %v899_v32 }
 0x142   :  { %3169 = vrcp.f32 %v899_v32  ;;  %v950_v51 = vand.u32 2147483648, %v937_v53  ;;  %vm944_vm3 = vweird.f32 %v937_v53 }
 0x143   :  { %3171 = vrcp.f32 %v937_v53  ;;  %vm911_vm5 = vcmp.eq.f32.partialorder %v910_v21, 8.507059e+37 }
 0x144   :  { %3173 = vpow2.f32 %v2918_v0  ;;  %v874_v56 = vpop.f32.mrf.mxu3 }
 0x145   :  { %3175 = vpow2.f32 %v2920_v1  ;;  %v892_v39 = vadd.f32 %v884_v36, %v874_v56  ;;  %v912_v1 = vand.u32 2147483648, %v899_v32 }
 0x147   :  { %v3168_v57 = vpop.eup %3167  ;;  %v2922_v12 = vmul.f32 -1.442695, %v892_v39  ;;  %v948_v39 = vand.u32 2147483647, %v937_v53 }
 0x148   :  { %v3170_v8 = vpop.eup %3169  ;;  %v3908_v33 = vadd.f32 1.0, %v3168_v57 }
 0x149   :  { %v3172_v5 = vpop.eup %3171  ;;  %v902_v7 = vmul.f32 %v3170_v8, %v899_v32  ;;  %3177 = vpow2.f32 %v2922_v12  ;;  %vm907_vm0 = vweird.f32 %v3170_v8  ;;  %v913_v12 = vor.u32 1.1754944e-38, %v912_v1 }
 0x14a   :  { %v3174_v38 = vpop.eup %3173  ;;  %v940_v6 = vmul.f32 %v3172_v5, %v937_v53  ;;  %3179 = vtanh.f32 %v887_v19  ;;  %vm945_vm1 = vweird.f32 %v3172_v5  ;;  %vm908_vm4 = vmor %vm906_vm2, %vm907_vm0  ;;  %vm949_vm7 = vcmp.eq.f32.partialorder %v948_v39, 8.507059e+37 }
 0x14b   :  { %v3176_v34 = vpop.eup %3175  ;;  %v903_v46 = vsub.f32 1.0, %v902_v7  ;;  %v3910_v0 = vadd.f32 1.0, %v3174_v38  ;;  %3181 = vrcp.f32 %v3908_v33  ;;  %v860_v38 = vpop.f32.mrf.mxu2  ;;  %vm946_vm6 = vmor %vm944_vm3, %vm945_vm1  ;;  %vm984_vm2 = vweird.f32 %v3908_v33 }
 0x14c   :  { %v941_v58 = vsub.f32 1.0, %v940_v6  ;;  %v3913_v36 = vadd.f32 1.0, %v3176_v34 }
 0x14d   :  { %v904_v56 = vmul.f32 %v3170_v8, %v903_v46  ;;  %3183 = vrcp.f32 %v3910_v0  ;;  %v951_v46 = vor.u32 1.1754944e-38, %v950_v51  ;;  %v927_v39 = vand.u32 2147483648, %v3910_v0 }
 0x14e   :  { %v942_v50 = vmul.f32 %v3172_v5, %v941_v58  ;;  %3185 = vrcp.f32 %v3913_v36  ;;  %v883_v58 = vunpack.c.l.bf16 %v3904_v15  ;;  %vm921_vm10 = vweird.f32 %v3910_v0 }
 0x14f   :  { %v3178_v57 = vpop.eup %3177  ;;  %v905_v19 = vadd.f32 %v3170_v8, %v904_v56  ;;  %vm959_vm11 = vweird.f32 %v3913_v36 }
 0x150   :  { %v943_v7 = vadd.f32 %v3172_v5, %v942_v50  ;;  %v3917_v6 = vadd.f32 1.0, %v3178_v57  ;;  %v3180_v34 = vpop.eup %3179  ;;  %v891_v50 = vadd.f32 %v883_v58, %v860_v38 }
 0x151   :  { %v909_v44 = vsel %vm908_vm4, %v3170_v8, %v905_v19  ;;  %v3921_v28 = vpop.eup %3181 }
 0x152   :  { %v914_v43 = vsel %vm911_vm5, %v913_v12, %v909_v44  ;;  %v947_v56 = vsel %vm946_vm6, %v3172_v5, %v943_v7  ;;  %3187 = vrcp.f32 %v3917_v6  ;;  %v980_v15 = vmul.f32 %v3921_v28, %v3908_v33 }
 0x153   :  { %v3184_v32 = vpop.eup %3183  ;;  %v952_v53 = vsel %vm949_vm7, %v951_v46, %v947_v56  ;;  %v1013_v1 = vmul.f32 %v3180_v34, %v914_v43  ;;  %3189 = vtanh.f32 %v891_v50  ;;  %v965_v43 = vand.u32 2147483648, %v3913_v36 }
 0x154   :  { %v3186_v57 = vpop.eup %3185  ;;  %v1011_v25 = vmul.f32 0.0, %v952_v53  ;;  %v917_v8 = vmul.f32 %v3184_v32, %v3910_v0  ;;  %vm922_vm8 = vweird.f32 %v3184_v32  ;;  %v925_v12 = vand.u32 2147483647, %v3910_v0 }
 0x155   :  { %v955_v21 = vmul.f32 %v3186_v57, %v3913_v36  ;;  %vm960_vm9 = vweird.f32 %v3186_v57  ;;  %v981_v34 = vsub.f32 1.0, %v980_v15  ;;  %vm923_vm12 = vmor %vm921_vm10, %vm922_vm8  ;;  %v928_v56 = vor.u32 1.1754944e-38, %v927_v39 }
 0x156   :  { %v3926_v51 = vadd.f32 %v1013_v1, %v1011_v25  ;;  %v918_v44 = vsub.f32 1.0, %v917_v8  ;;  %v963_v25 = vand.u32 2147483647, %v3913_v36  ;;  %v966_v1 = vor.u32 1.1754944e-38, %v965_v43  ;;  %vm961_vm14 = vmor %vm959_vm11, %vm960_vm9 }
 0x157   :  { %v956_v5 = vsub.f32 1.0, %v955_v21  ;;  %vm926_vm13 = vcmp.eq.f32.partialorder %v925_v12, 8.507059e+37  ;;  %v982_v15 = vmul.f32 %v3921_v28, %v981_v34  ;;  %vm985_vm0 = vweird.f32 %v3921_v28 }
 0x158   :  { %v919_v19 = vmul.f32 %v3184_v32, %v918_v44  ;;  %v3188_v7 = vpop.eup %3187  ;;  %vm964_vm15 = vcmp.eq.f32.partialorder %v963_v25, 8.507059e+37  ;;  %3191 = vtanh.f32 %v3926_v51  ;;  %v1005_v43 = vand.u32 2147483648, %v3917_v6  ;;  %vm986_vm3 = vmor %vm984_vm2, %vm985_vm0 }
 0x159   :  { %v957_v38 = vmul.f32 %v3186_v57, %v956_v5  ;;  %v995_v58 = vmul.f32 %v3188_v7, %v3917_v6  ;;  %v3190_v21 = vpop.eup %3189  ;;  %vm1000_vm1 = vweird.f32 %v3188_v7  ;;  %v988_v12 = vand.u32 2147483647, %v3908_v33 }
 0x15a   :  { %v920_v46 = vadd.f32 %v3184_v32, %v919_v19  ;;  %vm999_vm4 = vweird.f32 %v3917_v6 }
 0x15b   :  { %v958_v53 = vadd.f32 %v3186_v57, %v957_v38  ;;  %v996_v8 = vsub.f32 1.0, %v995_v58  ;;  %vm1001_vm5 = vmor %vm999_vm4, %vm1000_vm1  ;;  %vm989_vm6 = vcmp.eq.f32.partialorder %v988_v12, 8.507059e+37  ;;  %v4510_v12 = vld [vmem:[#allocation23_spill] sm:$0xff] }
 0x15c   :  { %v924_v50 = vsel %vm923_vm12, %v3184_v32, %v920_v46  ;;  %v983_v32 = vadd.f32 %v3921_v28, %v982_v15  ;;  %v1006_v46 = vor.u32 1.1754944e-38, %v1005_v43 }
 0x15d   :  { %v929_v44 = vsel %vm926_vm13, %v928_v56, %v924_v50  ;;  %v962_v5 = vsel %vm961_vm14, %v3186_v57, %v958_v53  ;;  %v997_v11 = vmul.f32 %v3188_v7, %v996_v8  ;;  %v990_v57 = vand.u32 2147483648, %v3908_v33 }
 0x15e   :  { %v967_v19 = vsel %vm964_vm15, %v966_v1, %v962_v5  ;;  %v1014_v0 = vmul.f32 %v3190_v21, %v929_v44  ;;  %v987_v38 = vsel %vm986_vm3, %v3921_v28, %v983_v32  ;;  %v3192_v25 = vpop.eup %3191  ;;  %v371_v28 = vadd.f32 %v3774_v20, %v3724_v29  ;;  %v4509_v21 = vld [vmem:[#allocation21_spill] sm:$0xff] }
 0x15f   :  { %v1012_v23 = vmul.f32 0.0, %v967_v19  ;;  %v998_v39 = vadd.f32 %v3188_v7, %v997_v11  ;;  %v991_v34 = vor.u32 1.1754944e-38, %v990_v57  ;;  %v1100_v44 = vunpack.c.l.bf16 %v4509_v21 }
 0x160   :  { %v1101_v5 = vunpack.c.h.bf16 %v4509_v21 }
 0x161   :  { %v3940_v36 = vadd.f32 %v1014_v0, %v1012_v23  ;;  %v1003_v23 = vand.u32 2147483647, %v3917_v6  ;;  %v1002_v11 = vsel %vm1001_vm5, %v3188_v7, %v998_v39  ;;  %v992_v56 = vsel %vm989_vm6, %v991_v34, %v987_v38  ;;  %v4508_v6 = vld [vmem:[#allocation22_spill] sm:$0xff] }
 0x162   :  { %v1019_v1 = vmul.f32 %v3192_v25, %v992_v56  ;;  %v420_v7 = vadd.f32 %v4508_v6, %v3726_v31  ;;  %v4512_v56 = vld [vmem:[#allocation24_spill] sm:$0xff] }
 0x163   :  { %3193 = vtanh.f32 %v3940_v36  ;;  %vm1004_vm7 = vcmp.eq.f32.partialorder %v1003_v23, 8.507059e+37  ;;  %v1103_v23 = vunpack.c.h.bf16 %v4510_v12 }
 0x164   :  { %v1007_v53 = vsel %vm1004_vm7, %v1006_v46, %v1002_v11  ;;  %v556_v39 = vpack.c.bf16 %v420_v7, %v371_v28 }
 0x166   :  { %v1104_v20 = vunpack.c.l.bf16 %v556_v39  ;;  %v1105_v11 = vunpack.c.h.bf16 %v556_v39  ;;  %v1102_v39 = vunpack.c.l.bf16 %v4510_v12 }
 0x169   :  { %v3194_v58 = vpop.eup %3193 }
 0x16a   :  { %v1020_v50 = vmul.f32 %v3194_v58, %v1007_v53  ;;  %v4511_v58 = vld [vmem:[#allocation19_spill] sm:$0xff] }
 0x16b   :  { %v469_v53 = vadd.f32 %v4512_v56, %v4511_v58 }
 0x16c   :  { %v3076_v8 = vpack.c.bf16 %v1020_v50, %v1019_v1  ;;  %v4513_v1 = vld [vmem:[#allocation20_spill] sm:$0xff]  ;;  %v4514_v50 = vld [vmem:[#allocation25_spill] sm:$0xff] }
 0x16e   :  { %3077 = vst [vmem:[#allocation2] sm:$0xff] %v3076_v8  }
 0x16f   :  { %3082 = vst [vmem:[#allocation13] sm:$0xff] %v3076_v8   ;;  %v518_v8 = vadd.f32 %v4514_v50, %v4513_v1 }
 0x175   :  { %v3066_v33 = vld [vmem:[#allocation2] sm:$0xff] }
 0x176   :  { %1052 = vmatmul.bf16.vlgmr.msra.gmra.mxu0 %v3066_v33  ;;  %1066 = vmatmul.bf16.vlgmr.msra.gmra.mxu1 %v3066_v33 }
 0x177   :  { %1080 = vmatmul.bf16.vlgmr.msra.gmra.mxu2 %v3066_v33  ;;  %1094 = vmatmul.bf16.vlgmr.msra.gmra.mxu3 %v3066_v33 }
 0x178   :  { %1492 = vmatpush.bf16.msra.mxu0 %v3597_v37  ;;  %1506 = vmatpush.bf16.msra.mxu1 %v3599_v41 }
 0x179   :  { %1520 = vmatpush.bf16.msra.mxu2 %v3601_v47  ;;  %1534 = vmatpush.bf16.msra.mxu3 %v3604_v48 }
 0x17c   :  { %1493 = vmatpush.bf16.msra.mxu0 %v3606_v49  ;;  %1507 = vmatpush.bf16.msra.mxu1 %v3609_v52 }
 0x17d   :  { %1521 = vmatpush.bf16.msra.mxu2 %v3612_v55  ;;  %1535 = vmatpush.bf16.msra.mxu3 %v3616_v59 }
 0x180   :  { %1494 = vmatpush.bf16.msra.mxu0 %v3618_v60  ;;  %1508 = vmatpush.bf16.msra.mxu1 %v3621_v63 }
 0x181   :  { %1522 = vmatpush.bf16.msra.mxu2 %v3624_v3  ;;  %1536 = vmatpush.bf16.msra.mxu3 %v3628_v4 }
 0x184   :  { %1495 = vmatpush.bf16.msra.mxu0 %v3633_v9  ;;  %1509 = vmatpush.bf16.msra.mxu1 %v3635_v13 }
 0x185   :  { %1523 = vmatpush.bf16.msra.mxu2 %v3640_v17  ;;  %1537 = vmatpush.bf16.msra.mxu3 %v3637_v14 }
 0x188   :  { %1496 = vmatpush.bf16.msra.mxu0 %v3645_v22  ;;  %1510 = vmatpush.bf16.msra.mxu1 %v3647_v26 }
 0x189   :  { %1524 = vmatpush.bf16.msra.mxu2 %v3652_v30  ;;  %1538 = vmatpush.bf16.msra.mxu3 %v3649_v27 }
 0x18c   :  { %1497 = vmatpush.bf16.msra.mxu0 %v3657_v35  ;;  %1511 = vmatpush.bf16.msra.mxu1 %v3659_v40 }
 0x18d   :  { %1525 = vmatpush.bf16.msra.mxu2 %v3664_v45  ;;  %1539 = vmatpush.bf16.msra.mxu3 %v3661_v42 }
 0x190   :  { %1498 = vmatpush.bf16.msra.mxu0 %v3669_v54  ;;  %1512 = vmatpush.bf16.msra.mxu1 %v3671_v61 }
 0x191   :  { %1526 = vmatpush.bf16.msra.mxu2 %v3676_v2  ;;  %1540 = vmatpush.bf16.msra.mxu3 %v3673_v62 }
 0x194   :  { %1499 = vmatpush.bf16.msra.mxu0 %v3681_v10  ;;  %1513 = vmatpush.bf16.msra.mxu1 %v3683_v16 }
 0x195   :  { %1527 = vmatpush.bf16.msra.mxu2 %v3696_v24  ;;  %1541 = vmatpush.bf16.msra.mxu3 %v3685_v18 }
 0x1f3   :  { %v1053_v15 = vpop.f32.mrf.mxu0  ;;  %v1067_v19 = vpop.f32.mrf.mxu1 }
 0x1f4   :  { %v1108_v0 = vadd.f32 %v1100_v44, %v1053_v15  ;;  %v1109_v32 = vadd.f32 %v1101_v5, %v1067_v19  ;;  %v557_v19 = vpack.c.bf16 %v518_v8, %v469_v53 }
 0x1f6   :  { %v2927_v57 = vmul.f32 -1.442695, %v1108_v0  ;;  %v2929_v43 = vmul.f32 -1.442695, %v1109_v32 }
 0x1f8   :  { %3195 = vpow2.f32 %v2927_v57 }
 0x1f9   :  { %3197 = vpow2.f32 %v2929_v43  ;;  %v1107_v43 = vunpack.c.h.bf16 %v557_v19 }
 0x1fa   :  { %v1095_v38 = vpop.f32.mrf.mxu3  ;;  %v1081_v32 = vpop.f32.mrf.mxu2 }
 0x1fb   :  { %v1111_v25 = vadd.f32 %v1103_v23, %v1095_v38  ;;  %v1055_v34 = vpop.f32.mrf.mxu0  ;;  %v1069_v46 = vpop.f32.mrf.mxu1  ;;  %v1110_v38 = vadd.f32 %v1102_v39, %v1081_v32 }
 0x1fc   :  { %v1112_v33 = vadd.f32 %v1104_v20, %v1055_v34  ;;  %v1113_v28 = vadd.f32 %v1105_v11, %v1069_v46 }
 0x1fd   :  { %v2931_v6 = vmul.f32 -1.442695, %v1111_v25 }
 0x1fe   :  { %v3196_v7 = vpop.eup %3195  ;;  %v2928_v21 = vmul.f32 -1.442695, %v1112_v33  ;;  %v2930_v15 = vmul.f32 -1.442695, %v1113_v28 }
 0x1ff   :  { %v3198_v44 = vpop.eup %3197  ;;  %v1122_v5 = vadd.f32 1.0, %v3196_v7  ;;  %3199 = vpow2.f32 %v2931_v6 }
 0x200   :  { %v1160_v0 = vadd.f32 1.0, %v3198_v44  ;;  %3201 = vpow2.f32 %v2928_v21 }
 0x201   :  { %3203 = vrcp.f32 %v1122_v5  ;;  %v1133_v7 = vand.u32 2147483647, %v1122_v5  ;;  %v1135_v21 = vand.u32 2147483648, %v1122_v5  ;;  %vm1129_vm10 = vweird.f32 %v1122_v5 }
 0x202   :  { %3205 = vrcp.f32 %v1160_v0  ;;  %v1097_v57 = vpop.f32.mrf.mxu3  ;;  %v1173_v44 = vand.u32 2147483648, %v1160_v0  ;;  %v1171_v39 = vand.u32 2147483647, %v1160_v0  ;;  %vm1167_vm11 = vweird.f32 %v1160_v0 }
 0x203   :  { %3207 = vpow2.f32 %v2930_v15  ;;  %v1115_v11 = vadd.f32 %v1107_v43, %v1097_v57  ;;  %v1083_v57 = vpop.f32.mrf.mxu2  ;;  %vm1134_vm14 = vcmp.eq.f32.partialorder %v1133_v7, 8.507059e+37 }
 0x204   :  { %3209 = vtanh.f32 %v1110_v38  ;;  %vm1172_vm15 = vcmp.eq.f32.partialorder %v1171_v39, 8.507059e+37 }
 0x205   :  { %v3200_v23 = vpop.eup %3199  ;;  %v2932_v28 = vmul.f32 -1.442695, %v1115_v11 }
 0x206   :  { %v3202_v20 = vpop.eup %3201  ;;  %v3995_v34 = vadd.f32 1.0, %v3200_v23  ;;  %v1106_v23 = vunpack.c.l.bf16 %v557_v19 }
 0x207   :  { %v3204_v25 = vpop.eup %3203  ;;  %v3997_v46 = vadd.f32 1.0, %v3202_v20  ;;  %v1136_v20 = vor.u32 1.1754944e-38, %v1135_v21 }
 0x208   :  { %v3206_v56 = vpop.eup %3205  ;;  %v1125_v53 = vmul.f32 %v3204_v25, %v1122_v5  ;;  %vm1130_vm8 = vweird.f32 %v3204_v25 }
 0x209   :  { %v3208_v50 = vpop.eup %3207  ;;  %v1163_v8 = vmul.f32 %v3206_v56, %v1160_v0  ;;  %3211 = vrcp.f32 %v3997_v46  ;;  %vm1168_vm9 = vweird.f32 %v3206_v56  ;;  %vm1131_vm12 = vmor %vm1129_vm10, %vm1130_vm8  ;;  %v1148_v7 = vand.u32 2147483647, %v3997_v46 }
 0x20a   :  { %v1126_v33 = vsub.f32 1.0, %v1125_v53  ;;  %v4000_v12 = vadd.f32 1.0, %v3208_v50  ;;  %3213 = vrcp.f32 %v3995_v34  ;;  %v3210_v38 = vpop.eup %3209  ;;  %vm1169_vm13 = vmor %vm1167_vm11, %vm1168_vm9  ;;  %v1174_v50 = vor.u32 1.1754944e-38, %v1173_v44 }
 0x20b   :  { %v1164_v6 = vsub.f32 1.0, %v1163_v8  ;;  %v1150_v44 = vand.u32 2147483648, %v3997_v46  ;;  %vm1144_vm1 = vweird.f32 %v3997_v46  ;;  %vm1149_vm5 = vcmp.eq.f32.partialorder %v1148_v7, 8.507059e+37 }
 0x20c   :  { %v1127_v15 = vmul.f32 %v3204_v25, %v1126_v33  ;;  %3215 = vrcp.f32 %v4000_v12  ;;  %v1114_v33 = vadd.f32 %v1106_v23, %v1083_v57  ;;  %vm1182_vm3 = vweird.f32 %v4000_v12 }
 0x20d   :  { %v1165_v32 = vmul.f32 %v3206_v56, %v1164_v6  ;;  %3217 = vpow2.f32 %v2932_v28  ;;  %vm1207_vm9 = vweird.f32 %v3995_v34 }
 0x20e   :  { %v1128_v43 = vadd.f32 %v3204_v25, %v1127_v15  ;;  %3219 = vtanh.f32 %v1114_v33 }
 0x20f   :  { %v1166_v11 = vadd.f32 %v3206_v56, %v1165_v32  ;;  %v3212_v53 = vpop.eup %3211 }
 0x210   :  { %v1132_v8 = vsel %vm1131_vm12, %v3204_v25, %v1128_v43  ;;  %v4004_v1 = vpop.eup %3213  ;;  %v1140_v5 = vmul.f32 %v3212_v53, %v3997_v46  ;;  %vm1145_vm0 = vweird.f32 %v3212_v53 }
 0x211   :  { %v1137_v6 = vsel %vm1134_vm14, %v1136_v20, %v1132_v8  ;;  %v1170_v58 = vsel %vm1169_vm13, %v3206_v56, %v1166_v11  ;;  %v1203_v25 = vmul.f32 %v4004_v1, %v3995_v34  ;;  %vm1146_vm4 = vmor %vm1144_vm1, %vm1145_vm0  ;;  %v1151_v20 = vor.u32 1.1754944e-38, %v1150_v44 }
 0x212   :  { %v3216_v19 = vpop.eup %3215  ;;  %v1175_v28 = vsel %vm1172_vm15, %v1174_v50, %v1170_v58  ;;  %v1236_v15 = vmul.f32 %v3210_v38, %v1137_v6  ;;  %v1141_v21 = vsub.f32 1.0, %v1140_v5  ;;  %v1188_v58 = vand.u32 2147483648, %v4000_v12 }
 0x213   :  { %v1234_v0 = vmul.f32 %v1175_v28, %v3926_v51  ;;  %v1178_v32 = vmul.f32 %v3216_v19, %v4000_v12  ;;  %v3218_v31 = vpop.eup %3217  ;;  %vm1183_vm2 = vweird.f32 %v3216_v19  ;;  %v1186_v38 = vand.u32 2147483647, %v4000_v12 }
 0x214   :  { %v1142_v57 = vmul.f32 %v3212_v53, %v1141_v21  ;;  %v1201_v51 = vadd.f32 1.0, %v3218_v31  ;;  %v1204_v11 = vsub.f32 1.0, %v1203_v25  ;;  %v3220_v33 = vpop.eup %3219  ;;  %vm1184_vm6 = vmor %vm1182_vm3, %vm1183_vm2  ;;  %v1189_v6 = vor.u32 1.1754944e-38, %v1188_v58 }
 0x215   :  { %v4013_v56 = vadd.f32 %v1236_v15, %v1234_v0  ;;  %v1179_v39 = vsub.f32 1.0, %v1178_v32  ;;  %vm1187_vm7 = vcmp.eq.f32.partialorder %v1186_v38, 8.507059e+37  ;;  %vm1208_vm8 = vweird.f32 %v4004_v1 }
 0x216   :  { %v1143_v23 = vadd.f32 %v3212_v53, %v1142_v57  ;;  %3221 = vrcp.f32 %v1201_v51  ;;  %v1205_v15 = vmul.f32 %v4004_v1, %v1204_v11  ;;  %v1213_v25 = vand.u32 2147483648, %v3995_v34  ;;  %vm1209_vm11 = vmor %vm1207_vm9, %vm1208_vm8 }
 0x217   :  { %v1180_v43 = vmul.f32 %v3216_v19, %v1179_v39  ;;  %3223 = vtanh.f32 %v4013_v56  ;;  %v1228_v7 = vand.u32 2147483648, %v1201_v51  ;;  %v1226_v39 = vand.u32 2147483647, %v1201_v51 }
 0x218   :  { %v1147_v50 = vsel %vm1146_vm4, %v3212_v53, %v1143_v23  ;;  %v1206_v53 = vadd.f32 %v4004_v1, %v1205_v15  ;;  %vm1222_vm12 = vweird.f32 %v1201_v51  ;;  %v1214_v23 = vor.u32 1.1754944e-38, %v1213_v25  ;;  %v4518_v15 = vld [vmem:[#allocation26_spill] sm:$0xff] }
 0x219   :  { %v1181_v8 = vadd.f32 %v3216_v19, %v1180_v43  ;;  %v1152_v5 = vsel %vm1149_vm5, %v1151_v20, %v1147_v50  ;;  %v1229_v38 = vor.u32 1.1754944e-38, %v1228_v7  ;;  %vm1227_vm15 = vcmp.eq.f32.partialorder %v1226_v39, 8.507059e+37  ;;  %v4519_v39 = vld [vmem:[#allocation29_spill] sm:$0xff] }
 0x21a   :  { %v1237_v31 = vmul.f32 %v3220_v33, %v1152_v5  ;;  %v1210_v57 = vsel %vm1209_vm11, %v4004_v1, %v1206_v53  ;;  %v4515_v1 = vld [vmem:[#allocation27_spill] sm:$0xff] }
 0x21b   :  { %v1185_v46 = vsel %vm1184_vm6, %v3216_v19, %v1181_v8 }
 0x21c   :  { %v1190_v28 = vsel %vm1187_vm7, %v1189_v6, %v1185_v46  ;;  %v3222_v12 = vpop.eup %3221  ;;  %v4516_v46 = vld [vmem:[#allocation18_spill] sm:$0xff] }
 0x21d   :  { %v1235_v0 = vmul.f32 %v1190_v28, %v3940_v36  ;;  %v1218_v32 = vmul.f32 %v3222_v12, %v1201_v51  ;;  %v1211_v36 = vand.u32 2147483647, %v3995_v34  ;;  %vm1223_vm10 = vweird.f32 %v3222_v12  ;;  %v3224_v43 = vpop.eup %3223 }
 0x21e   :  { %vm1224_vm13 = vmor %vm1222_vm12, %vm1223_vm10  ;;  %v376_v51 = vadd.f32 %v4515_v1, %v3724_v29 }
 0x21f   :  { %v4021_v21 = vadd.f32 %v1237_v31, %v1235_v0  ;;  %v1219_v19 = vsub.f32 1.0, %v1218_v32  ;;  %vm1212_vm14 = vcmp.eq.f32.partialorder %v1211_v36, 8.507059e+37  ;;  %v4517_v31 = vld [vmem:[#allocation28_spill] sm:$0xff]  ;;  %v1324_v0 = vunpack.c.l.bf16 %v4518_v15 }
 0x220   :  { %v1215_v50 = vsel %vm1212_vm14, %v1214_v23, %v1210_v57  ;;  %v425_v28 = vadd.f32 %v4517_v31, %v4516_v46  ;;  %v1327_v57 = vunpack.c.h.bf16 %v4519_v39 }
 0x221   :  { %3225 = vtanh.f32 %v4021_v21  ;;  %v1220_v44 = vmul.f32 %v3222_v12, %v1219_v19  ;;  %v1242_v33 = vmul.f32 %v3224_v43, %v1215_v50  ;;  %v4520_v50 = vld [vmem:[#allocation19_spill] sm:$0xff] }
 0x222   :  { %v560_v7 = vpack.c.bf16 %v425_v28, %v376_v51 }
 0x223   :  { %v1221_v58 = vadd.f32 %v3222_v12, %v1220_v44 }
 0x224   :  { %v1328_v43 = vunpack.c.l.bf16 %v560_v7  ;;  %v1329_v23 = vunpack.c.h.bf16 %v560_v7  ;;  %v1326_v7 = vunpack.c.l.bf16 %v4519_v39 }
 0x225   :  { %v1225_v11 = vsel %vm1224_vm13, %v3222_v12, %v1221_v58  ;;  %v1325_v12 = vunpack.c.h.bf16 %v4518_v15 }
 0x226   :  { %v1230_v8 = vsel %vm1227_vm15, %v1229_v38, %v1225_v11 }
 0x227   :  { %v3226_v20 = vpop.eup %3225 }
 0x228   :  { %v1243_v34 = vmul.f32 %v3226_v20, %v1230_v8  ;;  %v4521_v8 = vld [vmem:[#allocation30_spill] sm:$0xff] }
 0x22a   :  { %v3086_v6 = vpack.c.bf16 %v1243_v34, %v1242_v33  ;;  %v474_v33 = vadd.f32 %v4521_v8, %v4520_v50  ;;  %v4522_v34 = vld [vmem:[#allocation20_spill] sm:$0xff] }
 0x22c   :  { %3087 = vst [vmem:[#allocation2] sm:$0xff] %v3086_v6  }
 0x22d   :  { %3092 = vst [vmem:[#allocation13 + $0x8] sm:$0xff] %v3086_v6   ;;  %v4523_v6 = vld [vmem:[#allocation31_spill] sm:$0xff] }
 0x233   :  { %v3067_v5 = vld [vmem:[#allocation2] sm:$0xff] }
 0x234   :  { %1276 = vmatmul.bf16.vlgmr.msrb.gmra.mxu0 %v3067_v5  ;;  %1290 = vmatmul.bf16.vlgmr.msrb.gmra.mxu1 %v3067_v5 }
 0x235   :  { %1304 = vmatmul.bf16.vlgmr.msrb.gmra.mxu2 %v3067_v5  ;;  %1318 = vmatmul.bf16.vlgmr.msrb.gmra.mxu3 %v3067_v5  ;;  %v523_v5 = vadd.f32 %v4523_v6, %v4522_v34 }
 0x236   :  { %1716 = vmatpush.bf16.msrb.mxu0 %v3597_v37  ;;  %1730 = vmatpush.bf16.msrb.mxu1 %v3599_v41 }
 0x237   :  { %1744 = vmatpush.bf16.msrb.mxu2 %v3601_v47  ;;  %1758 = vmatpush.bf16.msrb.mxu3 %v3604_v48 }
 0x23a   :  { %1717 = vmatpush.bf16.msrb.mxu0 %v3606_v49  ;;  %1731 = vmatpush.bf16.msrb.mxu1 %v3609_v52 }
 0x23b   :  { %1745 = vmatpush.bf16.msrb.mxu2 %v3612_v55  ;;  %1759 = vmatpush.bf16.msrb.mxu3 %v3616_v59 }
 0x23e   :  { %1718 = vmatpush.bf16.msrb.mxu0 %v3618_v60  ;;  %1732 = vmatpush.bf16.msrb.mxu1 %v3621_v63 }
 0x23f   :  { %1746 = vmatpush.bf16.msrb.mxu2 %v3624_v3  ;;  %1760 = vmatpush.bf16.msrb.mxu3 %v3628_v4 }
 0x242   :  { %1719 = vmatpush.bf16.msrb.mxu0 %v3633_v9  ;;  %1733 = vmatpush.bf16.msrb.mxu1 %v3635_v13 }
 0x243   :  { %1747 = vmatpush.bf16.msrb.mxu2 %v3640_v17  ;;  %1761 = vmatpush.bf16.msrb.mxu3 %v3637_v14 }
 0x246   :  { %1720 = vmatpush.bf16.msrb.mxu0 %v3645_v22  ;;  %1734 = vmatpush.bf16.msrb.mxu1 %v3647_v26 }
 0x247   :  { %1748 = vmatpush.bf16.msrb.mxu2 %v3652_v30  ;;  %1762 = vmatpush.bf16.msrb.mxu3 %v3649_v27 }
 0x24a   :  { %1721 = vmatpush.bf16.msrb.mxu0 %v3657_v35  ;;  %1735 = vmatpush.bf16.msrb.mxu1 %v3659_v40 }
 0x24b   :  { %1749 = vmatpush.bf16.msrb.mxu2 %v3664_v45  ;;  %1763 = vmatpush.bf16.msrb.mxu3 %v3661_v42 }
 0x24e   :  { %1722 = vmatpush.bf16.msrb.mxu0 %v3669_v54  ;;  %1736 = vmatpush.bf16.msrb.mxu1 %v3671_v61 }
 0x24f   :  { %1750 = vmatpush.bf16.msrb.mxu2 %v3676_v2  ;;  %1764 = vmatpush.bf16.msrb.mxu3 %v3673_v62 }
 0x252   :  { %1723 = vmatpush.bf16.msrb.mxu0 %v3681_v10  ;;  %1737 = vmatpush.bf16.msrb.mxu1 %v3683_v16 }
 0x253   :  { %1751 = vmatpush.bf16.msrb.mxu2 %v3696_v24  ;;  %1765 = vmatpush.bf16.msrb.mxu3 %v3685_v18 }
 0x2b1   :  { %v1277_v32 = vpop.f32.mrf.mxu0  ;;  %v1291_v53 = vpop.f32.mrf.mxu1 }
 0x2b2   :  { %v1332_v19 = vadd.f32 %v1324_v0, %v1277_v32  ;;  %v1333_v25 = vadd.f32 %v1325_v12, %v1291_v53  ;;  %v561_v53 = vpack.c.bf16 %v523_v5, %v474_v33 }
 0x2b4   :  { %v2937_v36 = vmul.f32 -1.442695, %v1332_v19  ;;  %v2939_v44 = vmul.f32 -1.442695, %v1333_v25 }
 0x2b6   :  { %3227 = vpow2.f32 %v2937_v36 }
 0x2b7   :  { %3229 = vpow2.f32 %v2939_v44  ;;  %v1331_v44 = vunpack.c.h.bf16 %v561_v53 }
 0x2b8   :  { %v1319_v58 = vpop.f32.mrf.mxu3  ;;  %v1305_v25 = vpop.f32.mrf.mxu2 }
 0x2b9   :  { %v1335_v38 = vadd.f32 %v1327_v57, %v1319_v58  ;;  %v1279_v20 = vpop.f32.mrf.mxu0  ;;  %v1293_v11 = vpop.f32.mrf.mxu1  ;;  %v1334_v58 = vadd.f32 %v1326_v7, %v1305_v25 }
 0x2ba   :  { %v1336_v1 = vadd.f32 %v1328_v43, %v1279_v20  ;;  %v1337_v51 = vadd.f32 %v1329_v23, %v1293_v11 }
 0x2bb   :  { %v2941_v31 = vmul.f32 -1.442695, %v1335_v38 }
 0x2bc   :  { %v3228_v28 = vpop.eup %3227  ;;  %v2938_v15 = vmul.f32 -1.442695, %v1336_v1  ;;  %v2940_v32 = vmul.f32 -1.442695, %v1337_v51 }
 0x2bd   :  { %v3230_v0 = vpop.eup %3229  ;;  %v1346_v12 = vadd.f32 1.0, %v3228_v28  ;;  %3231 = vpow2.f32 %v2941_v31 }
 0x2be   :  { %v1384_v19 = vadd.f32 1.0, %v3230_v0  ;;  %3233 = vpow2.f32 %v2938_v15 }
 0x2bf   :  { %3235 = vrcp.f32 %v1346_v12  ;;  %v1357_v28 = vand.u32 2147483647, %v1346_v12  ;;  %v1359_v15 = vand.u32 2147483648, %v1346_v12  ;;  %vm1353_vm2 = vweird.f32 %v1346_v12 }
 0x2c0   :  { %3237 = vrcp.f32 %v1384_v19  ;;  %v1321_v36 = vpop.f32.mrf.mxu3  ;;  %v1397_v0 = vand.u32 2147483648, %v1384_v19  ;;  %v1395_v7 = vand.u32 2147483647, %v1384_v19  ;;  %vm1391_vm3 = vweird.f32 %v1384_v19 }
 0x2c1   :  { %3239 = vpow2.f32 %v2940_v32  ;;  %v1339_v23 = vadd.f32 %v1331_v44, %v1321_v36  ;;  %v1307_v36 = vpop.f32.mrf.mxu2  ;;  %vm1358_vm6 = vcmp.eq.f32.partialorder %v1357_v28, 8.507059e+37 }
 0x2c2   :  { %3241 = vtanh.f32 %v1334_v58  ;;  %vm1396_vm7 = vcmp.eq.f32.partialorder %v1395_v7, 8.507059e+37 }
 0x2c3   :  { %v3232_v57 = vpop.eup %3231  ;;  %v2942_v51 = vmul.f32 -1.442695, %v1339_v23 }
 0x2c4   :  { %v3234_v43 = vpop.eup %3233  ;;  %v4075_v20 = vadd.f32 1.0, %v3232_v57  ;;  %v1330_v57 = vunpack.c.l.bf16 %v561_v53 }
 0x2c5   :  { %v3236_v38 = vpop.eup %3235  ;;  %v4077_v11 = vadd.f32 1.0, %v3234_v43  ;;  %v1360_v43 = vor.u32 1.1754944e-38, %v1359_v15 }
 0x2c6   :  { %v3238_v8 = vpop.eup %3237  ;;  %v1349_v33 = vmul.f32 %v3236_v38, %v1346_v12  ;;  %vm1354_vm0 = vweird.f32 %v3236_v38 }
 0x2c7   :  { %v3240_v6 = vpop.eup %3239  ;;  %v1387_v5 = vmul.f32 %v3238_v8, %v1384_v19  ;;  %3243 = vrcp.f32 %v4077_v11  ;;  %vm1392_vm1 = vweird.f32 %v3238_v8  ;;  %vm1355_vm4 = vmor %vm1353_vm2, %vm1354_vm0  ;;  %v1372_v28 = vand.u32 2147483647, %v4077_v11 }
 0x2c8   :  { %v1350_v1 = vsub.f32 1.0, %v1349_v33  ;;  %v4080_v39 = vadd.f32 1.0, %v3240_v6  ;;  %3245 = vrcp.f32 %v4075_v20  ;;  %v3242_v58 = vpop.eup %3241  ;;  %vm1393_vm5 = vmor %vm1391_vm3, %vm1392_vm1  ;;  %v1398_v6 = vor.u32 1.1754944e-38, %v1397_v0 }
 0x2c9   :  { %v1388_v31 = vsub.f32 1.0, %v1387_v5  ;;  %v1374_v0 = vand.u32 2147483648, %v4077_v11  ;;  %vm1368_vm9 = vweird.f32 %v4077_v11  ;;  %vm1373_vm13 = vcmp.eq.f32.partialorder %v1372_v28, 8.507059e+37 }
 0x2ca   :  { %v1351_v32 = vmul.f32 %v3236_v38, %v1350_v1  ;;  %3247 = vrcp.f32 %v4080_v39  ;;  %v1338_v1 = vadd.f32 %v1330_v57, %v1307_v36  ;;  %vm1406_vm11 = vweird.f32 %v4080_v39 }
 0x2cb   :  { %v1389_v25 = vmul.f32 %v3238_v8, %v1388_v31  ;;  %3249 = vpow2.f32 %v2942_v51  ;;  %vm1431_vm1 = vweird.f32 %v4075_v20 }
 0x2cc   :  { %v1352_v44 = vadd.f32 %v3236_v38, %v1351_v32  ;;  %3251 = vtanh.f32 %v1338_v1 }
 0x2cd   :  { %v1390_v23 = vadd.f32 %v3238_v8, %v1389_v25  ;;  %v3244_v33 = vpop.eup %3243 }
 0x2ce   :  { %v1356_v5 = vsel %vm1355_vm4, %v3236_v38, %v1352_v44  ;;  %v4084_v34 = vpop.eup %3245  ;;  %v1364_v12 = vmul.f32 %v3244_v33, %v4077_v11  ;;  %vm1369_vm8 = vweird.f32 %v3244_v33 }
 0x2cf   :  { %v1361_v31 = vsel %vm1358_vm6, %v1360_v43, %v1356_v5  ;;  %v1394_v50 = vsel %vm1393_vm5, %v3238_v8, %v1390_v23  ;;  %v1427_v38 = vmul.f32 %v4084_v34, %v4075_v20  ;;  %vm1370_vm12 = vmor %vm1368_vm9, %vm1369_vm8  ;;  %v1375_v43 = vor.u32 1.1754944e-38, %v1374_v0 }
 0x2d0   :  { %v3248_v53 = vpop.eup %3247  ;;  %v1399_v51 = vsel %vm1396_vm7, %v1398_v6, %v1394_v50  ;;  %v1460_v32 = vmul.f32 %v3242_v58, %v1361_v31  ;;  %v1365_v15 = vsub.f32 1.0, %v1364_v12  ;;  %v1412_v50 = vand.u32 2147483648, %v4080_v39 }
 0x2d1   :  { %v1458_v19 = vmul.f32 %v1399_v51, %v4013_v56  ;;  %v1402_v25 = vmul.f32 %v3248_v53, %v4080_v39  ;;  %v3250_v46 = vpop.eup %3249  ;;  %vm1407_vm10 = vweird.f32 %v3248_v53  ;;  %v1410_v58 = vand.u32 2147483647, %v4080_v39 }
 0x2d2   :  { %v1366_v36 = vmul.f32 %v3244_v33, %v1365_v15  ;;  %v1425_v56 = vadd.f32 1.0, %v3250_v46  ;;  %v1428_v23 = vsub.f32 1.0, %v1427_v38  ;;  %v3252_v1 = vpop.eup %3251  ;;  %vm1408_vm14 = vmor %vm1406_vm11, %vm1407_vm10  ;;  %v1413_v31 = vor.u32 1.1754944e-38, %v1412_v50 }
 0x2d3   :  { %v4093_v8 = vadd.f32 %v1460_v32, %v1458_v19  ;;  %v1403_v7 = vsub.f32 1.0, %v1402_v25  ;;  %vm1411_vm15 = vcmp.eq.f32.partialorder %v1410_v58, 8.507059e+37  ;;  %vm1432_vm0 = vweird.f32 %v4084_v34 }
 0x2d4   :  { %v1367_v57 = vadd.f32 %v3244_v33, %v1366_v36  ;;  %3253 = vrcp.f32 %v1425_v56  ;;  %v1429_v32 = vmul.f32 %v4084_v34, %v1428_v23  ;;  %v1437_v38 = vand.u32 2147483648, %v4075_v20  ;;  %vm1433_vm3 = vmor %vm1431_vm1, %vm1432_vm0 }
 0x2d5   :  { %v1404_v44 = vmul.f32 %v3248_v53, %v1403_v7  ;;  %3255 = vtanh.f32 %v4093_v8  ;;  %v1452_v28 = vand.u32 2147483648, %v1425_v56  ;;  %v1450_v7 = vand.u32 2147483647, %v1425_v56 }
 0x2d6   :  { %v1371_v6 = vsel %vm1370_vm12, %v3244_v33, %v1367_v57  ;;  %v1430_v33 = vadd.f32 %v4084_v34, %v1429_v32  ;;  %vm1446_vm4 = vweird.f32 %v1425_v56  ;;  %v1438_v57 = vor.u32 1.1754944e-38, %v1437_v38  ;;  %v4527_v32 = vld [vmem:[#allocation32_spill] sm:$0xff] }
 0x2d7   :  { %v1405_v5 = vadd.f32 %v3248_v53, %v1404_v44  ;;  %v1376_v12 = vsel %vm1373_vm13, %v1375_v43, %v1371_v6  ;;  %v1453_v58 = vor.u32 1.1754944e-38, %v1452_v28  ;;  %vm1451_vm7 = vcmp.eq.f32.partialorder %v1450_v7, 8.507059e+37  ;;  %v4528_v7 = vld [vmem:[#allocation35_spill] sm:$0xff] }
 0x2d8   :  { %v1461_v46 = vmul.f32 %v3252_v1, %v1376_v12  ;;  %v1434_v36 = vsel %vm1433_vm3, %v4084_v34, %v1430_v33  ;;  %v4524_v34 = vld [vmem:[#allocation33_spill] sm:$0xff] }
 0x2d9   :  { %v1409_v11 = vsel %vm1408_vm14, %v3248_v53, %v1405_v5 }
 0x2da   :  { %v1414_v51 = vsel %vm1411_vm15, %v1413_v31, %v1409_v11  ;;  %v3254_v39 = vpop.eup %3253  ;;  %v4525_v11 = vld [vmem:[#allocation18_spill] sm:$0xff] }
 0x2db   :  { %v1459_v19 = vmul.f32 %v1414_v51, %v4021_v21  ;;  %v1442_v25 = vmul.f32 %v3254_v39, %v1425_v56  ;;  %v1435_v21 = vand.u32 2147483647, %v4075_v20  ;;  %vm1447_vm2 = vweird.f32 %v3254_v39  ;;  %v3256_v44 = vpop.eup %3255 }
 0x2dc   :  { %vm1448_vm5 = vmor %vm1446_vm4, %vm1447_vm2  ;;  %v381_v56 = vadd.f32 %v4524_v34, %v3724_v29 }
 0x2dd   :  { %v4101_v15 = vadd.f32 %v1461_v46, %v1459_v19  ;;  %v1443_v53 = vsub.f32 1.0, %v1442_v25  ;;  %vm1436_vm6 = vcmp.eq.f32.partialorder %v1435_v21, 8.507059e+37  ;;  %v4526_v46 = vld [vmem:[#allocation34_spill] sm:$0xff]  ;;  %v1548_v19 = vunpack.c.l.bf16 %v4527_v32 }
 0x2de   :  { %v1439_v6 = vsel %vm1436_vm6, %v1438_v57, %v1434_v36  ;;  %v430_v51 = vadd.f32 %v4526_v46, %v4525_v11  ;;  %v1551_v36 = vunpack.c.h.bf16 %v4528_v7 }
 0x2df   :  { %3257 = vtanh.f32 %v4101_v15  ;;  %v1444_v0 = vmul.f32 %v3254_v39, %v1443_v53  ;;  %v1466_v1 = vmul.f32 %v3256_v44, %v1439_v6  ;;  %v4530_v6 = vld [vmem:[#allocation36_spill] sm:$0xff] }
 0x2e0   :  { %v564_v28 = vpack.c.bf16 %v430_v51, %v381_v56 }
 0x2e1   :  { %v1445_v50 = vadd.f32 %v3254_v39, %v1444_v0 }
 0x2e2   :  { %v1552_v29 = vunpack.c.l.bf16 %v564_v28  ;;  %v1553_v44 = vunpack.c.h.bf16 %v564_v28 }
 0x2e3   :  { %v1449_v23 = vsel %vm1448_vm5, %v3254_v39, %v1445_v50  ;;  %v1549_v39 = vunpack.c.h.bf16 %v4527_v32 }
 0x2e4   :  { %v1454_v5 = vsel %vm1451_vm7, %v1453_v58, %v1449_v23  ;;  %v4529_v23 = vld [vmem:[#allocation19_spill] sm:$0xff] }
 0x2e5   :  { %v3258_v43 = vpop.eup %3257 }
 0x2e6   :  { %v1467_v20 = vmul.f32 %v3258_v43, %v1454_v5  ;;  %v479_v5 = vadd.f32 %v4530_v6, %v4529_v23 }
 0x2e8   :  { %v3096_v31 = vpack.c.bf16 %v1467_v20, %v1466_v1  ;;  %v4531_v1 = vld [vmem:[#allocation20_spill] sm:$0xff]  ;;  %v4532_v20 = vld [vmem:[#allocation37_spill] sm:$0xff] }
 0x2ea   :  { %3102 = vst [vmem:[#allocation13 + $0x10] sm:$0xff] %v3096_v31  }
 0x2eb   :  { %3097 = vst [vmem:[#allocation2] sm:$0xff] %v3096_v31   ;;  %v528_v31 = vadd.f32 %v4532_v20, %v4531_v1 }
 0x2f2   :  { %v3068_v12 = vld [vmem:[#allocation2] sm:$0xff] }
 0x2f3   :  { %1500 = vmatmul.bf16.vlgmr.msra.gmra.mxu0 %v3068_v12  ;;  %1514 = vmatmul.bf16.vlgmr.msra.gmra.mxu1 %v3068_v12 }
 0x2f4   :  { %1528 = vmatmul.bf16.vlgmr.msra.gmra.mxu2 %v3068_v12  ;;  %1542 = vmatmul.bf16.vlgmr.msra.gmra.mxu3 %v3068_v12 }
 0x2f5   :  { %1940 = vmatpush.bf16.msra.mxu0 %v3597_v37  ;;  %1954 = vmatpush.bf16.msra.mxu1 %v3599_v41 }
 0x2f6   :  { %1968 = vmatpush.bf16.msra.mxu2 %v3601_v47  ;;  %1982 = vmatpush.bf16.msra.mxu3 %v3604_v48 }
 0x2f9   :  { %1941 = vmatpush.bf16.msra.mxu0 %v3606_v49  ;;  %1955 = vmatpush.bf16.msra.mxu1 %v3609_v52 }
 0x2fa   :  { %1969 = vmatpush.bf16.msra.mxu2 %v3612_v55  ;;  %1983 = vmatpush.bf16.msra.mxu3 %v3616_v59 }
 0x2fd   :  { %1942 = vmatpush.bf16.msra.mxu0 %v3618_v60  ;;  %1956 = vmatpush.bf16.msra.mxu1 %v3621_v63 }
 0x2fe   :  { %1970 = vmatpush.bf16.msra.mxu2 %v3624_v3  ;;  %1984 = vmatpush.bf16.msra.mxu3 %v3628_v4 }
 0x301   :  { %1943 = vmatpush.bf16.msra.mxu0 %v3633_v9  ;;  %1957 = vmatpush.bf16.msra.mxu1 %v3635_v13 }
 0x302   :  { %1971 = vmatpush.bf16.msra.mxu2 %v3640_v17  ;;  %1985 = vmatpush.bf16.msra.mxu3 %v3637_v14 }
 0x305   :  { %1944 = vmatpush.bf16.msra.mxu0 %v3645_v22  ;;  %1958 = vmatpush.bf16.msra.mxu1 %v3647_v26 }
 0x306   :  { %1972 = vmatpush.bf16.msra.mxu2 %v3652_v30  ;;  %1986 = vmatpush.bf16.msra.mxu3 %v3649_v27 }
 0x309   :  { %1945 = vmatpush.bf16.msra.mxu0 %v3657_v35  ;;  %1959 = vmatpush.bf16.msra.mxu1 %v3659_v40 }
 0x30a   :  { %1973 = vmatpush.bf16.msra.mxu2 %v3664_v45  ;;  %1987 = vmatpush.bf16.msra.mxu3 %v3661_v42 }
 0x30d   :  { %1946 = vmatpush.bf16.msra.mxu0 %v3669_v54  ;;  %1960 = vmatpush.bf16.msra.mxu1 %v3671_v61 }
 0x30e   :  { %1974 = vmatpush.bf16.msra.mxu2 %v3676_v2  ;;  %1988 = vmatpush.bf16.msra.mxu3 %v3673_v62 }
 0x311   :  { %1947 = vmatpush.bf16.msra.mxu0 %v3681_v10  ;;  %1961 = vmatpush.bf16.msra.mxu1 %v3683_v16 }
 0x312   :  { %1975 = vmatpush.bf16.msra.mxu2 %v3696_v24  ;;  %1989 = vmatpush.bf16.msra.mxu3 %v3685_v18 }
 0x370   :  { %v1501_v25 = vpop.f32.mrf.mxu0  ;;  %v1515_v33 = vpop.f32.mrf.mxu1 }
 0x371   :  { %v1556_v53 = vadd.f32 %v1548_v19, %v1501_v25  ;;  %v1557_v38 = vadd.f32 %v1549_v39, %v1515_v33  ;;  %v565_v39 = vpack.c.bf16 %v528_v31, %v479_v5 }
 0x373   :  { %v2947_v21 = vmul.f32 -1.442695, %v1556_v53  ;;  %v2949_v0 = vmul.f32 -1.442695, %v1557_v38  ;;  %v1550_v53 = vunpack.c.l.bf16 %v4528_v7  ;;  %v1555_v28 = vunpack.c.h.bf16 %v565_v39 }
 0x375   :  { %3259 = vpow2.f32 %v2947_v21 }
 0x376   :  { %3261 = vpow2.f32 %v2949_v0 }
 0x377   :  { %v1543_v50 = vpop.f32.mrf.mxu3  ;;  %v1529_v33 = vpop.f32.mrf.mxu2 }
 0x378   :  { %v1559_v57 = vadd.f32 %v1551_v36, %v1543_v50  ;;  %v1503_v58 = vpop.f32.mrf.mxu0  ;;  %v1517_v43 = vpop.f32.mrf.mxu1  ;;  %v1558_v0 = vadd.f32 %v1550_v53, %v1529_v33  ;;  %v1554_v33 = vunpack.c.l.bf16 %v565_v39 }
 0x379   :  { %v1560_v12 = vadd.f32 %v1552_v29, %v1503_v58  ;;  %v1561_v34 = vadd.f32 %v1553_v44, %v1517_v43 }
 0x37a   :  { %v2951_v56 = vmul.f32 -1.442695, %v1559_v57 }
 0x37b   :  { %v3260_v11 = vpop.eup %3259  ;;  %v2948_v46 = vmul.f32 -1.442695, %v1560_v12  ;;  %v2950_v19 = vmul.f32 -1.442695, %v1561_v34 }
 0x37c   :  { %v3262_v51 = vpop.eup %3261  ;;  %v1570_v32 = vadd.f32 1.0, %v3260_v11  ;;  %3263 = vpow2.f32 %v2951_v56 }
 0x37d   :  { %v1608_v25 = vadd.f32 1.0, %v3262_v51  ;;  %3265 = vpow2.f32 %v2948_v46 }
 0x37e   :  { %3267 = vrcp.f32 %v1570_v32  ;;  %v1581_v31 = vand.u32 2147483647, %v1570_v32  ;;  %v1583_v12 = vand.u32 2147483648, %v1570_v32  ;;  %vm1577_vm10 = vweird.f32 %v1570_v32 }
 0x37f   :  { %3269 = vrcp.f32 %v1608_v25  ;;  %v1545_v38 = vpop.f32.mrf.mxu3  ;;  %v1621_v34 = vand.u32 2147483648, %v1608_v25  ;;  %v1619_v46 = vand.u32 2147483647, %v1608_v25  ;;  %v1531_v51 = vpop.f32.mrf.mxu2  ;;  %vm1615_vm11 = vweird.f32 %v1608_v25 }
 0x380   :  { %3271 = vpow2.f32 %v2950_v19  ;;  %v1563_v50 = vadd.f32 %v1555_v28, %v1545_v38  ;;  %v1584_v38 = vor.u32 1.1754944e-38, %v1583_v12  ;;  %vm1582_vm14 = vcmp.eq.f32.partialorder %v1581_v31, 8.507059e+37 }
 0x381   :  { %3273 = vtanh.f32 %v1558_v0  ;;  %v1622_v0 = vor.u32 1.1754944e-38, %v1621_v34  ;;  %vm1620_vm15 = vcmp.eq.f32.partialorder %v1619_v46, 8.507059e+37 }
 0x382   :  { %v3264_v21 = vpop.eup %3263  ;;  %v2952_v1 = vmul.f32 -1.442695, %v1563_v50  ;;  %v1562_v50 = vadd.f32 %v1554_v33, %v1531_v51 }
 0x383   :  { %v3266_v36 = vpop.eup %3265  ;;  %v4155_v44 = vadd.f32 1.0, %v3264_v21 }
 0x384   :  { %v3268_v29 = vpop.eup %3267  ;;  %v4157_v57 = vadd.f32 1.0, %v3266_v36 }
 0x385   :  { %v3270_v58 = vpop.eup %3269  ;;  %v1573_v43 = vmul.f32 %v3268_v29, %v1570_v32  ;;  %vm1578_vm8 = vweird.f32 %v3268_v29 }
 0x386   :  { %v3272_v23 = vpop.eup %3271  ;;  %v1611_v6 = vmul.f32 %v3270_v58, %v1608_v25  ;;  %3275 = vrcp.f32 %v4157_v57  ;;  %vm1616_vm9 = vweird.f32 %v3270_v58  ;;  %vm1579_vm12 = vmor %vm1577_vm10, %vm1578_vm8  ;;  %v1596_v31 = vand.u32 2147483647, %v4157_v57 }
 0x387   :  { %v1574_v5 = vsub.f32 1.0, %v1573_v43  ;;  %v4160_v7 = vadd.f32 1.0, %v3272_v23  ;;  %3277 = vrcp.f32 %v4155_v44  ;;  %v3274_v53 = vpop.eup %3273  ;;  %vm1617_vm13 = vmor %vm1615_vm11, %vm1616_vm9  ;;  %v1598_v34 = vand.u32 2147483648, %v4157_v57 }
 0x388   :  { %v1612_v20 = vsub.f32 1.0, %v1611_v6  ;;  %vm1592_vm1 = vweird.f32 %v4157_v57  ;;  %vm1597_vm5 = vcmp.eq.f32.partialorder %v1596_v31, 8.507059e+37  ;;  %vm1655_vm9 = vweird.f32 %v4155_v44 }
 0x389   :  { %v1575_v56 = vmul.f32 %v3268_v29, %v1574_v5  ;;  %3279 = vrcp.f32 %v4160_v7  ;;  %v1636_v51 = vand.u32 2147483648, %v4160_v7  ;;  %vm1630_vm3 = vweird.f32 %v4160_v7 }
 0x38a   :  { %v1613_v11 = vmul.f32 %v3270_v58, %v1612_v20  ;;  %3281 = vpow2.f32 %v2952_v1 }
 0x38b   :  { %v1576_v19 = vadd.f32 %v3268_v29, %v1575_v56  ;;  %3283 = vtanh.f32 %v1562_v50 }
 0x38c   :  { %v1614_v28 = vadd.f32 %v3270_v58, %v1613_v11  ;;  %v3276_v21 = vpop.eup %3275 }
 0x38d   :  { %v1580_v36 = vsel %vm1579_vm12, %v3268_v29, %v1576_v19  ;;  %v4164_v43 = vpop.eup %3277  ;;  %v1588_v32 = vmul.f32 %v3276_v21, %v4157_v57  ;;  %vm1593_vm0 = vweird.f32 %v3276_v21 }
 0x38e   :  { %v1585_v23 = vsel %vm1582_vm14, %v1584_v38, %v1580_v36  ;;  %v1618_v6 = vsel %vm1617_vm13, %v3270_v58, %v1614_v28  ;;  %v1651_v29 = vmul.f32 %v4164_v43, %v4155_v44  ;;  %vm1594_vm4 = vmor %vm1592_vm1, %vm1593_vm0  ;;  %v1599_v38 = vor.u32 1.1754944e-38, %v1598_v34 }
 0x38f   :  { %v3280_v39 = vpop.eup %3279  ;;  %v1623_v5 = vsel %vm1620_vm15, %v1622_v0, %v1618_v6  ;;  %v1684_v1 = vmul.f32 %v3274_v53, %v1585_v23  ;;  %v1589_v20 = vsub.f32 1.0, %v1588_v32  ;;  %v1634_v53 = vand.u32 2147483647, %v4160_v7 }
 0x390   :  { %v1682_v25 = vmul.f32 %v1623_v5, %v4093_v8  ;;  %v1626_v12 = vmul.f32 %v3280_v39, %v4160_v7  ;;  %v3282_v56 = vpop.eup %3281  ;;  %vm1631_vm2 = vweird.f32 %v3280_v39  ;;  %v1652_v28 = vsub.f32 1.0, %v1651_v29 }
 0x391   :  { %v1590_v46 = vmul.f32 %v3276_v21, %v1589_v20  ;;  %v1649_v8 = vadd.f32 1.0, %v3282_v56  ;;  %v3284_v50 = vpop.eup %3283  ;;  %vm1632_vm6 = vmor %vm1630_vm3, %vm1631_vm2  ;;  %v1637_v23 = vor.u32 1.1754944e-38, %v1636_v51  ;;  %vm1635_vm7 = vcmp.eq.f32.partialorder %v1634_v53, 8.507059e+37 }
 0x392   :  { %v4173_v58 = vadd.f32 %v1684_v1, %v1682_v25  ;;  %v1627_v11 = vsub.f32 1.0, %v1626_v12  ;;  %v1653_v1 = vmul.f32 %v4164_v43, %v1652_v28  ;;  %vm1656_vm8 = vweird.f32 %v4164_v43 }
 0x393   :  { %v1591_v33 = vadd.f32 %v3276_v21, %v1590_v46  ;;  %3285 = vrcp.f32 %v1649_v8  ;;  %v1661_v56 = vand.u32 2147483648, %v4155_v44  ;;  %v1676_v29 = vand.u32 2147483648, %v1649_v8  ;;  %vm1657_vm11 = vmor %vm1655_vm9, %vm1656_vm8 }
 0x394   :  { %v1628_v19 = vmul.f32 %v3280_v39, %v1627_v11  ;;  %3287 = vtanh.f32 %v4173_v58  ;;  %v1674_v34 = vand.u32 2147483647, %v1649_v8  ;;  %vm1670_vm12 = vweird.f32 %v1649_v8 }
 0x395   :  { %v1595_v0 = vsel %vm1594_vm4, %v3276_v21, %v1591_v33  ;;  %v1654_v21 = vadd.f32 %v4164_v43, %v1653_v1  ;;  %v1677_v33 = vor.u32 1.1754944e-38, %v1676_v29 }
 0x396   :  { %v1629_v36 = vadd.f32 %v3280_v39, %v1628_v19  ;;  %v1600_v6 = vsel %vm1597_vm5, %v1599_v38, %v1595_v0  ;;  %v1662_v19 = vor.u32 1.1754944e-38, %v1661_v56  ;;  %vm1675_vm15 = vcmp.eq.f32.partialorder %v1674_v34, 8.507059e+37  ;;  %v4535_v56 = vld [vmem:[#allocation40_spill] sm:$0xff] }
 0x397   :  { %v1685_v32 = vmul.f32 %v3284_v50, %v1600_v6  ;;  %v1658_v11 = vsel %vm1657_vm11, %v4164_v43, %v1654_v21  ;;  %v4533_v43 = vld [vmem:[#allocation38_spill] sm:$0xff]  ;;  %v1776_v29 = vunpack.c.l.bf16 %v4535_v56 }
 0x398   :  { %v1633_v57 = vsel %vm1632_vm6, %v3280_v39, %v1629_v36  ;;  %v1773_v6 = vunpack.c.h.bf16 %v4533_v43 }
 0x399   :  { %v1638_v5 = vsel %vm1635_vm7, %v1637_v23, %v1633_v57  ;;  %v3286_v7 = vpop.eup %3285 }
 0x39a   :  { %v1683_v25 = vmul.f32 %v1638_v5, %v4101_v15  ;;  %v1666_v12 = vmul.f32 %v3286_v7, %v1649_v8  ;;  %v1659_v15 = vand.u32 2147483647, %v4155_v44  ;;  %vm1671_vm10 = vweird.f32 %v3286_v7  ;;  %v3288_v51 = vpop.eup %3287 }
 0x39b   :  { %vm1672_vm13 = vmor %vm1670_vm12, %vm1671_vm10  ;;  %v1772_v8 = vunpack.c.l.bf16 %v4533_v43  ;;  %v4536_v43 = vld [vmem:[#allocation41_spill] sm:$0xff] }
 0x39c   :  { %v4181_v20 = vadd.f32 %v1685_v32, %v1683_v25  ;;  %v1667_v39 = vsub.f32 1.0, %v1666_v12  ;;  %vm1660_vm14 = vcmp.eq.f32.partialorder %v1659_v15, 8.507059e+37  ;;  %v4534_v12 = vld [vmem:[#allocation39_spill] sm:$0xff]  ;;  %v1777_v15 = vunpack.c.h.bf16 %v4535_v56 }
 0x39d   :  { %v1663_v28 = vsel %vm1660_vm14, %v1662_v19, %v1658_v11  ;;  %v1775_v21 = vunpack.c.h.bf16 %v4534_v12 }
 0x39e   :  { %3289 = vtanh.f32 %v4181_v20  ;;  %v1668_v31 = vmul.f32 %v3286_v7, %v1667_v39  ;;  %v1690_v36 = vmul.f32 %v3288_v51, %v1663_v28 }
 0x3a0   :  { %v1669_v46 = vadd.f32 %v3286_v7, %v1668_v31 }
 0x3a2   :  { %v1673_v38 = vsel %vm1672_vm13, %v3286_v7, %v1669_v46 }
 0x3a3   :  { %v1678_v0 = vsel %vm1675_vm15, %v1677_v33, %v1673_v38 }
 0x3a4   :  { %v3290_v53 = vpop.eup %3289 }
 0x3a5   :  { %v1691_v44 = vmul.f32 %v3290_v53, %v1678_v0 }
 0x3a7   :  { %v3106_v50 = vpack.c.bf16 %v1691_v44, %v1690_v36 }
 0x3a9   :  { %3112 = vst [vmem:[#allocation13 + $0x18] sm:$0xff] %v3106_v50  }
 0x3aa   :  { %3107 = vst [vmem:[#allocation2] sm:$0xff] %v3106_v50   ;;  %v1774_v50 = vunpack.c.l.bf16 %v4534_v12 }
 0x3b1   :  { %v3069_v23 = vld [vmem:[#allocation2] sm:$0xff] }
 0x3b2   :  { %1724 = vmatmul.bf16.vlgmr.msrb.gmra.mxu0 %v3069_v23  ;;  %1738 = vmatmul.bf16.vlgmr.msrb.gmra.mxu1 %v3069_v23 }
 0x3b3   :  { %1752 = vmatmul.bf16.vlgmr.msrb.gmra.mxu2 %v3069_v23  ;;  %1766 = vmatmul.bf16.vlgmr.msrb.gmra.mxu3 %v3069_v23 }
 0x3b4   :  { %2164 = vmatpush.bf16.msrb.mxu0 %v3597_v37  ;;  %2178 = vmatpush.bf16.msrb.mxu1 %v3599_v41 }
 0x3b5   :  { %2192 = vmatpush.bf16.msrb.mxu2 %v3601_v47  ;;  %2206 = vmatpush.bf16.msrb.mxu3 %v3604_v48 }
 0x3b8   :  { %2165 = vmatpush.bf16.msrb.mxu0 %v3606_v49  ;;  %2179 = vmatpush.bf16.msrb.mxu1 %v3609_v52 }
 0x3b9   :  { %2193 = vmatpush.bf16.msrb.mxu2 %v3612_v55  ;;  %2207 = vmatpush.bf16.msrb.mxu3 %v3616_v59 }
 0x3bc   :  { %2166 = vmatpush.bf16.msrb.mxu0 %v3618_v60  ;;  %2180 = vmatpush.bf16.msrb.mxu1 %v3621_v63 }
 0x3bd   :  { %2194 = vmatpush.bf16.msrb.mxu2 %v3624_v3  ;;  %2208 = vmatpush.bf16.msrb.mxu3 %v3628_v4 }
 0x3c0   :  { %2167 = vmatpush.bf16.msrb.mxu0 %v3633_v9  ;;  %2181 = vmatpush.bf16.msrb.mxu1 %v3635_v13 }
 0x3c1   :  { %2195 = vmatpush.bf16.msrb.mxu2 %v3640_v17  ;;  %2209 = vmatpush.bf16.msrb.mxu3 %v3637_v14 }
 0x3c4   :  { %2168 = vmatpush.bf16.msrb.mxu0 %v3645_v22  ;;  %2182 = vmatpush.bf16.msrb.mxu1 %v3647_v26 }
 0x3c5   :  { %2196 = vmatpush.bf16.msrb.mxu2 %v3652_v30  ;;  %2210 = vmatpush.bf16.msrb.mxu3 %v3649_v27 }
 0x3c8   :  { %2169 = vmatpush.bf16.msrb.mxu0 %v3657_v35  ;;  %2183 = vmatpush.bf16.msrb.mxu1 %v3659_v40 }
 0x3c9   :  { %2197 = vmatpush.bf16.msrb.mxu2 %v3664_v45  ;;  %2211 = vmatpush.bf16.msrb.mxu3 %v3661_v42 }
 0x3cc   :  { %2170 = vmatpush.bf16.msrb.mxu0 %v3669_v54  ;;  %2184 = vmatpush.bf16.msrb.mxu1 %v3671_v61 }
 0x3cd   :  { %2198 = vmatpush.bf16.msrb.mxu2 %v3676_v2  ;;  %2212 = vmatpush.bf16.msrb.mxu3 %v3673_v62 }
 0x3d0   :  { %2171 = vmatpush.bf16.msrb.mxu0 %v3681_v10  ;;  %2185 = vmatpush.bf16.msrb.mxu1 %v3683_v16 }
 0x3d1   :  { %2199 = vmatpush.bf16.msrb.mxu2 %v3696_v24  ;;  %2213 = vmatpush.bf16.msrb.mxu3 %v3685_v18 }
 0x42f   :  { %v1725_v57 = vpop.f32.mrf.mxu0  ;;  %v1739_v32 = vpop.f32.mrf.mxu1 }
 0x430   :  { %v1780_v5 = vadd.f32 %v1772_v8, %v1725_v57  ;;  %v1781_v1 = vadd.f32 %v1773_v6, %v1739_v32  ;;  %v1779_v8 = vunpack.c.h.bf16 %v4536_v43 }
 0x432   :  { %v2957_v25 = vmul.f32 -1.442695, %v1780_v5  ;;  %v2959_v7 = vmul.f32 -1.442695, %v1781_v1 }
 0x434   :  { %3291 = vpow2.f32 %v2957_v25 }
 0x435   :  { %3293 = vpow2.f32 %v2959_v7 }
 0x436   :  { %v1767_v39 = vpop.f32.mrf.mxu3  ;;  %v1753_v44 = vpop.f32.mrf.mxu2 }
 0x437   :  { %v1783_v31 = vadd.f32 %v1775_v21, %v1767_v39  ;;  %v1727_v34 = vpop.f32.mrf.mxu0  ;;  %v1741_v11 = vpop.f32.mrf.mxu1  ;;  %v1782_v57 = vadd.f32 %v1774_v50, %v1753_v44  ;;  %v1778_v44 = vunpack.c.l.bf16 %v4536_v43 }
 0x438   :  { %v1784_v46 = vadd.f32 %v1776_v29, %v1727_v34  ;;  %v1785_v51 = vadd.f32 %v1777_v15, %v1741_v11 }
 0x439   :  { %v2961_v19 = vmul.f32 -1.442695, %v1783_v31 }
 0x43a   :  { %v3292_v33 = vpop.eup %3291  ;;  %v2958_v53 = vmul.f32 -1.442695, %v1784_v46  ;;  %v2960_v0 = vmul.f32 -1.442695, %v1785_v51 }
 0x43b   :  { %v3294_v38 = vpop.eup %3293  ;;  %v1794_v28 = vadd.f32 1.0, %v3292_v33  ;;  %3295 = vpow2.f32 %v2961_v19 }
 0x43c   :  { %v1832_v36 = vadd.f32 1.0, %v3294_v38  ;;  %3297 = vpow2.f32 %v2958_v53 }
 0x43d   :  { %3299 = vrcp.f32 %v1794_v28  ;;  %v1805_v11 = vand.u32 2147483647, %v1794_v28  ;;  %v1807_v46 = vand.u32 2147483648, %v1794_v28  ;;  %vm1801_vm2 = vweird.f32 %v1794_v28 }
 0x43e   :  { %3301 = vrcp.f32 %v1832_v36  ;;  %v1769_v23 = vpop.f32.mrf.mxu3  ;;  %v1845_v51 = vand.u32 2147483648, %v1832_v36  ;;  %v1843_v53 = vand.u32 2147483647, %v1832_v36  ;;  %v1755_v38 = vpop.f32.mrf.mxu2  ;;  %vm1839_vm3 = vweird.f32 %v1832_v36 }
 0x43f   :  { %3303 = vpow2.f32 %v2960_v0  ;;  %v1787_v5 = vadd.f32 %v1779_v8, %v1769_v23  ;;  %v1808_v23 = vor.u32 1.1754944e-38, %v1807_v46  ;;  %vm1806_vm6 = vcmp.eq.f32.partialorder %v1805_v11, 8.507059e+37 }
 0x440   :  { %3305 = vtanh.f32 %v1782_v57  ;;  %v1846_v57 = vor.u32 1.1754944e-38, %v1845_v51  ;;  %vm1844_vm7 = vcmp.eq.f32.partialorder %v1843_v53, 8.507059e+37 }
 0x441   :  { %v3296_v6 = vpop.eup %3295  ;;  %v2962_v31 = vmul.f32 -1.442695, %v1787_v5  ;;  %v1786_v5 = vadd.f32 %v1778_v44, %v1755_v38 }
 0x442   :  { %v3298_v32 = vpop.eup %3297  ;;  %v4230_v25 = vadd.f32 1.0, %v3296_v6 }
 0x443   :  { %v3300_v1 = vpop.eup %3299  ;;  %v4232_v7 = vadd.f32 1.0, %v3298_v32 }
 0x444   :  { %v3302_v21 = vpop.eup %3301  ;;  %v1797_v39 = vmul.f32 %v3300_v1, %v1794_v28  ;;  %vm1802_vm0 = vweird.f32 %v3300_v1 }
 0x445   :  { %v3304_v56 = vpop.eup %3303  ;;  %v1835_v29 = vmul.f32 %v3302_v21, %v1832_v36  ;;  %3307 = vrcp.f32 %v4232_v7  ;;  %vm1840_vm1 = vweird.f32 %v3302_v21  ;;  %vm1803_vm4 = vmor %vm1801_vm2, %vm1802_vm0  ;;  %v1820_v11 = vand.u32 2147483647, %v4232_v7 }
 0x446   :  { %v1798_v15 = vsub.f32 1.0, %v1797_v39  ;;  %v4235_v12 = vadd.f32 1.0, %v3304_v56  ;;  %3309 = vrcp.f32 %v4230_v25  ;;  %v3306_v50 = vpop.eup %3305  ;;  %vm1841_vm5 = vmor %vm1839_vm3, %vm1840_vm1  ;;  %v1822_v51 = vand.u32 2147483648, %v4232_v7 }
 0x447   :  { %v1836_v34 = vsub.f32 1.0, %v1835_v29  ;;  %vm1816_vm9 = vweird.f32 %v4232_v7  ;;  %vm1821_vm13 = vcmp.eq.f32.partialorder %v1820_v11, 8.507059e+37  ;;  %vm1879_vm1 = vweird.f32 %v4230_v25 }
 0x448   :  { %v1799_v19 = vmul.f32 %v3300_v1, %v1798_v15  ;;  %3311 = vrcp.f32 %v4235_v12  ;;  %v1860_v38 = vand.u32 2147483648, %v4235_v12  ;;  %vm1854_vm11 = vweird.f32 %v4235_v12 }
 0x449   :  { %v1837_v33 = vmul.f32 %v3302_v21, %v1836_v34  ;;  %3313 = vpow2.f32 %v2962_v31 }
 0x44a   :  { %v1800_v0 = vadd.f32 %v3300_v1, %v1799_v19  ;;  %3315 = vtanh.f32 %v1786_v5 }
 0x44b   :  { %v1838_v8 = vadd.f32 %v3302_v21, %v1837_v33  ;;  %v3308_v6 = vpop.eup %3307 }
 0x44c   :  { %v1804_v32 = vsel %vm1803_vm4, %v3300_v1, %v1800_v0  ;;  %v4240_v39 = vpop.eup %3309  ;;  %v1812_v28 = vmul.f32 %v3308_v6, %v4232_v7  ;;  %vm1817_vm8 = vweird.f32 %v3308_v6 }
 0x44d   :  { %v1809_v56 = vsel %vm1806_vm6, %v1808_v23, %v1804_v32  ;;  %v1842_v29 = vsel %vm1841_vm5, %v3302_v21, %v1838_v8  ;;  %v1875_v1 = vmul.f32 %v4240_v39, %v4230_v25  ;;  %vm1818_vm12 = vmor %vm1816_vm9, %vm1817_vm8  ;;  %v1823_v23 = vor.u32 1.1754944e-38, %v1822_v51 }
 0x44e   :  { %v3312_v43 = vpop.eup %3311  ;;  %v1847_v15 = vsel %vm1844_vm7, %v1846_v57, %v1842_v29  ;;  %v1908_v31 = vmul.f32 %v3306_v50, %v1809_v56  ;;  %v1813_v34 = vsub.f32 1.0, %v1812_v28  ;;  %v1858_v50 = vand.u32 2147483647, %v4235_v12 }
 0x44f   :  { %v1906_v36 = vmul.f32 %v1847_v15, %v4173_v58  ;;  %v1850_v46 = vmul.f32 %v3312_v43, %v4235_v12  ;;  %v3314_v19 = vpop.eup %3313  ;;  %vm1855_vm10 = vweird.f32 %v3312_v43  ;;  %v1876_v8 = vsub.f32 1.0, %v1875_v1 }
 0x450   :  { %v1814_v53 = vmul.f32 %v3308_v6, %v1813_v34  ;;  %v1873_v58 = vadd.f32 1.0, %v3314_v19  ;;  %v3316_v5 = vpop.eup %3315  ;;  %vm1856_vm14 = vmor %vm1854_vm11, %vm1855_vm10  ;;  %v1861_v56 = vor.u32 1.1754944e-38, %v1860_v38  ;;  %vm1859_vm15 = vcmp.eq.f32.partialorder %v1858_v50, 8.507059e+37 }
 0x451   :  { %v4249_v21 = vadd.f32 %v1908_v31, %v1906_v36  ;;  %v1851_v33 = vsub.f32 1.0, %v1850_v46  ;;  %v1877_v31 = vmul.f32 %v4240_v39, %v1876_v8  ;;  %vm1880_vm0 = vweird.f32 %v4240_v39 }
 0x452   :  { %v1815_v44 = vadd.f32 %v3308_v6, %v1814_v53  ;;  %3317 = vrcp.f32 %v1873_v58  ;;  %v1885_v19 = vand.u32 2147483648, %v4230_v25  ;;  %v1900_v1 = vand.u32 2147483648, %v1873_v58  ;;  %vm1881_vm3 = vmor %vm1879_vm1, %vm1880_vm0 }
 0x453   :  { %v1852_v0 = vmul.f32 %v3312_v43, %v1851_v33  ;;  %3319 = vtanh.f32 %v4249_v21  ;;  %v1898_v51 = vand.u32 2147483647, %v1873_v58  ;;  %vm1894_vm4 = vweird.f32 %v1873_v58 }
 0x454   :  { %v1819_v57 = vsel %vm1818_vm12, %v3308_v6, %v1815_v44  ;;  %v1878_v6 = vadd.f32 %v4240_v39, %v1877_v31  ;;  %v1901_v44 = vor.u32 1.1754944e-38, %v1900_v1 }
 0x455   :  { %v1853_v32 = vadd.f32 %v3312_v43, %v1852_v0  ;;  %v1824_v29 = vsel %vm1821_vm13, %v1823_v23, %v1819_v57  ;;  %v1886_v0 = vor.u32 1.1754944e-38, %v1885_v19  ;;  %vm1899_vm7 = vcmp.eq.f32.partialorder %v1898_v51, 8.507059e+37 }
 0x456   :  { %v1909_v28 = vmul.f32 %v3316_v5, %v1824_v29  ;;  %v1882_v33 = vsel %vm1881_vm3, %v4240_v39, %v1878_v6 }
 0x457   :  { %v1857_v7 = vsel %vm1856_vm14, %v3312_v43, %v1853_v32 }
 0x458   :  { %v1862_v15 = vsel %vm1859_vm15, %v1861_v56, %v1857_v7  ;;  %v3318_v12 = vpop.eup %3317 }
 0x459   :  { %v1907_v36 = vmul.f32 %v1862_v15, %v4181_v20  ;;  %v1890_v46 = vmul.f32 %v3318_v12, %v1873_v58  ;;  %v1883_v20 = vand.u32 2147483647, %v4230_v25  ;;  %vm1895_vm2 = vweird.f32 %v3318_v12  ;;  %v3320_v38 = vpop.eup %3319 }
 0x45a   :  { %vm1896_vm5 = vmor %vm1894_vm4, %vm1895_vm2 }
 0x45b   :  { %v4257_v34 = vadd.f32 %v1909_v28, %v1907_v36  ;;  %v1891_v43 = vsub.f32 1.0, %v1890_v46  ;;  %vm1884_vm6 = vcmp.eq.f32.partialorder %v1883_v20, 8.507059e+37 }
 0x45c   :  { %v1887_v8 = vsel %vm1884_vm6, %v1886_v0, %v1882_v33 }
 0x45d   :  { %3321 = vtanh.f32 %v4257_v34  ;;  %v1892_v11 = vmul.f32 %v3318_v12, %v1891_v43  ;;  %v1914_v32 = vmul.f32 %v3320_v38, %v1887_v8 }
 0x45f   :  { %v1893_v53 = vadd.f32 %v3318_v12, %v1892_v11 }
 0x461   :  { %v1897_v23 = vsel %vm1896_vm5, %v3318_v12, %v1893_v53 }
 0x462   :  { %v1902_v57 = vsel %vm1899_vm7, %v1901_v44, %v1897_v23 }
 0x463   :  { %v3322_v50 = vpop.eup %3321 }
 0x464   :  { %v1915_v25 = vmul.f32 %v3322_v50, %v1902_v57 }
 0x466   :  { %v3116_v5 = vpack.c.bf16 %v1915_v25, %v1914_v32 }
 0x468   :  { %3122 = vst [vmem:[#allocation13 + $0x20] sm:$0xff] %v3116_v5  }
 0x469   :  { %3117 = vst [vmem:[#allocation2] sm:$0xff] %v3116_v5  }
 0x470   :  { %v3070_v56 = vld [vmem:[#allocation2] sm:$0xff] }
 0x471   :  { %1948 = vmatmul.bf16.vlgmr.msra.gmra.mxu0 %v3070_v56  ;;  %1962 = vmatmul.bf16.vlgmr.msra.gmra.mxu1 %v3070_v56 }
 0x472   :  { %1976 = vmatmul.bf16.vlgmr.msra.gmra.mxu2 %v3070_v56  ;;  %1990 = vmatmul.bf16.vlgmr.msra.gmra.mxu3 %v3070_v56 }
 0x473   :  { %2388 = vmatpush.bf16.msra.mxu0 %v3597_v37  ;;  %2402 = vmatpush.bf16.msra.mxu1 %v3599_v41  ;;  %v4537_v37 = vld [vmem:[#allocation42_spill] sm:$0xff] }
 0x474   :  { %2416 = vmatpush.bf16.msra.mxu2 %v3601_v47  ;;  %2430 = vmatpush.bf16.msra.mxu3 %v3604_v48  ;;  %v1996_v41 = vunpack.c.l.bf16 %v4537_v37  ;;  %v1997_v47 = vunpack.c.h.bf16 %v4537_v37 }
 0x477   :  { %2389 = vmatpush.bf16.msra.mxu0 %v3606_v49  ;;  %2403 = vmatpush.bf16.msra.mxu1 %v3609_v52 }
 0x478   :  { %2417 = vmatpush.bf16.msra.mxu2 %v3612_v55  ;;  %2431 = vmatpush.bf16.msra.mxu3 %v3616_v59 }
 0x47b   :  { %2390 = vmatpush.bf16.msra.mxu0 %v3618_v60  ;;  %2404 = vmatpush.bf16.msra.mxu1 %v3621_v63  ;;  %v4538_v63 = vld [vmem:[#allocation43_spill] sm:$0xff] }
 0x47c   :  { %2418 = vmatpush.bf16.msra.mxu2 %v3624_v3  ;;  %2432 = vmatpush.bf16.msra.mxu3 %v3628_v4  ;;  %v1999_v3 = vunpack.c.h.bf16 %v4538_v63 }
 0x47f   :  { %2391 = vmatpush.bf16.msra.mxu0 %v3633_v9  ;;  %2405 = vmatpush.bf16.msra.mxu1 %v3635_v13  ;;  %v4539_v9 = vld [vmem:[#allocation44_spill] sm:$0xff] }
 0x480   :  { %2419 = vmatpush.bf16.msra.mxu2 %v3640_v17  ;;  %2433 = vmatpush.bf16.msra.mxu3 %v3637_v14  ;;  %v2000_v13 = vunpack.c.l.bf16 %v4539_v9  ;;  %v2001_v14 = vunpack.c.h.bf16 %v4539_v9 }
 0x483   :  { %2392 = vmatpush.bf16.msra.mxu0 %v3645_v22  ;;  %2406 = vmatpush.bf16.msra.mxu1 %v3647_v26 }
 0x484   :  { %2420 = vmatpush.bf16.msra.mxu2 %v3652_v30  ;;  %2434 = vmatpush.bf16.msra.mxu3 %v3649_v27 }
 0x487   :  { %2393 = vmatpush.bf16.msra.mxu0 %v3657_v35  ;;  %2407 = vmatpush.bf16.msra.mxu1 %v3659_v40 }
 0x488   :  { %2421 = vmatpush.bf16.msra.mxu2 %v3664_v45  ;;  %2435 = vmatpush.bf16.msra.mxu3 %v3661_v42 }
 0x48b   :  { %2394 = vmatpush.bf16.msra.mxu0 %v3669_v54  ;;  %2408 = vmatpush.bf16.msra.mxu1 %v3671_v61 }
 0x48c   :  { %2422 = vmatpush.bf16.msra.mxu2 %v3676_v2  ;;  %2436 = vmatpush.bf16.msra.mxu3 %v3673_v62 }
 0x48f   :  { %2395 = vmatpush.bf16.msra.mxu0 %v3681_v10  ;;  %2409 = vmatpush.bf16.msra.mxu1 %v3683_v16  ;;  %v1998_v10 = vunpack.c.l.bf16 %v4538_v63 }
 0x490   :  { %2423 = vmatpush.bf16.msra.mxu2 %v3696_v24  ;;  %2437 = vmatpush.bf16.msra.mxu3 %v3685_v18  ;;  %v4540_v18 = vld [vmem:[#allocation45_spill] sm:$0xff] }
 0x491   :  { %v2003_v24 = vunpack.c.h.bf16 %v4540_v18  ;;  %v2002_v23 = vunpack.c.l.bf16 %v4540_v18 }
 0x4ee   :  { %v1949_v48 = vpop.f32.mrf.mxu0  ;;  %v1963_v49 = vpop.f32.mrf.mxu1 }
 0x4ef   :  { %v2004_v52 = vadd.f32 %v1996_v41, %v1949_v48  ;;  %v2005_v55 = vadd.f32 %v1997_v47, %v1963_v49 }
 0x4f1   :  { %v2967_v59 = vmul.f32 -1.442695, %v2004_v52  ;;  %v2969_v60 = vmul.f32 -1.442695, %v2005_v55 }
 0x4f3   :  { %3323 = vpow2.f32 %v2967_v59 }
 0x4f4   :  { %3325 = vpow2.f32 %v2969_v60 }
 0x4f5   :  { %v1991_v4 = vpop.f32.mrf.mxu3  ;;  %v1977_v2 = vpop.f32.mrf.mxu2 }
 0x4f6   :  { %v2007_v17 = vadd.f32 %v1999_v3, %v1991_v4  ;;  %v1951_v22 = vpop.f32.mrf.mxu0  ;;  %v1965_v26 = vpop.f32.mrf.mxu1  ;;  %v2006_v58 = vadd.f32 %v1998_v10, %v1977_v2 }
 0x4f7   :  { %v2008_v27 = vadd.f32 %v2000_v13, %v1951_v22  ;;  %v2009_v30 = vadd.f32 %v2001_v14, %v1965_v26 }
 0x4f8   :  { %v2971_v35 = vmul.f32 -1.442695, %v2007_v17 }
 0x4f9   :  { %v3324_v40 = vpop.eup %3323  ;;  %v2968_v42 = vmul.f32 -1.442695, %v2008_v27  ;;  %v2970_v61 = vmul.f32 -1.442695, %v2009_v30 }
 0x4fa   :  { %v3326_v45 = vpop.eup %3325  ;;  %v2018_v54 = vadd.f32 1.0, %v3324_v40  ;;  %3327 = vpow2.f32 %v2971_v35 }
 0x4fb   :  { %v2056_v62 = vadd.f32 1.0, %v3326_v45  ;;  %3329 = vpow2.f32 %v2968_v42 }
 0x4fc   :  { %3331 = vrcp.f32 %v2018_v54  ;;  %v2029_v11 = vand.u32 2147483647, %v2018_v54  ;;  %v2031_v51 = vand.u32 2147483648, %v2018_v54  ;;  %vm2025_vm10 = vweird.f32 %v2018_v54 }
 0x4fd   :  { %3333 = vrcp.f32 %v2056_v62  ;;  %v1993_v16 = vpop.f32.mrf.mxu3  ;;  %v2069_v33 = vand.u32 2147483648, %v2056_v62  ;;  %v2067_v0 = vand.u32 2147483647, %v2056_v62  ;;  %v1979_v44 = vpop.f32.mrf.mxu2  ;;  %vm2063_vm11 = vweird.f32 %v2056_v62 }
 0x4fe   :  { %3335 = vpow2.f32 %v2970_v61  ;;  %v2011_v7 = vadd.f32 %v2003_v24, %v1993_v16  ;;  %v2032_v57 = vor.u32 1.1754944e-38, %v2031_v51  ;;  %vm2030_vm14 = vcmp.eq.f32.partialorder %v2029_v11, 8.507059e+37 }
 0x4ff   :  { %3337 = vtanh.f32 %v2006_v58  ;;  %v2070_v5 = vor.u32 1.1754944e-38, %v2069_v33  ;;  %v2010_v37 = vadd.f32 %v2002_v23, %v1979_v44  ;;  %vm2068_vm15 = vcmp.eq.f32.partialorder %v2067_v0, 8.507059e+37 }
 0x500   :  { %v3328_v39 = vpop.eup %3327  ;;  %v2972_v1 = vmul.f32 -1.442695, %v2011_v7 }
 0x501   :  { %v3330_v29 = vpop.eup %3329  ;;  %v4306_v15 = vadd.f32 1.0, %v3328_v39 }
 0x502   :  { %v3332_v28 = vpop.eup %3331  ;;  %v4308_v31 = vadd.f32 1.0, %v3330_v29 }
 0x503   :  { %v3334_v36 = vpop.eup %3333  ;;  %v2021_v12 = vmul.f32 %v3332_v28, %v2018_v54  ;;  %vm2026_vm8 = vweird.f32 %v3332_v28 }
 0x504   :  { %v3336_v46 = vpop.eup %3335  ;;  %v2059_v6 = vmul.f32 %v3334_v36, %v2056_v62  ;;  %3339 = vrcp.f32 %v4308_v31  ;;  %vm2064_vm9 = vweird.f32 %v3334_v36  ;;  %vm2027_vm12 = vmor %vm2025_vm10, %vm2026_vm8  ;;  %v2044_v13 = vand.u32 2147483647, %v4308_v31 }
 0x505   :  { %v2022_v43 = vsub.f32 1.0, %v2021_v12  ;;  %v4311_v19 = vadd.f32 1.0, %v3336_v46  ;;  %3341 = vrcp.f32 %v4306_v15  ;;  %v3338_v8 = vpop.eup %3337  ;;  %vm2065_vm13 = vmor %vm2063_vm11, %vm2064_vm9  ;;  %v2046_v14 = vand.u32 2147483648, %v4308_v31 }
 0x506   :  { %v2060_v20 = vsub.f32 1.0, %v2059_v6  ;;  %vm2040_vm1 = vweird.f32 %v4308_v31  ;;  %vm2045_vm5 = vcmp.eq.f32.partialorder %v2044_v13, 8.507059e+37  ;;  %vm2103_vm9 = vweird.f32 %v4306_v15 }
 0x507   :  { %v2023_v53 = vmul.f32 %v3332_v28, %v2022_v43  ;;  %3343 = vrcp.f32 %v4311_v19  ;;  %v2084_v27 = vand.u32 2147483648, %v4311_v19  ;;  %v2082_v40 = vand.u32 2147483647, %v4311_v19 }
 0x508   :  { %v2061_v38 = vmul.f32 %v3334_v36, %v2060_v20  ;;  %3345 = vpow2.f32 %v2972_v1  ;;  %vm2078_vm3 = vweird.f32 %v4311_v19  ;;  %v2047_v42 = vor.u32 1.1754944e-38, %v2046_v14 }
 0x509   :  { %v2024_v50 = vadd.f32 %v3332_v28, %v2023_v53  ;;  %3347 = vtanh.f32 %v2010_v37  ;;  %v2085_v2 = vor.u32 1.1754944e-38, %v2084_v27  ;;  %vm2083_vm7 = vcmp.eq.f32.partialorder %v2082_v40, 8.507059e+37 }
 0x50a   :  { %v2062_v32 = vadd.f32 %v3334_v36, %v2061_v38  ;;  %v3340_v25 = vpop.eup %3339  ;;  %v2109_v12 = vand.u32 2147483648, %v4306_v15 }
 0x50b   :  { %v2028_v56 = vsel %vm2027_vm12, %v3332_v28, %v2024_v50  ;;  %v4316_v41 = vpop.eup %3341  ;;  %v2036_v49 = vmul.f32 %v3340_v25, %v4308_v31  ;;  %vm2041_vm0 = vweird.f32 %v3340_v25 }
 0x50c   :  { %v2033_v47 = vsel %vm2030_vm14, %v2032_v57, %v2028_v56  ;;  %v2066_v48 = vsel %vm2065_vm13, %v3334_v36, %v2062_v32  ;;  %v2099_v9 = vmul.f32 %v4316_v41, %v4306_v15  ;;  %vm2042_vm4 = vmor %vm2040_vm1, %vm2041_vm0  ;;  %vm2104_vm8 = vweird.f32 %v4316_v41 }
 0x50d   :  { %v3344_v52 = vpop.eup %3343  ;;  %v2071_v55 = vsel %vm2068_vm15, %v2070_v5, %v2066_v48  ;;  %v2132_v59 = vmul.f32 %v3338_v8, %v2033_v47  ;;  %v2037_v63 = vsub.f32 1.0, %v2036_v49  ;;  %vm2105_vm11 = vmor %vm2103_vm9, %vm2104_vm8  ;;  %v2110_v11 = vor.u32 1.1754944e-38, %v2109_v12  ;;  %v4541_v8 = vld [vmem:[#allocation46_spill] sm:$0xff]  ;;  %v4542_v48 = vld [vmem:[#allocation47_spill] sm:$0xff] }
 0x50e   :  { %v2130_v60 = vmul.f32 %v2071_v55, %v4249_v21  ;;  %v2074_v3 = vmul.f32 %v3344_v52, %v4311_v19  ;;  %v3346_v4 = vpop.eup %3345  ;;  %vm2079_vm2 = vweird.f32 %v3344_v52  ;;  %v2100_v45 = vsub.f32 1.0, %v2099_v9  ;;  %v4543_v55 = vld [vmem:[#allocation48_spill] sm:$0xff] }
 0x50f   :  { %v2038_v26 = vmul.f32 %v3340_v25, %v2037_v63  ;;  %v2097_v21 = vadd.f32 1.0, %v3346_v4  ;;  %v3348_v62 = vpop.eup %3347  ;;  %vm2080_vm6 = vmor %vm2078_vm3, %vm2079_vm2  ;;  %v2220_v57 = vunpack.c.l.bf16 %v4541_v8  ;;  %v2221_v32 = vunpack.c.h.bf16 %v4541_v8 }
 0x510   :  { %v4325_v17 = vadd.f32 %v2132_v59, %v2130_v60  ;;  %v2075_v22 = vsub.f32 1.0, %v2074_v3  ;;  %v2101_v39 = vmul.f32 %v4316_v41, %v2100_v45  ;;  %v2223_v49 = vunpack.c.h.bf16 %v4542_v48 }
 0x511   :  { %v2039_v35 = vadd.f32 %v3340_v25, %v2038_v26  ;;  %3349 = vrcp.f32 %v2097_v21  ;;  %v2124_v46 = vand.u32 2147483648, %v2097_v21  ;;  %v2122_v43 = vand.u32 2147483647, %v2097_v21 }
 0x512   :  { %v2076_v30 = vmul.f32 %v3344_v52, %v2075_v22  ;;  %3351 = vtanh.f32 %v4325_v17  ;;  %v2102_v31 = vadd.f32 %v4316_v41, %v2101_v39  ;;  %vm2118_vm12 = vweird.f32 %v2097_v21 }
 0x513   :  { %v2043_v54 = vsel %vm2042_vm4, %v3340_v25, %v2039_v35  ;;  %v2125_v51 = vor.u32 1.1754944e-38, %v2124_v46  ;;  %vm2123_vm15 = vcmp.eq.f32.partialorder %v2122_v43, 8.507059e+37  ;;  %v2224_v59 = vunpack.c.l.bf16 %v4543_v55 }
 0x514   :  { %v2077_v61 = vadd.f32 %v3344_v52, %v2076_v30  ;;  %v2048_v10 = vsel %vm2045_vm5, %v2047_v42, %v2043_v54  ;;  %v2106_v19 = vsel %vm2105_vm11, %v4316_v41, %v2102_v31  ;;  %v2225_v60 = vunpack.c.h.bf16 %v4543_v55  ;;  %v4544_v54 = vld [vmem:[#allocation49_spill] sm:$0xff] }
 0x515   :  { %v2133_v18 = vmul.f32 %v3348_v62, %v2048_v10  ;;  %v2222_v42 = vunpack.c.l.bf16 %v4542_v48 }
 0x516   :  { %v2081_v16 = vsel %vm2080_vm6, %v3344_v52, %v2077_v61  ;;  %v2227_v61 = vunpack.c.h.bf16 %v4544_v54 }
 0x517   :  { %v2086_v24 = vsel %vm2083_vm7, %v2085_v2, %v2081_v16  ;;  %v3350_v29 = vpop.eup %3349 }
 0x518   :  { %v2131_v58 = vmul.f32 %v2086_v24, %v4257_v34  ;;  %v2114_v28 = vmul.f32 %v3350_v29, %v2097_v21  ;;  %v2107_v34 = vand.u32 2147483647, %v4306_v15  ;;  %vm2119_vm10 = vweird.f32 %v3350_v29  ;;  %v3352_v20 = vpop.eup %3351 }
 0x519   :  { %vm2120_vm13 = vmor %vm2118_vm12, %vm2119_vm10 }
 0x51a   :  { %v4333_v7 = vadd.f32 %v2133_v18, %v2131_v58  ;;  %v2115_v36 = vsub.f32 1.0, %v2114_v28  ;;  %vm2108_vm14 = vcmp.eq.f32.partialorder %v2107_v34, 8.507059e+37 }
 0x51b   :  { %v2111_v38 = vsel %vm2108_vm14, %v2110_v11, %v2106_v19 }
 0x51c   :  { %3353 = vtanh.f32 %v4333_v7  ;;  %v2116_v6 = vmul.f32 %v3350_v29, %v2115_v36  ;;  %v2138_v44 = vmul.f32 %v3352_v20, %v2111_v38 }
 0x51e   :  { %v2117_v1 = vadd.f32 %v3350_v29, %v2116_v6 }
 0x520   :  { %v2121_v53 = vsel %vm2120_vm13, %v3350_v29, %v2117_v1 }
 0x521   :  { %v2126_v0 = vsel %vm2123_vm15, %v2125_v51, %v2121_v53  ;;  %v2226_v53 = vunpack.c.l.bf16 %v4544_v54 }
 0x522   :  { %v3354_v33 = vpop.eup %3353 }
 0x523   :  { %v2139_v15 = vmul.f32 %v3354_v33, %v2126_v0 }
 0x525   :  { %v3126_v50 = vpack.c.bf16 %v2139_v15, %v2138_v44 }
 0x527   :  { %3132 = vst [vmem:[#allocation13 + $0x28] sm:$0xff] %v3126_v50  }
 0x528   :  { %3127 = vst [vmem:[#allocation2] sm:$0xff] %v3126_v50  }
 0x52f   :  { %v3071_v23 = vld [vmem:[#allocation2] sm:$0xff] }
 0x530   :  { %2172 = vmatmul.bf16.vlgmr.msrb.gmra.mxu0 %v3071_v23  ;;  %2186 = vmatmul.bf16.vlgmr.msrb.gmra.mxu1 %v3071_v23 }
 0x531   :  { %2200 = vmatmul.bf16.vlgmr.msrb.gmra.mxu2 %v3071_v23  ;;  %2214 = vmatmul.bf16.vlgmr.msrb.gmra.mxu3 %v3071_v23 }
 0x5ad   :  { %v2173_v25 = vpop.f32.mrf.mxu0  ;;  %v2187_v5 = vpop.f32.mrf.mxu1 }
 0x5ae   :  { %v2228_v56 = vadd.f32 %v2220_v57, %v2173_v25  ;;  %v2229_v37 = vadd.f32 %v2221_v32, %v2187_v5 }
 0x5b0   :  { %v2977_v41 = vmul.f32 -1.442695, %v2228_v56  ;;  %v2979_v47 = vmul.f32 -1.442695, %v2229_v37 }
 0x5b2   :  { %3355 = vpow2.f32 %v2977_v41 }
 0x5b3   :  { %3357 = vpow2.f32 %v2979_v47 }
 0x5b4   :  { %v2215_v52 = vpop.f32.mrf.mxu3  ;;  %v2201_v40 = vpop.f32.mrf.mxu2 }
 0x5b5   :  { %v2231_v63 = vadd.f32 %v2223_v49, %v2215_v52  ;;  %v2175_v3 = vpop.f32.mrf.mxu0  ;;  %v2189_v4 = vpop.f32.mrf.mxu1  ;;  %v2230_v2 = vadd.f32 %v2222_v42, %v2201_v40 }
 0x5b6   :  { %v2232_v9 = vadd.f32 %v2224_v59, %v2175_v3  ;;  %v2233_v13 = vadd.f32 %v2225_v60, %v2189_v4 }
 0x5b7   :  { %v2981_v14 = vmul.f32 -1.442695, %v2231_v63 }
 0x5b8   :  { %v3356_v22 = vpop.eup %3355  ;;  %v2978_v26 = vmul.f32 -1.442695, %v2232_v9  ;;  %v2980_v30 = vmul.f32 -1.442695, %v2233_v13 }
 0x5b9   :  { %v3358_v27 = vpop.eup %3357  ;;  %v2242_v21 = vadd.f32 1.0, %v3356_v22  ;;  %3359 = vpow2.f32 %v2981_v14 }
 0x5ba   :  { %v2280_v35 = vadd.f32 1.0, %v3358_v27  ;;  %3361 = vpow2.f32 %v2978_v26 }
 0x5bb   :  { %3363 = vrcp.f32 %v2242_v21  ;;  %v2253_v6 = vand.u32 2147483647, %v2242_v21  ;;  %v2255_v43 = vand.u32 2147483648, %v2242_v21  ;;  %vm2249_vm2 = vweird.f32 %v2242_v21 }
 0x5bc   :  { %3365 = vrcp.f32 %v2280_v35  ;;  %v2217_v45 = vpop.f32.mrf.mxu3  ;;  %v2293_v19 = vand.u32 2147483648, %v2280_v35  ;;  %v2291_v11 = vand.u32 2147483647, %v2280_v35  ;;  %v2203_v51 = vpop.f32.mrf.mxu2  ;;  %vm2287_vm3 = vweird.f32 %v2280_v35 }
 0x5bd   :  { %3367 = vpow2.f32 %v2980_v30  ;;  %v2235_v16 = vadd.f32 %v2227_v61, %v2217_v45  ;;  %v2256_v0 = vor.u32 1.1754944e-38, %v2255_v43  ;;  %vm2254_vm6 = vcmp.eq.f32.partialorder %v2253_v6, 8.507059e+37 }
 0x5be   :  { %3369 = vtanh.f32 %v2230_v2  ;;  %v2294_v50 = vor.u32 1.1754944e-38, %v2293_v19  ;;  %v2234_v8 = vadd.f32 %v2226_v53, %v2203_v51  ;;  %vm2292_vm7 = vcmp.eq.f32.partialorder %v2291_v11, 8.507059e+37 }
 0x5bf   :  { %v3360_v62 = vpop.eup %3359  ;;  %v2982_v46 = vmul.f32 -1.442695, %v2235_v16 }
 0x5c0   :  { %v3362_v10 = vpop.eup %3361  ;;  %v4350_v24 = vadd.f32 1.0, %v3360_v62 }
 0x5c1   :  { %v3364_v18 = vpop.eup %3363  ;;  %v4352_v39 = vadd.f32 1.0, %v3362_v10 }
 0x5c2   :  { %v3366_v58 = vpop.eup %3365  ;;  %v2245_v29 = vmul.f32 %v3364_v18, %v2242_v21  ;;  %vm2250_vm0 = vweird.f32 %v3364_v18 }
 0x5c3   :  { %v3368_v28 = vpop.eup %3367  ;;  %v2283_v31 = vmul.f32 %v3366_v58, %v2280_v35  ;;  %3371 = vrcp.f32 %v4352_v39  ;;  %vm2288_vm1 = vweird.f32 %v3366_v58  ;;  %vm2251_vm4 = vmor %vm2249_vm2, %vm2250_vm0  ;;  %v2268_v59 = vand.u32 2147483647, %v4352_v39 }
 0x5c4   :  { %v2246_v36 = vsub.f32 1.0, %v2245_v29  ;;  %v4355_v12 = vadd.f32 1.0, %v3368_v28  ;;  %3373 = vrcp.f32 %v4350_v24  ;;  %v3370_v38 = vpop.eup %3369  ;;  %vm2289_vm5 = vmor %vm2287_vm3, %vm2288_vm1  ;;  %v2270_v60 = vand.u32 2147483648, %v4352_v39 }
 0x5c5   :  { %v2284_v34 = vsub.f32 1.0, %v2283_v31  ;;  %vm2264_vm9 = vweird.f32 %v4352_v39  ;;  %vm2269_vm13 = vcmp.eq.f32.partialorder %v2268_v59, 8.507059e+37  ;;  %vm2327_vm1 = vweird.f32 %v4350_v24 }
 0x5c6   :  { %v2247_v1 = vmul.f32 %v3364_v18, %v2246_v36  ;;  %3375 = vrcp.f32 %v4355_v12  ;;  %v2308_v9 = vand.u32 2147483648, %v4355_v12  ;;  %v2306_v22 = vand.u32 2147483647, %v4355_v12 }
 0x5c7   :  { %v2285_v20 = vmul.f32 %v3366_v58, %v2284_v34  ;;  %3377 = vpow2.f32 %v2982_v46  ;;  %vm2302_vm11 = vweird.f32 %v4355_v12  ;;  %v2271_v26 = vor.u32 1.1754944e-38, %v2270_v60 }
 0x5c8   :  { %v2248_v33 = vadd.f32 %v3364_v18, %v2247_v1  ;;  %3379 = vtanh.f32 %v2234_v8  ;;  %v2309_v40 = vor.u32 1.1754944e-38, %v2308_v9  ;;  %vm2307_vm15 = vcmp.eq.f32.partialorder %v2306_v22, 8.507059e+37 }
 0x5c9   :  { %v2286_v44 = vadd.f32 %v3366_v58, %v2285_v20  ;;  %v3372_v15 = vpop.eup %3371  ;;  %v2333_v29 = vand.u32 2147483648, %v4350_v24 }
 0x5ca   :  { %v2252_v23 = vsel %vm2251_vm4, %v3364_v18, %v2248_v33  ;;  %v4360_v57 = vpop.eup %3373  ;;  %v2260_v5 = vmul.f32 %v3372_v15, %v4352_v39  ;;  %vm2265_vm8 = vweird.f32 %v3372_v15 }
 0x5cb   :  { %v2257_v32 = vsel %vm2254_vm6, %v2256_v0, %v2252_v23  ;;  %v2290_v25 = vsel %vm2289_vm5, %v3366_v58, %v2286_v44  ;;  %v2323_v55 = vmul.f32 %v4360_v57, %v4350_v24  ;;  %vm2266_vm12 = vmor %vm2264_vm9, %vm2265_vm8  ;;  %vm2328_vm0 = vweird.f32 %v4360_v57 }
 0x5cc   :  { %v3376_v56 = vpop.eup %3375  ;;  %v2295_v37 = vsel %vm2292_vm7, %v2294_v50, %v2290_v25  ;;  %v2356_v41 = vmul.f32 %v3370_v38, %v2257_v32  ;;  %v2261_v48 = vsub.f32 1.0, %v2260_v5  ;;  %vm2329_vm3 = vmor %vm2327_vm1, %vm2328_vm0  ;;  %v2334_v6 = vor.u32 1.1754944e-38, %v2333_v29  ;;  %v4545_v38 = vld [vmem:[#allocation50_spill] sm:$0xff]  ;;  %v4546_v25 = vld [vmem:[#allocation51_spill] sm:$0xff] }
 0x5cd   :  { %v2354_v47 = vmul.f32 %v2295_v37, %v4325_v17  ;;  %v2298_v49 = vmul.f32 %v3376_v56, %v4355_v12  ;;  %v3378_v52 = vpop.eup %3377  ;;  %vm2303_vm10 = vweird.f32 %v3376_v56  ;;  %v2324_v27 = vsub.f32 1.0, %v2323_v55  ;;  %v4547_v37 = vld [vmem:[#allocation52_spill] sm:$0xff] }
 0x5ce   :  { %v2262_v4 = vmul.f32 %v3372_v15, %v2261_v48  ;;  %v2321_v17 = vadd.f32 1.0, %v3378_v52  ;;  %v3380_v35 = vpop.eup %3379  ;;  %vm2304_vm14 = vmor %vm2302_vm11, %vm2303_vm10  ;;  %v2444_v0 = vunpack.c.l.bf16 %v4545_v38  ;;  %v2445_v44 = vunpack.c.h.bf16 %v4545_v38 }
 0x5cf   :  { %v4369_v63 = vadd.f32 %v2356_v41, %v2354_v47  ;;  %v2299_v3 = vsub.f32 1.0, %v2298_v49  ;;  %v2325_v62 = vmul.f32 %v4360_v57, %v2324_v27  ;;  %v2447_v5 = vunpack.c.h.bf16 %v4546_v25 }
 0x5d0   :  { %v2263_v14 = vadd.f32 %v3372_v15, %v2262_v4  ;;  %3381 = vrcp.f32 %v2321_v17  ;;  %v2348_v28 = vand.u32 2147483648, %v2321_v17  ;;  %v2346_v36 = vand.u32 2147483647, %v2321_v17 }
 0x5d1   :  { %v2300_v13 = vmul.f32 %v3376_v56, %v2299_v3  ;;  %3383 = vtanh.f32 %v4369_v63  ;;  %v2326_v39 = vadd.f32 %v4360_v57, %v2325_v62  ;;  %vm2342_vm4 = vweird.f32 %v2321_v17 }
 0x5d2   :  { %v2267_v21 = vsel %vm2266_vm12, %v3372_v15, %v2263_v14  ;;  %v2349_v43 = vor.u32 1.1754944e-38, %v2348_v28  ;;  %vm2347_vm7 = vcmp.eq.f32.partialorder %v2346_v36, 8.507059e+37  ;;  %v2448_v41 = vunpack.c.l.bf16 %v4547_v37 }
 0x5d3   :  { %v2301_v30 = vadd.f32 %v3376_v56, %v2300_v13  ;;  %v2272_v42 = vsel %vm2269_vm13, %v2271_v26, %v2267_v21  ;;  %v2330_v12 = vsel %vm2329_vm3, %v4360_v57, %v2326_v39  ;;  %v2449_v47 = vunpack.c.h.bf16 %v4547_v37  ;;  %v4548_v21 = vld [vmem:[#allocation53_spill] sm:$0xff] }
 0x5d4   :  { %v2357_v54 = vmul.f32 %v3380_v35, %v2272_v42  ;;  %v2446_v26 = vunpack.c.l.bf16 %v4546_v25 }
 0x5d5   :  { %v2305_v45 = vsel %vm2304_vm14, %v3376_v56, %v2301_v30  ;;  %v2451_v30 = vunpack.c.h.bf16 %v4548_v21 }
 0x5d6   :  { %v2310_v61 = vsel %vm2307_vm15, %v2309_v40, %v2305_v45  ;;  %v3382_v10 = vpop.eup %3381 }
 0x5d7   :  { %v2355_v2 = vmul.f32 %v2310_v61, %v4333_v7  ;;  %v2338_v18 = vmul.f32 %v3382_v10, %v2321_v17  ;;  %v2331_v7 = vand.u32 2147483647, %v4350_v24  ;;  %vm2343_vm2 = vweird.f32 %v3382_v10  ;;  %v3384_v34 = vpop.eup %3383 }
 0x5d8   :  { %vm2344_vm5 = vmor %vm2342_vm4, %vm2343_vm2 }
 0x5d9   :  { %v4377_v16 = vadd.f32 %v2357_v54, %v2355_v2  ;;  %v2339_v58 = vsub.f32 1.0, %v2338_v18  ;;  %vm2332_vm6 = vcmp.eq.f32.partialorder %v2331_v7, 8.507059e+37 }
 0x5da   :  { %v2335_v20 = vsel %vm2332_vm6, %v2334_v6, %v2330_v12 }
 0x5db   :  { %3385 = vtanh.f32 %v4377_v16  ;;  %v2340_v31 = vmul.f32 %v3382_v10, %v2339_v58  ;;  %v2362_v51 = vmul.f32 %v3384_v34, %v2335_v20  ;;  %v2450_v58 = vunpack.c.l.bf16 %v4548_v21 }
 0x5dd   :  { %v2341_v46 = vadd.f32 %v3382_v10, %v2340_v31 }
 0x5df   :  { %v2345_v1 = vsel %vm2344_vm5, %v3382_v10, %v2341_v46 }
 0x5e0   :  { %v2350_v11 = vsel %vm2347_vm7, %v2349_v43, %v2345_v1 }
 0x5e1   :  { %v3386_v19 = vpop.eup %3385 }
 0x5e2   :  { %v2363_v24 = vmul.f32 %v3386_v19, %v2350_v11 }
 0x5e4   :  { %v3136_v33 = vpack.c.bf16 %v2363_v24, %v2362_v51 }
 0x5e6   :  { %3142 = vst [vmem:[#allocation13 + $0x30] sm:$0xff] %v3136_v33  }
 0x5e7   :  { %3137 = vst [vmem:[#allocation2] sm:$0xff] %v3136_v33  }
 0x5ee   :  { %v3072_v53 = vld [vmem:[#allocation2] sm:$0xff] }
 0x5ef   :  { %2396 = vmatmul.bf16.vlgmr.msra.gmra.mxu0 %v3072_v53  ;;  %2410 = vmatmul.bf16.vlgmr.msra.gmra.mxu1 %v3072_v53 }
 0x5f0   :  { %2424 = vmatmul.bf16.vlgmr.msra.gmra.mxu2 %v3072_v53  ;;  %2438 = vmatmul.bf16.vlgmr.msra.gmra.mxu3 %v3072_v53 }
 0x66c   :  { %v2397_v15 = vpop.f32.mrf.mxu0  ;;  %v2411_v50 = vpop.f32.mrf.mxu1 }
 0x66d   :  { %v2452_v23 = vadd.f32 %v2444_v0, %v2397_v15  ;;  %v2453_v8 = vadd.f32 %v2445_v44, %v2411_v50 }
 0x66f   :  { %v2987_v57 = vmul.f32 -1.442695, %v2452_v23  ;;  %v2989_v32 = vmul.f32 -1.442695, %v2453_v8 }
 0x671   :  { %3387 = vpow2.f32 %v2987_v57 }
 0x672   :  { %3389 = vpow2.f32 %v2989_v32 }
 0x673   :  { %v2439_v56 = vpop.f32.mrf.mxu3  ;;  %v2425_v22 = vpop.f32.mrf.mxu2 }
 0x674   :  { %v2455_v48 = vadd.f32 %v2447_v5, %v2439_v56  ;;  %v2399_v49 = vpop.f32.mrf.mxu0  ;;  %v2413_v52 = vpop.f32.mrf.mxu1  ;;  %v2454_v40 = vadd.f32 %v2446_v26, %v2425_v22 }
 0x675   :  { %v2456_v55 = vadd.f32 %v2448_v41, %v2399_v49  ;;  %v2457_v59 = vadd.f32 %v2449_v47, %v2413_v52 }
 0x676   :  { %v2991_v60 = vmul.f32 -1.442695, %v2455_v48 }
 0x677   :  { %v3388_v3 = vpop.eup %3387  ;;  %v2988_v4 = vmul.f32 -1.442695, %v2456_v55  ;;  %v2990_v13 = vmul.f32 -1.442695, %v2457_v59 }
 0x678   :  { %v3390_v9 = vpop.eup %3389  ;;  %v2466_v17 = vadd.f32 1.0, %v3388_v3  ;;  %3391 = vpow2.f32 %v2991_v60 }
 0x679   :  { %v2504_v14 = vadd.f32 1.0, %v3390_v9  ;;  %3393 = vpow2.f32 %v2988_v4 }
 0x67a   :  { %3395 = vrcp.f32 %v2466_v17  ;;  %v2477_v12 = vand.u32 2147483647, %v2466_v17  ;;  %v2479_v46 = vand.u32 2147483648, %v2466_v17  ;;  %vm2473_vm10 = vweird.f32 %v2466_v17 }
 0x67b   :  { %3397 = vrcp.f32 %v2504_v14  ;;  %v2441_v27 = vpop.f32.mrf.mxu3  ;;  %v2517_v36 = vand.u32 2147483648, %v2504_v14  ;;  %v2427_v34 = vpop.f32.mrf.mxu2  ;;  %v2515_v43 = vand.u32 2147483647, %v2504_v14  ;;  %vm2511_vm11 = vweird.f32 %v2504_v14 }
 0x67c   :  { %3399 = vpow2.f32 %v2990_v13  ;;  %v2459_v54 = vadd.f32 %v2451_v30, %v2441_v27  ;;  %v2458_v11 = vadd.f32 %v2450_v58, %v2427_v34  ;;  %v2480_v24 = vor.u32 1.1754944e-38, %v2479_v46 }
 0x67d   :  { %v2518_v0 = vor.u32 1.1754944e-38, %v2517_v36  ;;  %vm2478_vm14 = vcmp.eq.f32.partialorder %v2477_v12, 8.507059e+37  ;;  %vm2516_vm15 = vcmp.eq.f32.partialorder %v2515_v43, 8.507059e+37 }
 0x67e   :  { %v3392_v35 = vpop.eup %3391  ;;  %v2992_v7 = vmul.f32 -1.442695, %v2459_v54 }
 0x67f   :  { %v3394_v42 = vpop.eup %3393  ;;  %v4394_v45 = vadd.f32 1.0, %v3392_v35 }
 0x680   :  { %v3396_v61 = vpop.eup %3395  ;;  %v4396_v62 = vadd.f32 1.0, %v3394_v42 }
 0x681   :  { %v3398_v2 = vpop.eup %3397  ;;  %v2469_v10 = vmul.f32 %v3396_v61, %v2466_v17  ;;  %3401 = vrcp.f32 %v4394_v45  ;;  %vm2474_vm8 = vweird.f32 %v3396_v61  ;;  %v2557_v5 = vand.u32 2147483648, %v4394_v45 }
 0x682   :  { %v3400_v18 = vpop.eup %3399  ;;  %v2507_v39 = vmul.f32 %v3398_v2, %v2504_v14  ;;  %3403 = vtanh.f32 %v2454_v40  ;;  %vm2512_vm9 = vweird.f32 %v3398_v2  ;;  %vm2475_vm12 = vmor %vm2473_vm10, %vm2474_vm8  ;;  %vm2488_vm0 = vweird.f32 %v4396_v62 }
 0x683   :  { %v2470_v29 = vsub.f32 1.0, %v2469_v10  ;;  %3405 = vrcp.f32 %v4396_v62  ;;  %v4401_v28 = vadd.f32 1.0, %v3400_v18  ;;  %vm2513_vm13 = vmor %vm2511_vm11, %vm2512_vm9  ;;  %v2492_v52 = vand.u32 2147483647, %v4396_v62 }
 0x684   :  { %v2508_v31 = vsub.f32 1.0, %v2507_v39  ;;  %v2494_v55 = vand.u32 2147483648, %v4396_v62  ;;  %vm2551_vm4 = vweird.f32 %v4394_v45  ;;  %v2555_v22 = vand.u32 2147483647, %v4394_v45 }
 0x685   :  { %v2471_v6 = vmul.f32 %v3396_v61, %v2470_v29  ;;  %3407 = vrcp.f32 %v4401_v28  ;;  %v2532_v49 = vand.u32 2147483648, %v4401_v28  ;;  %v2530_v4 = vand.u32 2147483647, %v4401_v28 }
 0x686   :  { %v2509_v19 = vmul.f32 %v3398_v2, %v2508_v31  ;;  %3409 = vpow2.f32 %v2992_v7  ;;  %v2495_v26 = vor.u32 1.1754944e-38, %v2494_v55  ;;  %vm2526_vm7 = vweird.f32 %v4401_v28 }
 0x687   :  { %v4404_v1 = vpop.eup %3401  ;;  %v2472_v20 = vadd.f32 %v3396_v61, %v2471_v6  ;;  %3411 = vtanh.f32 %v2458_v11  ;;  %vm2493_vm8 = vcmp.eq.f32.partialorder %v2492_v52, 8.507059e+37  ;;  %v2533_v40 = vor.u32 1.1754944e-38, %v2532_v49 }
 0x688   :  { %v3404_v51 = vpop.eup %3403  ;;  %v2510_v33 = vadd.f32 %v3398_v2, %v2509_v19  ;;  %v2547_v53 = vmul.f32 %v4404_v1, %v4394_v45  ;;  %vm2552_vm2 = vweird.f32 %v4404_v1  ;;  %v2558_v45 = vor.u32 1.1754944e-38, %v2557_v5 }
 0x689   :  { %v3406_v38 = vpop.eup %3405  ;;  %v2476_v44 = vsel %vm2475_vm12, %v3396_v61, %v2472_v20  ;;  %vm4424_vm6 = vmor %vm2551_vm4, %vm2552_vm2  ;;  %vm2531_vm10 = vcmp.eq.f32.partialorder %v2530_v4, 8.507059e+37  ;;  %vm2556_vm11 = vcmp.eq.f32.partialorder %v2555_v22, 8.507059e+37 }
 0x68a   :  { %v2481_v15 = vsel %vm2478_vm14, %v2480_v24, %v2476_v44  ;;  %v2514_v50 = vsel %vm2513_vm13, %v3398_v2, %v2510_v33  ;;  %v2548_v23 = vsub.f32 1.0, %v2547_v53  ;;  %v2484_v8 = vmul.f32 %v3406_v38, %v4396_v62 }
 0x68b   :  { %v3408_v57 = vpop.eup %3407  ;;  %v2519_v32 = vsel %vm2516_vm15, %v2518_v0, %v2514_v50  ;;  %v2580_v25 = vmul.f32 %v3404_v51, %v2481_v15  ;;  %vm2489_vm1 = vweird.f32 %v3406_v38 }
 0x68c   :  { %v2578_v56 = vmul.f32 %v2519_v32, %v4369_v63  ;;  %v2549_v37 = vmul.f32 %v4404_v1, %v2548_v23  ;;  %v2485_v41 = vsub.f32 1.0, %v2484_v8  ;;  %v2522_v47 = vmul.f32 %v3408_v57, %v4401_v28  ;;  %v3410_v48 = vpop.eup %3409  ;;  %vm2490_vm5 = vmor %vm2488_vm0, %vm2489_vm1 }
 0x68d   :  { %v2545_v9 = vadd.f32 1.0, %v3410_v48  ;;  %vm2527_vm3 = vweird.f32 %v3408_v57  ;;  %v3412_v14 = vpop.eup %3411 }
 0x68e   :  { %v2582_v59 = vadd.f32 %v2580_v25, %v2578_v56  ;;  %v2523_v60 = vsub.f32 1.0, %v2522_v47  ;;  %v2486_v3 = vmul.f32 %v3406_v38, %v2485_v41  ;;  %v2550_v63 = vadd.f32 %v4404_v1, %v2549_v37  ;;  %vm2528_vm9 = vmor %vm2526_vm7, %vm2527_vm3 }
 0x68f   :  { %v2572_v31 = vand.u32 2147483648, %v2545_v9  ;;  %v2570_v12 = vand.u32 2147483647, %v2545_v9  ;;  %vm2566_vm13 = vweird.f32 %v2545_v9 }
 0x690   :  { %3413 = vtanh.f32 %v2582_v59  ;;  %v2524_v17 = vmul.f32 %v3408_v57, %v2523_v60  ;;  %v2487_v13 = vadd.f32 %v3406_v38, %v2486_v3  ;;  %v2554_v35 = vsel %vm4424_vm6, %v4404_v1, %v2550_v63 }
 0x691   :  { %3415 = vrcp.f32 %v2545_v9  ;;  %v2559_v10 = vsel %vm2556_vm11, %v2558_v45, %v2554_v35  ;;  %v2573_v34 = vor.u32 1.1754944e-38, %v2572_v31  ;;  %vm2571_vm15 = vcmp.eq.f32.partialorder %v2570_v12, 8.507059e+37 }
 0x692   :  { %v2491_v21 = vsel %vm2490_vm5, %v3406_v38, %v2487_v13  ;;  %v2525_v30 = vadd.f32 %v3408_v57, %v2524_v17 }
 0x693   :  { %v2496_v42 = vsel %vm2493_vm8, %v2495_v26, %v2491_v21 }
 0x694   :  { %v2529_v54 = vsel %vm2528_vm9, %v3408_v57, %v2525_v30  ;;  %v2581_v61 = vmul.f32 %v3412_v14, %v2496_v42 }
 0x695   :  { %v2534_v62 = vsel %vm2531_vm10, %v2533_v40, %v2529_v54 }
 0x696   :  { %v3414_v2 = vpop.eup %3413  ;;  %v2579_v18 = vmul.f32 %v2534_v62, %v4377_v16 }
 0x697   :  { %v3416_v39 = vpop.eup %3415  ;;  %v2586_v58 = vmul.f32 %v3414_v2, %v2559_v10 }
 0x698   :  { %v2583_v29 = vadd.f32 %v2581_v61, %v2579_v18  ;;  %v2562_v28 = vmul.f32 %v3416_v39, %v2545_v9  ;;  %vm2567_vm12 = vweird.f32 %v3416_v39 }
 0x699   :  { %vm2568_vm14 = vmor %vm2566_vm13, %vm2567_vm12 }
 0x69a   :  { %3417 = vtanh.f32 %v2583_v29  ;;  %v2563_v7 = vsub.f32 1.0, %v2562_v28 }
 0x69c   :  { %v2564_v36 = vmul.f32 %v3416_v39, %v2563_v7 }
 0x69e   :  { %v2565_v46 = vadd.f32 %v3416_v39, %v2564_v36 }
 0x6a0   :  { %v3418_v6 = vpop.eup %3417  ;;  %v2569_v43 = vsel %vm2568_vm14, %v3416_v39, %v2565_v46 }
 0x6a1   :  { %v2574_v19 = vsel %vm2571_vm15, %v2573_v34, %v2569_v43 }
 0x6a2   :  { %v2587_v1 = vmul.f32 %v3418_v6, %v2574_v19 }
 0x6a4   :  { %v3146_v16 = vpack.c.bf16 %v2587_v1, %v2586_v58 }
 0x6a6   :  { %3147 = vst [vmem:[#allocation2] sm:$0xff] %v3146_v16  }
 0x6a7   :  { %3152 = vst [vmem:[#allocation13 + $0x38] sm:$0xff] %v3146_v16  }
 0x6a8   :  { %2609 = dma.vmem_to_hbm [thread:$0]  %s2602_s3, 1024, %s2604_s13, [#allocation7], %s3551_s27, %s3551_s27, %s3552_s28  }
 0x6a9   :  { %3545 = dma.done.wait [#allocation7], 1024  }
 0x6aa   :  { %3546 = vsyncadd [#allocation7], 4294966272 }
 0x6ab   :  { %2614 = vsyncpa [#allocation6], 1 }
 0x6ac   :  { %2615 = vsyncpa [#allocation9], 1 }
 0x6ad   :  { %2616 = vsyncpa [#allocation12], 1 }
 0x6ae   :  { %2617 = vsyncpa [#allocation7], 1 }

</bundles_post_ra>
